<compile_context>
chip_gen: v5e
topology: v5e:2x2
jax: 0.10.0
libtpu: 0.0.40
codegen_flags: <defaults>
</compile_context>

<pallas_src>
import functools
import math

import jax
import jax.numpy as jnp
from jax.experimental import pallas as pl
from jax.experimental.pallas import tpu as pltpu

# ------------- scaled-down "roberta-base" config (synthetic, deterministic) ---
# real roberta-base: hidden=768, layers=12, heads=12, intermediate=3072, vocab=50265
HIDDEN = 128
NUM_HEADS = 4
HEAD_DIM = HIDDEN // NUM_HEADS
NUM_LAYERS = 2
INTERMEDIATE = 256
VOCAB = 64
MAX_POS = 32
PAD_ID = 1
LN_EPS = 1e-5
NEG_INF = -1e9


# --------------------------------- helpers ------------------------------------
def _gelu(y):
    # TODO(synk): HF roberta uses exact erf-GELU; tanh approximation used here.
    c = jnp.float32(math.sqrt(2.0 / math.pi))
    return 0.5 * y * (1.0 + jnp.tanh(c * (y + 0.044715 * y * y * y)))


def _layernorm(y, g, b, eps):
    mu = jnp.mean(y, axis=-1, keepdims=True)
    d = y - mu
    var = jnp.mean(d * d, axis=-1, keepdims=True)
    return d * jax.lax.rsqrt(var + eps) * g + b


def _pick_bt(B):
    """Largest divisor of B that still gives a grid of >= 2 steps (v7x megacore)."""
    if B <= 1:
        return max(B, 1)
    for cand in range(B // 2, 0, -1):
        if B % cand == 0:
            return cand
    return 1


# ------------------------------ fused kernel ----------------------------------
def _encoder_kernel(emb_ref, mask_ref,
                    embg_ref, embb_ref,
                    wqkv_ref, bqkv_ref, wo_ref, bo_ref, ln1g_ref, ln1b_ref,
                    wi_ref, bi_ref, wf_ref, bf_ref, ln2g_ref, ln2b_ref,
                    wp_ref, bp_ref, wc_ref, bc_ref,
                    o_ref, *, num_layers, num_heads, scale, eps):
    bt, s, h = emb_ref.shape
    dh = h // num_heads

    # ---- embedding LayerNorm (fused; no standalone LN kernel) ----------------
    x2d = _layernorm(emb_ref[...].reshape(bt * s, h),
                     embg_ref[...], embb_ref[...], eps)

    # additive mask bias, broadcast to heads ONCE (hoisted out of layer loop)
    mask = mask_ref[...]                                         # (bt, 1, S) f32
    maskh = jnp.broadcast_to(mask[:, None, :, :],
                             (bt, num_heads, 1, s)).reshape(bt * num_heads, 1, s)

    for li in range(num_layers):
        # ---------------- attention ------------------------------------------
        # fused QKV: one (H, 3H) MXU matmul, bf16 in / f32 accumulate
        qkv = jnp.dot(x2d.astype(jnp.bfloat16), wqkv_ref[li],
                      preferred_element_type=jnp.float32) + bqkv_ref[li]

        # 128-lane-aligned column groups, heads folded into a single batch axis
        q = qkv[:, :h].reshape(bt, s, num_heads, dh)
        k = qkv[:, h:2 * h].reshape(bt, s, num_heads, dh)
        v = qkv[:, 2 * h:3 * h].reshape(bt, s, num_heads, dh)
        qh = q.transpose(0, 2, 1, 3).reshape(bt * num_heads, s, dh)
        kh = k.transpose(0, 2, 1, 3).reshape(bt * num_heads, s, dh)
        vh = v.transpose(0, 2, 1, 3).reshape(bt * num_heads, s, dh)

        sc = jnp.einsum("bqd,bkd->bqk",
                        qh.astype(jnp.bfloat16), kh.astype(jnp.bfloat16),
                        preferred_element_type=jnp.float32) * scale
        sc = sc + maskh
        sc = sc - jnp.max(sc, axis=-1, keepdims=True)
        p = jnp.exp(sc)
        p = p * pl.reciprocal(jnp.sum(p, axis=-1, keepdims=True), approx=True)

        ctxh = jnp.einsum("bqk,bkd->bqd",
                          p.astype(jnp.bfloat16), vh.astype(jnp.bfloat16),
                          preferred_element_type=jnp.float32)
        # back to token-major, head-concat features (lane-dense (., 128))
        ctx2d = ctxh.reshape(bt, num_heads, s, dh).transpose(0, 2, 1, 3) \
                    .reshape(bt * s, h)

        y = jnp.dot(ctx2d.astype(jnp.bfloat16), wo_ref[li],
                    preferred_element_type=jnp.float32) + bo_ref[li]
        x2d = _layernorm(y + x2d, ln1g_ref[li], ln1b_ref[li], eps)

        # ---------------- FFN --------------------------------------------------
        inter = jnp.dot(x2d.astype(jnp.bfloat16), wi_ref[li],
                        preferred_element_type=jnp.float32) + bi_ref[li]
        inter = _gelu(inter)
        y = jnp.dot(inter.astype(jnp.bfloat16), wf_ref[li],
                    preferred_element_type=jnp.float32) + bf_ref[li]
        x2d = _layernorm(y + x2d, ln2g_ref[li], ln2b_ref[li], eps)

    # ---------------- pooler + classifier (fused into the same kernel) --------
    cls_tok = x2d.reshape(bt, s, h)[:, 0, :]                     # (bt, H)
    pooled = jnp.tanh(jnp.dot(cls_tok.astype(jnp.bfloat16), wp_ref[...],
                              preferred_element_type=jnp.float32) + bp_ref[...])
    # (H -> 1) classifier as a VPU lane reduction, not a 1-wide MXU matmul
    logit = jnp.sum(pooled * wc_ref[...], axis=-1, keepdims=True) + bc_ref[...]
    # lane-dense output slab (avoid 1-wide masked partial stores)
    o_ref[...] = jnp.broadcast_to(logit[:, :, None], o_ref.shape)


def encoder_forward(emb, mask_bias3, params):
    """emb: (B, S, H) f32, mask_bias3: (B, 1, S) f32 additive bias."""
    B, S, H = emb.shape
    L, I = NUM_LAYERS, INTERMEDIATE
    bt = _pick_bt(B)
    scale = 1.0 / math.sqrt(HEAD_DIM)

    # ----- advisory cost estimate for the XLA scheduler -----------------------
    T = B * S
    mm_flops = 2 * T * HIDDEN * (3 * HIDDEN + HIDDEN + 2 * INTERMEDIATE) * L
    attn_flops = 2 * 2 * B * NUM_HEADS * S * S * HEAD_DIM * L
    head_flops = 2 * B * HIDDEN * HIDDEN + 2 * B * HIDDEN
    trans = L * B * (NUM_HEADS * S * S + S * INTERMEDIATE) + B * HIDDEN
    weight_names = ("emb_ln_g", "emb_ln_b", "wqkv", "bqkv", "wo", "bo",
                    "ln1_g", "ln1_b", "wi", "bi", "wf", "bf", "ln2_g", "ln2_b",
                    "pool_w", "pool_b", "cls_w", "cls_b")
    w_bytes = sum(int(params[k].size) * params[k].dtype.itemsize
                  for k in weight_names)
    cost = pl.CostEstimate(
        flops=int(mm_flops + attn_flops + head_flops),
        transcendentals=int(trans),
        bytes_accessed=int(emb.size * 4 + mask_bias3.size * 4
                           + w_bytes + B * HIDDEN * 4))

    const2 = lambda i: (0, 0)
    const3 = lambda i: (0, 0, 0)

    out = pl.pallas_call(
        functools.partial(_encoder_kernel, num_layers=L, num_heads=NUM_HEADS,
                          scale=scale, eps=LN_EPS),
        out_shape=jax.ShapeDtypeStruct((B, 1, HIDDEN), jnp.float32),
        grid=(B // bt,),
        in_specs=[
            pl.BlockSpec((bt, S, H), lambda i: (i, 0, 0)),        # activations
            pl.BlockSpec((bt, 1, S), lambda i: (i, 0, 0)),        # mask bias
            pl.BlockSpec((1, H), const2),                         # emb LN
            pl.BlockSpec((1, H), const2),
            pl.BlockSpec((L, H, 3 * H), const3),                  # stacked weights
            pl.BlockSpec((L, 1, 3 * H), const3),                  # (VMEM-resident:
            pl.BlockSpec((L, H, H), const3),                      #  constant maps)
            pl.BlockSpec((L, 1, H), const3),
            pl.BlockSpec((L, 1, H), const3),
            pl.BlockSpec((L, 1, H), const3),
            pl.BlockSpec((L, H, I), const3),
            pl.BlockSpec((L, 1, I), const3),
            pl.BlockSpec((L, I, H), const3),
            pl.BlockSpec((L, 1, H), const3),
            pl.BlockSpec((L, 1, H), const3),
            pl.BlockSpec((L, 1, H), const3),
            pl.BlockSpec((H, H), const2),                         # pooler
            pl.BlockSpec((1, H), const2),
            pl.BlockSpec((1, H), const2),                         # classifier
            pl.BlockSpec((1, 1), const2),
        ],
        out_specs=pl.BlockSpec((bt, 1, H), lambda i: (i, 0, 0)),
        compiler_params=pltpu.CompilerParams(
            dimension_semantics=("parallel",)),
        cost_estimate=cost,
    )(emb, mask_bias3,
      params["emb_ln_g"], params["emb_ln_b"],
      params["wqkv"], params["bqkv"], params["wo"], params["bo"],
      params["ln1_g"], params["ln1_b"],
      params["wi"], params["bi"], params["wf"], params["bf"],
      params["ln2_g"], params["ln2_b"],
      params["pool_w"], params["pool_b"], params["cls_w"], params["cls_b"])

    return out[:, 0, :1]                                          # (B, 1)


# --------------------------- parameter construction ---------------------------
def _dense_init(key, fan_in, fan_out):
    kw, kb = jax.random.split(key)
    w = (0.02 * jax.random.normal(kw, (fan_in, fan_out), jnp.float32)
         ).astype(jnp.bfloat16)                     # bf16 weights for the MXU
    b = 0.02 * jax.random.normal(kb, (1, fan_out), jnp.float32)
    return w, b


def init_params(key):
    # TODO(synk): real module loads pretrained 'roberta-base'; synthetic init here.
    keys = jax.random.split(key, 8)
    p = {}
    p["word_emb"] = 0.02 * jax.random.normal(keys[0], (VOCAB, HIDDEN), jnp.float32)
    p["pos_emb"] = 0.02 * jax.random.normal(keys[1], (MAX_POS, HIDDEN), jnp.float32)
    p["tok_emb"] = 0.02 * jax.random.normal(keys[2], (1, HIDDEN), jnp.float32)
    p["emb_ln_g"] = jnp.ones((1, HIDDEN), jnp.float32)
    p["emb_ln_b"] = jnp.zeros((1, HIDDEN), jnp.float32)

    wqkv, bqkv, wo, bo, wi, bi, wf, bf = [], [], [], [], [], [], [], []
    lkey = keys[3]
    for _ in range(NUM_LAYERS):
        lkey, k0, k1, k2, k3 = jax.random.split(lkey, 5)
        w, b = _dense_init(k0, HIDDEN, 3 * HIDDEN); wqkv.append(w); bqkv.append(b)
        w, b = _dense_init(k1, HIDDEN, HIDDEN);     wo.append(w);   bo.append(b)
        w, b = _dense_init(k2, HIDDEN, INTERMEDIATE); wi.append(w); bi.append(b)
        w, b = _dense_init(k3, INTERMEDIATE, HIDDEN); wf.append(w); bf.append(b)

    # layer weights stacked with a leading layer axis -> one resident VMEM block each
    p["wqkv"] = jnp.stack(wqkv); p["bqkv"] = jnp.stack(bqkv)
    p["wo"] = jnp.stack(wo);     p["bo"] = jnp.stack(bo)
    p["wi"] = jnp.stack(wi);     p["bi"] = jnp.stack(bi)
    p["wf"] = jnp.stack(wf);     p["bf"] = jnp.stack(bf)
    p["ln1_g"] = jnp.ones((NUM_LAYERS, 1, HIDDEN), jnp.float32)
    p["ln1_b"] = jnp.zeros((NUM_LAYERS, 1, HIDDEN), jnp.float32)
    p["ln2_g"] = jnp.ones((NUM_LAYERS, 1, HIDDEN), jnp.float32)
    p["ln2_b"] = jnp.zeros((NUM_LAYERS, 1, HIDDEN), jnp.float32)

    p["pool_w"], p["pool_b"] = _dense_init(keys[4], HIDDEN, HIDDEN)
    # classifier kept f32 as a (1, HIDDEN) row for the in-kernel lane reduction
    p["cls_w"] = 0.02 * jax.random.normal(keys[5], (1, HIDDEN), jnp.float32)
    p["cls_b"] = 0.02 * jax.random.normal(keys[6], (1, 1), jnp.float32)
    return p


# --------------------------------- forward ------------------------------------
def roberta_ppd_forward(params, input_ids, attn_masks):
    B, S = input_ids.shape

    # RoBERTa position ids: cumsum over non-pad tokens, offset by padding_idx.
    not_pad = (input_ids != PAD_ID).astype(jnp.int32)
    pos_ids = jnp.cumsum(not_pad, axis=1) * not_pad + PAD_ID

    # TODO(synk): embedding gather stays in XLA glue (data-dependent gather).
    emb = (params["word_emb"][input_ids]
           + params["pos_emb"][pos_ids]
           + params["tok_emb"].reshape(1, 1, HIDDEN)).astype(jnp.float32)

    # additive attention-mask bias, f32, shaped (B, 1, S) for clean block tiling
    mask_bias = ((1.0 - attn_masks.astype(jnp.float32)) * NEG_INF)[:, None, :]

    # single fused pallas_call: emb LN -> all layers -> pooler -> classifier
    return encoder_forward(emb, mask_bias, params)                 # (B, 1)


# ----------------------------------- main --------------------------------------
if __name__ == "__main__":
    B, S = 2, 8
    key = jax.random.PRNGKey(0)
    k_ids, k_par = jax.random.split(key)

    input_ids = jax.random.randint(k_ids, (B, S), 2, VOCAB, dtype=jnp.int32)
    # mask out the last two positions of the second sequence (pad tokens)
    input_ids = input_ids.at[1, -2:].set(PAD_ID)
    attn_masks = jnp.ones((B, S), jnp.int32).at[1, -2:].set(0)

    params = init_params(k_par)

    fwd = jax.jit(roberta_ppd_forward)
    out = fwd(params, input_ids, attn_masks)
    out = jax.block_until_ready(out)

    assert out.shape == (B, 1) and out.dtype == jnp.float32
    print("KERNEL_OK")
</pallas_src>

<mosaic_0001>
module attributes {stable_mosaic.version = 11 : i64} {
  func.func @_encoder_kernel(%arg0: i32, %arg1: memref<1x8x128xf32, #tpu.memory_space<vmem>>, %arg2: memref<1x1x8xf32, #tpu.memory_space<vmem>>, %arg3: memref<1x128xf32, #tpu.memory_space<vmem>>, %arg4: memref<1x128xf32, #tpu.memory_space<vmem>>, %arg5: memref<2x128x384xbf16, #tpu.memory_space<vmem>>, %arg6: memref<2x1x384xf32, #tpu.memory_space<vmem>>, %arg7: memref<2x128x128xbf16, #tpu.memory_space<vmem>>, %arg8: memref<2x1x128xf32, #tpu.memory_space<vmem>>, %arg9: memref<2x1x128xf32, #tpu.memory_space<vmem>>, %arg10: memref<2x1x128xf32, #tpu.memory_space<vmem>>, %arg11: memref<2x128x256xbf16, #tpu.memory_space<vmem>>, %arg12: memref<2x1x256xf32, #tpu.memory_space<vmem>>, %arg13: memref<2x256x128xbf16, #tpu.memory_space<vmem>>, %arg14: memref<2x1x128xf32, #tpu.memory_space<vmem>>, %arg15: memref<2x1x128xf32, #tpu.memory_space<vmem>>, %arg16: memref<2x1x128xf32, #tpu.memory_space<vmem>>, %arg17: memref<128x128xbf16, #tpu.memory_space<vmem>>, %arg18: memref<1x128xf32, #tpu.memory_space<vmem>>, %arg19: memref<1x128xf32, #tpu.memory_space<vmem>>, %arg20: memref<1x1xf32, #tpu.memory_space<vmem>>, %arg21: memref<1x1x128xf32, #tpu.memory_space<vmem>>) attributes {dimension_semantics = [#tpu.dimension_semantics<parallel>], iteration_bounds = array<i64: 2>, scalar_prefetch = 0 : i64, scratch_operands = 0 : i64, tpu.core_type = #tpu.core_type<tc>, window_params = [{transform_indices = @transform_0, window_bounds = array<i64: 1, 8, 128>}, {transform_indices = @transform_1, window_bounds = array<i64: 1, 1, 8>}, {pipeline_mode = #tpu.pipeline_mode<synchronous>, transform_indices = @transform_2, window_bounds = array<i64: 1, 128>}, {pipeline_mode = #tpu.pipeline_mode<synchronous>, transform_indices = @transform_3, window_bounds = array<i64: 1, 128>}, {pipeline_mode = #tpu.pipeline_mode<synchronous>, transform_indices = @transform_4, window_bounds = array<i64: 2, 128, 384>}, {pipeline_mode = #tpu.pipeline_mode<synchronous>, transform_indices = @transform_5, window_bounds = array<i64: 2, 1, 384>}, {pipeline_mode = #tpu.pipeline_mode<synchronous>, transform_indices = @transform_6, window_bounds = array<i64: 2, 128, 128>}, {pipeline_mode = #tpu.pipeline_mode<synchronous>, transform_indices = @transform_7, window_bounds = array<i64: 2, 1, 128>}, {pipeline_mode = #tpu.pipeline_mode<synchronous>, transform_indices = @transform_8, window_bounds = array<i64: 2, 1, 128>}, {pipeline_mode = #tpu.pipeline_mode<synchronous>, transform_indices = @transform_9, window_bounds = array<i64: 2, 1, 128>}, {pipeline_mode = #tpu.pipeline_mode<synchronous>, transform_indices = @transform_10, window_bounds = array<i64: 2, 128, 256>}, {pipeline_mode = #tpu.pipeline_mode<synchronous>, transform_indices = @transform_11, window_bounds = array<i64: 2, 1, 256>}, {pipeline_mode = #tpu.pipeline_mode<synchronous>, transform_indices = @transform_12, window_bounds = array<i64: 2, 256, 128>}, {pipeline_mode = #tpu.pipeline_mode<synchronous>, transform_indices = @transform_13, window_bounds = array<i64: 2, 1, 128>}, {pipeline_mode = #tpu.pipeline_mode<synchronous>, transform_indices = @transform_14, window_bounds = array<i64: 2, 1, 128>}, {pipeline_mode = #tpu.pipeline_mode<synchronous>, transform_indices = @transform_15, window_bounds = array<i64: 2, 1, 128>}, {pipeline_mode = #tpu.pipeline_mode<synchronous>, transform_indices = @transform_16, window_bounds = array<i64: 128, 128>}, {pipeline_mode = #tpu.pipeline_mode<synchronous>, transform_indices = @transform_17, window_bounds = array<i64: 1, 128>}, {pipeline_mode = #tpu.pipeline_mode<synchronous>, transform_indices = @transform_18, window_bounds = array<i64: 1, 128>}, {pipeline_mode = #tpu.pipeline_mode<synchronous>, transform_indices = @transform_19, window_bounds = array<i64: 1, 1>}, {transform_indices = @transform_20, window_bounds = array<i64: 1, 1, 128>}]} {
    %c0 = arith.constant 0 : index
    %c0_0 = arith.constant 0 : index
    %c0_1 = arith.constant 0 : index
    %0 = vector.load %arg1[%c0, %c0_0, %c0_1] : memref<1x8x128xf32, #tpu.memory_space<vmem>>, vector<1x8x128xf32>
    %1 = vector.shape_cast %0 : vector<1x8x128xf32> to vector<8x128xf32>
    %c0_2 = arith.constant 0 : index
    %c0_3 = arith.constant 0 : index
    %2 = vector.load %arg3[%c0_2, %c0_3] : memref<1x128xf32, #tpu.memory_space<vmem>>, vector<1x128xf32>
    %c0_4 = arith.constant 0 : index
    %c0_5 = arith.constant 0 : index
    %3 = vector.load %arg4[%c0_4, %c0_5] : memref<1x128xf32, #tpu.memory_space<vmem>>, vector<1x128xf32>
    %cst = arith.constant dense<0.000000e+00> : vector<8xf32>
    %4 = vector.multi_reduction <add>, %1, %cst [1] : vector<8x128xf32> to vector<8xf32>
    %5 = vector.shape_cast %4 : vector<8xf32> to vector<8x1xf32>
    %cst_6 = arith.constant 1.280000e+02 : f32
    %6 = vector.broadcast %cst_6 : f32 to vector<8x1xf32>
    %7 = arith.divf %5, %6 : vector<8x1xf32>
    %8 = vector.broadcast %7 : vector<8x1xf32> to vector<8x128xf32>
    %9 = arith.subf %1, %8 : vector<8x128xf32>
    %10 = arith.mulf %9, %9 : vector<8x128xf32>
    %cst_7 = arith.constant dense<0.000000e+00> : vector<8xf32>
    %11 = vector.multi_reduction <add>, %10, %cst_7 [1] : vector<8x128xf32> to vector<8xf32>
    %12 = vector.shape_cast %11 : vector<8xf32> to vector<8x1xf32>
    %cst_8 = arith.constant 1.280000e+02 : f32
    %13 = vector.broadcast %cst_8 : f32 to vector<8x1xf32>
    %14 = arith.divf %12, %13 : vector<8x1xf32>
    %cst_9 = arith.constant 9.99999974E-6 : f32
    %15 = vector.broadcast %cst_9 : f32 to vector<8x1xf32>
    %16 = arith.addf %14, %15 : vector<8x1xf32>
    %17 = math.rsqrt %16 : vector<8x1xf32>
    %18 = vector.broadcast %17 : vector<8x1xf32> to vector<8x128xf32>
    %19 = arith.mulf %9, %18 : vector<8x128xf32>
    %20 = vector.broadcast %2 : vector<1x128xf32> to vector<8x128xf32>
    %21 = arith.mulf %19, %20 : vector<8x128xf32>
    %22 = vector.broadcast %3 : vector<1x128xf32> to vector<8x128xf32>
    %23 = arith.addf %21, %22 : vector<8x128xf32>
    %c0_10 = arith.constant 0 : index
    %c0_11 = arith.constant 0 : index
    %c0_12 = arith.constant 0 : index
    %24 = vector.load %arg2[%c0_10, %c0_11, %c0_12] : memref<1x1x8xf32, #tpu.memory_space<vmem>>, vector<1x1x8xf32>
    %25 = vector.shape_cast %24 : vector<1x1x8xf32> to vector<1x1x1x8xf32>
    %26 = vector.shape_cast %25 : vector<1x1x1x8xf32> to vector<1x1x1x8xf32>
    %27 = vector.broadcast %26 : vector<1x1x1x8xf32> to vector<1x4x1x8xf32>
    %28 = vector.shape_cast %27 : vector<1x4x1x8xf32> to vector<4x1x8xf32>
    %29 = arith.truncf %23 : vector<8x128xf32> to vector<8x128xbf16>
    %c0_13 = arith.constant 0 : index
    %c0_14 = arith.constant 0 : index
    %c0_15 = arith.constant 0 : index
    %30 = vector.load %arg5[%c0_13, %c0_14, %c0_15] : memref<2x128x384xbf16, #tpu.memory_space<vmem>>, vector<1x128x384xbf16>
    %31 = vector.shape_cast %30 : vector<1x128x384xbf16> to vector<128x384xbf16>
    %cst_16 = arith.constant dense<0.000000e+00> : vector<8x384xf32>
    %32 = tpu.matmul %29, %31, %cst_16 {dimension_numbers = #tpu.dot_dimension_numbers<[1], [0], [0], [1], [0, 0, 1, 1], [], []>} : vector<8x128xbf16>, vector<128x384xbf16>, vector<8x384xf32> -> vector<8x384xf32>
    %c0_17 = arith.constant 0 : index
    %c0_18 = arith.constant 0 : index
    %c0_19 = arith.constant 0 : index
    %33 = vector.load %arg6[%c0_17, %c0_18, %c0_19] : memref<2x1x384xf32, #tpu.memory_space<vmem>>, vector<1x1x384xf32>
    %34 = vector.shape_cast %33 : vector<1x1x384xf32> to vector<1x384xf32>
    %35 = vector.broadcast %34 : vector<1x384xf32> to vector<8x384xf32>
    %36 = arith.addf %32, %35 : vector<8x384xf32>
    %37 = vector.extract_strided_slice %36 {offsets = [0, 0], sizes = [8, 128], strides = [1, 1]} : vector<8x384xf32> to vector<8x128xf32>
    %38 = vector.shape_cast %37 : vector<8x128xf32> to vector<1x8x4x32xf32>
    %39 = vector.extract_strided_slice %36 {offsets = [0, 128], sizes = [8, 128], strides = [1, 1]} : vector<8x384xf32> to vector<8x128xf32>
    %40 = vector.shape_cast %39 : vector<8x128xf32> to vector<1x8x4x32xf32>
    %41 = vector.extract_strided_slice %36 {offsets = [0, 256], sizes = [8, 128], strides = [1, 1]} : vector<8x384xf32> to vector<8x128xf32>
    %42 = vector.shape_cast %41 : vector<8x128xf32> to vector<1x8x4x32xf32>
    %43 = tpu.transpose %38, [0, 2, 1, 3] : vector<1x8x4x32xf32> -> vector<1x4x8x32xf32>
    %44 = vector.shape_cast %43 : vector<1x4x8x32xf32> to vector<4x8x32xf32>
    %45 = tpu.transpose %40, [0, 2, 1, 3] : vector<1x8x4x32xf32> -> vector<1x4x8x32xf32>
    %46 = vector.shape_cast %45 : vector<1x4x8x32xf32> to vector<4x8x32xf32>
    %47 = tpu.transpose %42, [0, 2, 1, 3] : vector<1x8x4x32xf32> -> vector<1x4x8x32xf32>
    %48 = vector.shape_cast %47 : vector<1x4x8x32xf32> to vector<4x8x32xf32>
    %49 = arith.truncf %44 : vector<4x8x32xf32> to vector<4x8x32xbf16>
    %50 = arith.truncf %46 : vector<4x8x32xf32> to vector<4x8x32xbf16>
    "tpu.trace_start"() <{level = 10 : i32, message = "bqd,bkd->bqk"}> : () -> ()
    %cst_20 = arith.constant dense<0.000000e+00> : vector<4x8x8xf32>
    %51 = tpu.matmul %49, %50, %cst_20 {dimension_numbers = #tpu.dot_dimension_numbers<[2], [2], [1], [1], [0, 0, 0, 1, 1, 1], [0], [0]>} : vector<4x8x32xbf16>, vector<4x8x32xbf16>, vector<4x8x8xf32> -> vector<4x8x8xf32>
    "tpu.trace_stop"() : () -> ()
    %cst_21 = arith.constant 0.176776692 : f32
    %52 = vector.broadcast %cst_21 : f32 to vector<4x8x8xf32>
    %53 = arith.mulf %51, %52 : vector<4x8x8xf32>
    %54 = vector.broadcast %28 : vector<4x1x8xf32> to vector<4x8x8xf32>
    %55 = arith.addf %53, %54 : vector<4x8x8xf32>
    %cst_22 = arith.constant dense<0xFF800000> : vector<4x8xf32>
    %56 = vector.multi_reduction <maximumf>, %55, %cst_22 [2] : vector<4x8x8xf32> to vector<4x8xf32>
    %57 = vector.shape_cast %56 : vector<4x8xf32> to vector<4x8x1xf32>
    %58 = vector.broadcast %57 : vector<4x8x1xf32> to vector<4x8x8xf32>
    %59 = arith.subf %55, %58 : vector<4x8x8xf32>
    %60 = math.exp %59 : vector<4x8x8xf32>
    %cst_23 = arith.constant dense<0.000000e+00> : vector<4x8xf32>
    %61 = vector.multi_reduction <add>, %60, %cst_23 [2] : vector<4x8x8xf32> to vector<4x8xf32>
    %62 = vector.shape_cast %61 : vector<4x8xf32> to vector<4x8x1xf32>
    %63 = tpu.reciprocal %62 {approx = true} : vector<4x8x1xf32> -> vector<4x8x1xf32>
    %64 = vector.broadcast %63 : vector<4x8x1xf32> to vector<4x8x8xf32>
    %65 = arith.mulf %60, %64 : vector<4x8x8xf32>
    %66 = arith.truncf %65 : vector<4x8x8xf32> to vector<4x8x8xbf16>
    %67 = arith.truncf %48 : vector<4x8x32xf32> to vector<4x8x32xbf16>
    "tpu.trace_start"() <{level = 10 : i32, message = "bqk,bkd->bqd"}> : () -> ()
    %cst_24 = arith.constant dense<0.000000e+00> : vector<4x8x32xf32>
    %68 = tpu.matmul %66, %67, %cst_24 {dimension_numbers = #tpu.dot_dimension_numbers<[2], [1], [1], [2], [0, 0, 0, 1, 1, 2], [0], [0]>} : vector<4x8x8xbf16>, vector<4x8x32xbf16>, vector<4x8x32xf32> -> vector<4x8x32xf32>
    "tpu.trace_stop"() : () -> ()
    %69 = vector.shape_cast %68 : vector<4x8x32xf32> to vector<1x4x8x32xf32>
    %70 = tpu.transpose %69, [0, 2, 1, 3] : vector<1x4x8x32xf32> -> vector<1x8x4x32xf32>
    %71 = vector.shape_cast %70 : vector<1x8x4x32xf32> to vector<8x128xf32>
    %72 = arith.truncf %71 : vector<8x128xf32> to vector<8x128xbf16>
    %c0_25 = arith.constant 0 : index
    %c0_26 = arith.constant 0 : index
    %c0_27 = arith.constant 0 : index
    %73 = vector.load %arg7[%c0_25, %c0_26, %c0_27] : memref<2x128x128xbf16, #tpu.memory_space<vmem>>, vector<1x128x128xbf16>
    %74 = vector.shape_cast %73 : vector<1x128x128xbf16> to vector<128x128xbf16>
    %cst_28 = arith.constant dense<0.000000e+00> : vector<8x128xf32>
    %75 = tpu.matmul %72, %74, %cst_28 {dimension_numbers = #tpu.dot_dimension_numbers<[1], [0], [0], [1], [0, 0, 1, 1], [], []>} : vector<8x128xbf16>, vector<128x128xbf16>, vector<8x128xf32> -> vector<8x128xf32>
    %c0_29 = arith.constant 0 : index
    %c0_30 = arith.constant 0 : index
    %c0_31 = arith.constant 0 : index
    %76 = vector.load %arg8[%c0_29, %c0_30, %c0_31] : memref<2x1x128xf32, #tpu.memory_space<vmem>>, vector<1x1x128xf32>
    %77 = vector.shape_cast %76 : vector<1x1x128xf32> to vector<1x128xf32>
    %78 = vector.broadcast %77 : vector<1x128xf32> to vector<8x128xf32>
    %79 = arith.addf %75, %78 : vector<8x128xf32>
    %80 = arith.addf %79, %23 : vector<8x128xf32>
    %c0_32 = arith.constant 0 : index
    %c0_33 = arith.constant 0 : index
    %c0_34 = arith.constant 0 : index
    %81 = vector.load %arg9[%c0_32, %c0_33, %c0_34] : memref<2x1x128xf32, #tpu.memory_space<vmem>>, vector<1x1x128xf32>
    %82 = vector.shape_cast %81 : vector<1x1x128xf32> to vector<1x128xf32>
    %c0_35 = arith.constant 0 : index
    %c0_36 = arith.constant 0 : index
    %c0_37 = arith.constant 0 : index
    %83 = vector.load %arg10[%c0_35, %c0_36, %c0_37] : memref<2x1x128xf32, #tpu.memory_space<vmem>>, vector<1x1x128xf32>
    %84 = vector.shape_cast %83 : vector<1x1x128xf32> to vector<1x128xf32>
    %cst_38 = arith.constant dense<0.000000e+00> : vector<8xf32>
    %85 = vector.multi_reduction <add>, %80, %cst_38 [1] : vector<8x128xf32> to vector<8xf32>
    %86 = vector.shape_cast %85 : vector<8xf32> to vector<8x1xf32>
    %cst_39 = arith.constant 1.280000e+02 : f32
    %87 = vector.broadcast %cst_39 : f32 to vector<8x1xf32>
    %88 = arith.divf %86, %87 : vector<8x1xf32>
    %89 = vector.broadcast %88 : vector<8x1xf32> to vector<8x128xf32>
    %90 = arith.subf %80, %89 : vector<8x128xf32>
    %91 = arith.mulf %90, %90 : vector<8x128xf32>
    %cst_40 = arith.constant dense<0.000000e+00> : vector<8xf32>
    %92 = vector.multi_reduction <add>, %91, %cst_40 [1] : vector<8x128xf32> to vector<8xf32>
    %93 = vector.shape_cast %92 : vector<8xf32> to vector<8x1xf32>
    %cst_41 = arith.constant 1.280000e+02 : f32
    %94 = vector.broadcast %cst_41 : f32 to vector<8x1xf32>
    %95 = arith.divf %93, %94 : vector<8x1xf32>
    %cst_42 = arith.constant 9.99999974E-6 : f32
    %96 = vector.broadcast %cst_42 : f32 to vector<8x1xf32>
    %97 = arith.addf %95, %96 : vector<8x1xf32>
    %98 = math.rsqrt %97 : vector<8x1xf32>
    %99 = vector.broadcast %98 : vector<8x1xf32> to vector<8x128xf32>
    %100 = arith.mulf %90, %99 : vector<8x128xf32>
    %101 = vector.broadcast %82 : vector<1x128xf32> to vector<8x128xf32>
    %102 = arith.mulf %100, %101 : vector<8x128xf32>
    %103 = vector.broadcast %84 : vector<1x128xf32> to vector<8x128xf32>
    %104 = arith.addf %102, %103 : vector<8x128xf32>
    %105 = arith.truncf %104 : vector<8x128xf32> to vector<8x128xbf16>
    %c0_43 = arith.constant 0 : index
    %c0_44 = arith.constant 0 : index
    %c0_45 = arith.constant 0 : index
    %106 = vector.load %arg11[%c0_43, %c0_44, %c0_45] : memref<2x128x256xbf16, #tpu.memory_space<vmem>>, vector<1x128x256xbf16>
    %107 = vector.shape_cast %106 : vector<1x128x256xbf16> to vector<128x256xbf16>
    %cst_46 = arith.constant dense<0.000000e+00> : vector<8x256xf32>
    %108 = tpu.matmul %105, %107, %cst_46 {dimension_numbers = #tpu.dot_dimension_numbers<[1], [0], [0], [1], [0, 0, 1, 1], [], []>} : vector<8x128xbf16>, vector<128x256xbf16>, vector<8x256xf32> -> vector<8x256xf32>
    %c0_47 = arith.constant 0 : index
    %c0_48 = arith.constant 0 : index
    %c0_49 = arith.constant 0 : index
    %109 = vector.load %arg12[%c0_47, %c0_48, %c0_49] : memref<2x1x256xf32, #tpu.memory_space<vmem>>, vector<1x1x256xf32>
    %110 = vector.shape_cast %109 : vector<1x1x256xf32> to vector<1x256xf32>
    %111 = vector.broadcast %110 : vector<1x256xf32> to vector<8x256xf32>
    %112 = arith.addf %108, %111 : vector<8x256xf32>
    %cst_50 = arith.constant 5.000000e-01 : f32
    %113 = vector.broadcast %cst_50 : f32 to vector<8x256xf32>
    %114 = arith.mulf %113, %112 : vector<8x256xf32>
    %cst_51 = arith.constant 4.471500e-02 : f32
    %115 = vector.broadcast %cst_51 : f32 to vector<8x256xf32>
    %116 = arith.mulf %115, %112 : vector<8x256xf32>
    %117 = arith.mulf %116, %112 : vector<8x256xf32>
    %118 = arith.mulf %117, %112 : vector<8x256xf32>
    %119 = arith.addf %112, %118 : vector<8x256xf32>
    %cst_52 = arith.constant 0.797884583 : f32
    %120 = vector.broadcast %cst_52 : f32 to vector<8x256xf32>
    %121 = arith.mulf %120, %119 : vector<8x256xf32>
    %122 = math.tanh %121 : vector<8x256xf32>
    %cst_53 = arith.constant 1.000000e+00 : f32
    %123 = vector.broadcast %cst_53 : f32 to vector<8x256xf32>
    %124 = arith.addf %123, %122 : vector<8x256xf32>
    %125 = arith.mulf %114, %124 : vector<8x256xf32>
    %126 = arith.truncf %125 : vector<8x256xf32> to vector<8x256xbf16>
    %c0_54 = arith.constant 0 : index
    %c0_55 = arith.constant 0 : index
    %c0_56 = arith.constant 0 : index
    %127 = vector.load %arg13[%c0_54, %c0_55, %c0_56] : memref<2x256x128xbf16, #tpu.memory_space<vmem>>, vector<1x256x128xbf16>
    %128 = vector.shape_cast %127 : vector<1x256x128xbf16> to vector<256x128xbf16>
    %cst_57 = arith.constant dense<0.000000e+00> : vector<8x128xf32>
    %129 = tpu.matmul %126, %128, %cst_57 {dimension_numbers = #tpu.dot_dimension_numbers<[1], [0], [0], [1], [0, 0, 1, 1], [], []>} : vector<8x256xbf16>, vector<256x128xbf16>, vector<8x128xf32> -> vector<8x128xf32>
    %c0_58 = arith.constant 0 : index
    %c0_59 = arith.constant 0 : index
    %c0_60 = arith.constant 0 : index
    %130 = vector.load %arg14[%c0_58, %c0_59, %c0_60] : memref<2x1x128xf32, #tpu.memory_space<vmem>>, vector<1x1x128xf32>
    %131 = vector.shape_cast %130 : vector<1x1x128xf32> to vector<1x128xf32>
    %132 = vector.broadcast %131 : vector<1x128xf32> to vector<8x128xf32>
    %133 = arith.addf %129, %132 : vector<8x128xf32>
    %134 = arith.addf %133, %104 : vector<8x128xf32>
    %c0_61 = arith.constant 0 : index
    %c0_62 = arith.constant 0 : index
    %c0_63 = arith.constant 0 : index
    %135 = vector.load %arg15[%c0_61, %c0_62, %c0_63] : memref<2x1x128xf32, #tpu.memory_space<vmem>>, vector<1x1x128xf32>
    %136 = vector.shape_cast %135 : vector<1x1x128xf32> to vector<1x128xf32>
    %c0_64 = arith.constant 0 : index
    %c0_65 = arith.constant 0 : index
    %c0_66 = arith.constant 0 : index
    %137 = vector.load %arg16[%c0_64, %c0_65, %c0_66] : memref<2x1x128xf32, #tpu.memory_space<vmem>>, vector<1x1x128xf32>
    %138 = vector.shape_cast %137 : vector<1x1x128xf32> to vector<1x128xf32>
    %cst_67 = arith.constant dense<0.000000e+00> : vector<8xf32>
    %139 = vector.multi_reduction <add>, %134, %cst_67 [1] : vector<8x128xf32> to vector<8xf32>
    %140 = vector.shape_cast %139 : vector<8xf32> to vector<8x1xf32>
    %cst_68 = arith.constant 1.280000e+02 : f32
    %141 = vector.broadcast %cst_68 : f32 to vector<8x1xf32>
    %142 = arith.divf %140, %141 : vector<8x1xf32>
    %143 = vector.broadcast %142 : vector<8x1xf32> to vector<8x128xf32>
    %144 = arith.subf %134, %143 : vector<8x128xf32>
    %145 = arith.mulf %144, %144 : vector<8x128xf32>
    %cst_69 = arith.constant dense<0.000000e+00> : vector<8xf32>
    %146 = vector.multi_reduction <add>, %145, %cst_69 [1] : vector<8x128xf32> to vector<8xf32>
    %147 = vector.shape_cast %146 : vector<8xf32> to vector<8x1xf32>
    %cst_70 = arith.constant 1.280000e+02 : f32
    %148 = vector.broadcast %cst_70 : f32 to vector<8x1xf32>
    %149 = arith.divf %147, %148 : vector<8x1xf32>
    %cst_71 = arith.constant 9.99999974E-6 : f32
    %150 = vector.broadcast %cst_71 : f32 to vector<8x1xf32>
    %151 = arith.addf %149, %150 : vector<8x1xf32>
    %152 = math.rsqrt %151 : vector<8x1xf32>
    %153 = vector.broadcast %152 : vector<8x1xf32> to vector<8x128xf32>
    %154 = arith.mulf %144, %153 : vector<8x128xf32>
    %155 = vector.broadcast %136 : vector<1x128xf32> to vector<8x128xf32>
    %156 = arith.mulf %154, %155 : vector<8x128xf32>
    %157 = vector.broadcast %138 : vector<1x128xf32> to vector<8x128xf32>
    %158 = arith.addf %156, %157 : vector<8x128xf32>
    %159 = arith.truncf %158 : vector<8x128xf32> to vector<8x128xbf16>
    %c1 = arith.constant 1 : index
    %c0_72 = arith.constant 0 : index
    %c0_73 = arith.constant 0 : index
    %160 = vector.load %arg5[%c1, %c0_72, %c0_73] : memref<2x128x384xbf16, #tpu.memory_space<vmem>>, vector<1x128x384xbf16>
    %161 = vector.shape_cast %160 : vector<1x128x384xbf16> to vector<128x384xbf16>
    %cst_74 = arith.constant dense<0.000000e+00> : vector<8x384xf32>
    %162 = tpu.matmul %159, %161, %cst_74 {dimension_numbers = #tpu.dot_dimension_numbers<[1], [0], [0], [1], [0, 0, 1, 1], [], []>} : vector<8x128xbf16>, vector<128x384xbf16>, vector<8x384xf32> -> vector<8x384xf32>
    %c1_75 = arith.constant 1 : index
    %c0_76 = arith.constant 0 : index
    %c0_77 = arith.constant 0 : index
    %163 = vector.load %arg6[%c1_75, %c0_76, %c0_77] : memref<2x1x384xf32, #tpu.memory_space<vmem>>, vector<1x1x384xf32>
    %164 = vector.shape_cast %163 : vector<1x1x384xf32> to vector<1x384xf32>
    %165 = vector.broadcast %164 : vector<1x384xf32> to vector<8x384xf32>
    %166 = arith.addf %162, %165 : vector<8x384xf32>
    %167 = vector.extract_strided_slice %166 {offsets = [0, 0], sizes = [8, 128], strides = [1, 1]} : vector<8x384xf32> to vector<8x128xf32>
    %168 = vector.shape_cast %167 : vector<8x128xf32> to vector<1x8x4x32xf32>
    %169 = vector.extract_strided_slice %166 {offsets = [0, 128], sizes = [8, 128], strides = [1, 1]} : vector<8x384xf32> to vector<8x128xf32>
    %170 = vector.shape_cast %169 : vector<8x128xf32> to vector<1x8x4x32xf32>
    %171 = vector.extract_strided_slice %166 {offsets = [0, 256], sizes = [8, 128], strides = [1, 1]} : vector<8x384xf32> to vector<8x128xf32>
    %172 = vector.shape_cast %171 : vector<8x128xf32> to vector<1x8x4x32xf32>
    %173 = tpu.transpose %168, [0, 2, 1, 3] : vector<1x8x4x32xf32> -> vector<1x4x8x32xf32>
    %174 = vector.shape_cast %173 : vector<1x4x8x32xf32> to vector<4x8x32xf32>
    %175 = tpu.transpose %170, [0, 2, 1, 3] : vector<1x8x4x32xf32> -> vector<1x4x8x32xf32>
    %176 = vector.shape_cast %175 : vector<1x4x8x32xf32> to vector<4x8x32xf32>
    %177 = tpu.transpose %172, [0, 2, 1, 3] : vector<1x8x4x32xf32> -> vector<1x4x8x32xf32>
    %178 = vector.shape_cast %177 : vector<1x4x8x32xf32> to vector<4x8x32xf32>
    %179 = arith.truncf %174 : vector<4x8x32xf32> to vector<4x8x32xbf16>
    %180 = arith.truncf %176 : vector<4x8x32xf32> to vector<4x8x32xbf16>
    "tpu.trace_start"() <{level = 10 : i32, message = "bqd,bkd->bqk"}> : () -> ()
    %cst_78 = arith.constant dense<0.000000e+00> : vector<4x8x8xf32>
    %181 = tpu.matmul %179, %180, %cst_78 {dimension_numbers = #tpu.dot_dimension_numbers<[2], [2], [1], [1], [0, 0, 0, 1, 1, 1], [0], [0]>} : vector<4x8x32xbf16>, vector<4x8x32xbf16>, vector<4x8x8xf32> -> vector<4x8x8xf32>
    "tpu.trace_stop"() : () -> ()
    %cst_79 = arith.constant 0.176776692 : f32
    %182 = vector.broadcast %cst_79 : f32 to vector<4x8x8xf32>
    %183 = arith.mulf %181, %182 : vector<4x8x8xf32>
    %184 = vector.broadcast %28 : vector<4x1x8xf32> to vector<4x8x8xf32>
    %185 = arith.addf %183, %184 : vector<4x8x8xf32>
    %cst_80 = arith.constant dense<0xFF800000> : vector<4x8xf32>
    %186 = vector.multi_reduction <maximumf>, %185, %cst_80 [2] : vector<4x8x8xf32> to vector<4x8xf32>
    %187 = vector.shape_cast %186 : vector<4x8xf32> to vector<4x8x1xf32>
    %188 = vector.broadcast %187 : vector<4x8x1xf32> to vector<4x8x8xf32>
    %189 = arith.subf %185, %188 : vector<4x8x8xf32>
    %190 = math.exp %189 : vector<4x8x8xf32>
    %cst_81 = arith.constant dense<0.000000e+00> : vector<4x8xf32>
    %191 = vector.multi_reduction <add>, %190, %cst_81 [2] : vector<4x8x8xf32> to vector<4x8xf32>
    %192 = vector.shape_cast %191 : vector<4x8xf32> to vector<4x8x1xf32>
    %193 = tpu.reciprocal %192 {approx = true} : vector<4x8x1xf32> -> vector<4x8x1xf32>
    %194 = vector.broadcast %193 : vector<4x8x1xf32> to vector<4x8x8xf32>
    %195 = arith.mulf %190, %194 : vector<4x8x8xf32>
    %196 = arith.truncf %195 : vector<4x8x8xf32> to vector<4x8x8xbf16>
    %197 = arith.truncf %178 : vector<4x8x32xf32> to vector<4x8x32xbf16>
    "tpu.trace_start"() <{level = 10 : i32, message = "bqk,bkd->bqd"}> : () -> ()
    %cst_82 = arith.constant dense<0.000000e+00> : vector<4x8x32xf32>
    %198 = tpu.matmul %196, %197, %cst_82 {dimension_numbers = #tpu.dot_dimension_numbers<[2], [1], [1], [2], [0, 0, 0, 1, 1, 2], [0], [0]>} : vector<4x8x8xbf16>, vector<4x8x32xbf16>, vector<4x8x32xf32> -> vector<4x8x32xf32>
    "tpu.trace_stop"() : () -> ()
    %199 = vector.shape_cast %198 : vector<4x8x32xf32> to vector<1x4x8x32xf32>
    %200 = tpu.transpose %199, [0, 2, 1, 3] : vector<1x4x8x32xf32> -> vector<1x8x4x32xf32>
    %201 = vector.shape_cast %200 : vector<1x8x4x32xf32> to vector<8x128xf32>
    %202 = arith.truncf %201 : vector<8x128xf32> to vector<8x128xbf16>
    %c1_83 = arith.constant 1 : index
    %c0_84 = arith.constant 0 : index
    %c0_85 = arith.constant 0 : index
    %203 = vector.load %arg7[%c1_83, %c0_84, %c0_85] : memref<2x128x128xbf16, #tpu.memory_space<vmem>>, vector<1x128x128xbf16>
    %204 = vector.shape_cast %203 : vector<1x128x128xbf16> to vector<128x128xbf16>
    %cst_86 = arith.constant dense<0.000000e+00> : vector<8x128xf32>
    %205 = tpu.matmul %202, %204, %cst_86 {dimension_numbers = #tpu.dot_dimension_numbers<[1], [0], [0], [1], [0, 0, 1, 1], [], []>} : vector<8x128xbf16>, vector<128x128xbf16>, vector<8x128xf32> -> vector<8x128xf32>
    %c1_87 = arith.constant 1 : index
    %c0_88 = arith.constant 0 : index
    %c0_89 = arith.constant 0 : index
    %206 = vector.load %arg8[%c1_87, %c0_88, %c0_89] : memref<2x1x128xf32, #tpu.memory_space<vmem>>, vector<1x1x128xf32>
    %207 = vector.shape_cast %206 : vector<1x1x128xf32> to vector<1x128xf32>
    %208 = vector.broadcast %207 : vector<1x128xf32> to vector<8x128xf32>
    %209 = arith.addf %205, %208 : vector<8x128xf32>
    %210 = arith.addf %209, %158 : vector<8x128xf32>
    %c1_90 = arith.constant 1 : index
    %c0_91 = arith.constant 0 : index
    %c0_92 = arith.constant 0 : index
    %211 = vector.load %arg9[%c1_90, %c0_91, %c0_92] : memref<2x1x128xf32, #tpu.memory_space<vmem>>, vector<1x1x128xf32>
    %212 = vector.shape_cast %211 : vector<1x1x128xf32> to vector<1x128xf32>
    %c1_93 = arith.constant 1 : index
    %c0_94 = arith.constant 0 : index
    %c0_95 = arith.constant 0 : index
    %213 = vector.load %arg10[%c1_93, %c0_94, %c0_95] : memref<2x1x128xf32, #tpu.memory_space<vmem>>, vector<1x1x128xf32>
    %214 = vector.shape_cast %213 : vector<1x1x128xf32> to vector<1x128xf32>
    %cst_96 = arith.constant dense<0.000000e+00> : vector<8xf32>
    %215 = vector.multi_reduction <add>, %210, %cst_96 [1] : vector<8x128xf32> to vector<8xf32>
    %216 = vector.shape_cast %215 : vector<8xf32> to vector<8x1xf32>
    %cst_97 = arith.constant 1.280000e+02 : f32
    %217 = vector.broadcast %cst_97 : f32 to vector<8x1xf32>
    %218 = arith.divf %216, %217 : vector<8x1xf32>
    %219 = vector.broadcast %218 : vector<8x1xf32> to vector<8x128xf32>
    %220 = arith.subf %210, %219 : vector<8x128xf32>
    %221 = arith.mulf %220, %220 : vector<8x128xf32>
    %cst_98 = arith.constant dense<0.000000e+00> : vector<8xf32>
    %222 = vector.multi_reduction <add>, %221, %cst_98 [1] : vector<8x128xf32> to vector<8xf32>
    %223 = vector.shape_cast %222 : vector<8xf32> to vector<8x1xf32>
    %cst_99 = arith.constant 1.280000e+02 : f32
    %224 = vector.broadcast %cst_99 : f32 to vector<8x1xf32>
    %225 = arith.divf %223, %224 : vector<8x1xf32>
    %cst_100 = arith.constant 9.99999974E-6 : f32
    %226 = vector.broadcast %cst_100 : f32 to vector<8x1xf32>
    %227 = arith.addf %225, %226 : vector<8x1xf32>
    %228 = math.rsqrt %227 : vector<8x1xf32>
    %229 = vector.broadcast %228 : vector<8x1xf32> to vector<8x128xf32>
    %230 = arith.mulf %220, %229 : vector<8x128xf32>
    %231 = vector.broadcast %212 : vector<1x128xf32> to vector<8x128xf32>
    %232 = arith.mulf %230, %231 : vector<8x128xf32>
    %233 = vector.broadcast %214 : vector<1x128xf32> to vector<8x128xf32>
    %234 = arith.addf %232, %233 : vector<8x128xf32>
    %235 = arith.truncf %234 : vector<8x128xf32> to vector<8x128xbf16>
    %c1_101 = arith.constant 1 : index
    %c0_102 = arith.constant 0 : index
    %c0_103 = arith.constant 0 : index
    %236 = vector.load %arg11[%c1_101, %c0_102, %c0_103] : memref<2x128x256xbf16, #tpu.memory_space<vmem>>, vector<1x128x256xbf16>
    %237 = vector.shape_cast %236 : vector<1x128x256xbf16> to vector<128x256xbf16>
    %cst_104 = arith.constant dense<0.000000e+00> : vector<8x256xf32>
    %238 = tpu.matmul %235, %237, %cst_104 {dimension_numbers = #tpu.dot_dimension_numbers<[1], [0], [0], [1], [0, 0, 1, 1], [], []>} : vector<8x128xbf16>, vector<128x256xbf16>, vector<8x256xf32> -> vector<8x256xf32>
    %c1_105 = arith.constant 1 : index
    %c0_106 = arith.constant 0 : index
    %c0_107 = arith.constant 0 : index
    %239 = vector.load %arg12[%c1_105, %c0_106, %c0_107] : memref<2x1x256xf32, #tpu.memory_space<vmem>>, vector<1x1x256xf32>
    %240 = vector.shape_cast %239 : vector<1x1x256xf32> to vector<1x256xf32>
    %241 = vector.broadcast %240 : vector<1x256xf32> to vector<8x256xf32>
    %242 = arith.addf %238, %241 : vector<8x256xf32>
    %cst_108 = arith.constant 5.000000e-01 : f32
    %243 = vector.broadcast %cst_108 : f32 to vector<8x256xf32>
    %244 = arith.mulf %243, %242 : vector<8x256xf32>
    %cst_109 = arith.constant 4.471500e-02 : f32
    %245 = vector.broadcast %cst_109 : f32 to vector<8x256xf32>
    %246 = arith.mulf %245, %242 : vector<8x256xf32>
    %247 = arith.mulf %246, %242 : vector<8x256xf32>
    %248 = arith.mulf %247, %242 : vector<8x256xf32>
    %249 = arith.addf %242, %248 : vector<8x256xf32>
    %cst_110 = arith.constant 0.797884583 : f32
    %250 = vector.broadcast %cst_110 : f32 to vector<8x256xf32>
    %251 = arith.mulf %250, %249 : vector<8x256xf32>
    %252 = math.tanh %251 : vector<8x256xf32>
    %cst_111 = arith.constant 1.000000e+00 : f32
    %253 = vector.broadcast %cst_111 : f32 to vector<8x256xf32>
    %254 = arith.addf %253, %252 : vector<8x256xf32>
    %255 = arith.mulf %244, %254 : vector<8x256xf32>
    %256 = arith.truncf %255 : vector<8x256xf32> to vector<8x256xbf16>
    %c1_112 = arith.constant 1 : index
    %c0_113 = arith.constant 0 : index
    %c0_114 = arith.constant 0 : index
    %257 = vector.load %arg13[%c1_112, %c0_113, %c0_114] : memref<2x256x128xbf16, #tpu.memory_space<vmem>>, vector<1x256x128xbf16>
    %258 = vector.shape_cast %257 : vector<1x256x128xbf16> to vector<256x128xbf16>
    %cst_115 = arith.constant dense<0.000000e+00> : vector<8x128xf32>
    %259 = tpu.matmul %256, %258, %cst_115 {dimension_numbers = #tpu.dot_dimension_numbers<[1], [0], [0], [1], [0, 0, 1, 1], [], []>} : vector<8x256xbf16>, vector<256x128xbf16>, vector<8x128xf32> -> vector<8x128xf32>
    %c1_116 = arith.constant 1 : index
    %c0_117 = arith.constant 0 : index
    %c0_118 = arith.constant 0 : index
    %260 = vector.load %arg14[%c1_116, %c0_117, %c0_118] : memref<2x1x128xf32, #tpu.memory_space<vmem>>, vector<1x1x128xf32>
    %261 = vector.shape_cast %260 : vector<1x1x128xf32> to vector<1x128xf32>
    %262 = vector.broadcast %261 : vector<1x128xf32> to vector<8x128xf32>
    %263 = arith.addf %259, %262 : vector<8x128xf32>
    %264 = arith.addf %263, %234 : vector<8x128xf32>
    %c1_119 = arith.constant 1 : index
    %c0_120 = arith.constant 0 : index
    %c0_121 = arith.constant 0 : index
    %265 = vector.load %arg15[%c1_119, %c0_120, %c0_121] : memref<2x1x128xf32, #tpu.memory_space<vmem>>, vector<1x1x128xf32>
    %266 = vector.shape_cast %265 : vector<1x1x128xf32> to vector<1x128xf32>
    %c1_122 = arith.constant 1 : index
    %c0_123 = arith.constant 0 : index
    %c0_124 = arith.constant 0 : index
    %267 = vector.load %arg16[%c1_122, %c0_123, %c0_124] : memref<2x1x128xf32, #tpu.memory_space<vmem>>, vector<1x1x128xf32>
    %268 = vector.shape_cast %267 : vector<1x1x128xf32> to vector<1x128xf32>
    %cst_125 = arith.constant dense<0.000000e+00> : vector<8xf32>
    %269 = vector.multi_reduction <add>, %264, %cst_125 [1] : vector<8x128xf32> to vector<8xf32>
    %270 = vector.shape_cast %269 : vector<8xf32> to vector<8x1xf32>
    %cst_126 = arith.constant 1.280000e+02 : f32
    %271 = vector.broadcast %cst_126 : f32 to vector<8x1xf32>
    %272 = arith.divf %270, %271 : vector<8x1xf32>
    %273 = vector.broadcast %272 : vector<8x1xf32> to vector<8x128xf32>
    %274 = arith.subf %264, %273 : vector<8x128xf32>
    %275 = arith.mulf %274, %274 : vector<8x128xf32>
    %cst_127 = arith.constant dense<0.000000e+00> : vector<8xf32>
    %276 = vector.multi_reduction <add>, %275, %cst_127 [1] : vector<8x128xf32> to vector<8xf32>
    %277 = vector.shape_cast %276 : vector<8xf32> to vector<8x1xf32>
    %cst_128 = arith.constant 1.280000e+02 : f32
    %278 = vector.broadcast %cst_128 : f32 to vector<8x1xf32>
    %279 = arith.divf %277, %278 : vector<8x1xf32>
    %cst_129 = arith.constant 9.99999974E-6 : f32
    %280 = vector.broadcast %cst_129 : f32 to vector<8x1xf32>
    %281 = arith.addf %279, %280 : vector<8x1xf32>
    %282 = math.rsqrt %281 : vector<8x1xf32>
    %283 = vector.broadcast %282 : vector<8x1xf32> to vector<8x128xf32>
    %284 = arith.mulf %274, %283 : vector<8x128xf32>
    %285 = vector.broadcast %266 : vector<1x128xf32> to vector<8x128xf32>
    %286 = arith.mulf %284, %285 : vector<8x128xf32>
    %287 = vector.broadcast %268 : vector<1x128xf32> to vector<8x128xf32>
    %288 = arith.addf %286, %287 : vector<8x128xf32>
    %289 = vector.shape_cast %288 : vector<8x128xf32> to vector<1x8x128xf32>
    %290 = vector.extract_strided_slice %289 {offsets = [0, 0, 0], sizes = [1, 1, 128], strides = [1, 1, 1]} : vector<1x8x128xf32> to vector<1x1x128xf32>
    %291 = vector.shape_cast %290 : vector<1x1x128xf32> to vector<1x128xf32>
    %292 = arith.truncf %291 : vector<1x128xf32> to vector<1x128xbf16>
    %c0_130 = arith.constant 0 : index
    %c0_131 = arith.constant 0 : index
    %293 = vector.load %arg17[%c0_130, %c0_131] : memref<128x128xbf16, #tpu.memory_space<vmem>>, vector<128x128xbf16>
    %cst_132 = arith.constant dense<0.000000e+00> : vector<1x128xf32>
    %294 = tpu.matmul %292, %293, %cst_132 {dimension_numbers = #tpu.dot_dimension_numbers<[1], [0], [0], [1], [0, 0, 1, 1], [], []>} : vector<1x128xbf16>, vector<128x128xbf16>, vector<1x128xf32> -> vector<1x128xf32>
    %c0_133 = arith.constant 0 : index
    %c0_134 = arith.constant 0 : index
    %295 = vector.load %arg18[%c0_133, %c0_134] : memref<1x128xf32, #tpu.memory_space<vmem>>, vector<1x128xf32>
    %296 = arith.addf %294, %295 : vector<1x128xf32>
    %297 = math.tanh %296 : vector<1x128xf32>
    %c0_135 = arith.constant 0 : index
    %c0_136 = arith.constant 0 : index
    %298 = vector.load %arg19[%c0_135, %c0_136] : memref<1x128xf32, #tpu.memory_space<vmem>>, vector<1x128xf32>
    %299 = arith.mulf %297, %298 : vector<1x128xf32>
    %cst_137 = arith.constant dense<0.000000e+00> : vector<1xf32>
    %300 = vector.multi_reduction <add>, %299, %cst_137 [1] : vector<1x128xf32> to vector<1xf32>
    %301 = vector.shape_cast %300 : vector<1xf32> to vector<1x1xf32>
    %c0_138 = arith.constant 0 : index
    %c0_139 = arith.constant 0 : index
    %302 = vector.load %arg20[%c0_138, %c0_139] : memref<1x1xf32, #tpu.memory_space<vmem>>, vector<1x1xf32>
    %303 = arith.addf %301, %302 : vector<1x1xf32>
    %304 = vector.shape_cast %303 : vector<1x1xf32> to vector<1x1x1xf32>
    %305 = vector.shape_cast %304 : vector<1x1x1xf32> to vector<1x1x1xf32>
    %306 = vector.broadcast %305 : vector<1x1x1xf32> to vector<1x1x128xf32>
    %c0_140 = arith.constant 0 : index
    %c0_141 = arith.constant 0 : index
    %c0_142 = arith.constant 0 : index
    %307 = vector.load %arg21[%c0_140, %c0_141, %c0_142] : memref<1x1x128xf32, #tpu.memory_space<vmem>>, vector<1x1x128xf32>
    tpu.vector_store %arg21[%c0_140, %c0_141, %c0_142], %306 {strides = array<i32>} : memref<1x1x128xf32, #tpu.memory_space<vmem>>, vector<1x1x128xf32>,
    return
  }
  func.func @transform_0(%arg0: i32) -> (i32, i32, i32) {
    %c0_i32 = arith.constant 0 : i32
    %c0_i32_0 = arith.constant 0 : i32
    %c0_i32_1 = arith.constant 0 : i32
    return %arg0, %c0_i32, %c0_i32_0 : i32, i32, i32
  }
  func.func @transform_1(%arg0: i32) -> (i32, i32, i32) {
    %c0_i32 = arith.constant 0 : i32
    %c0_i32_0 = arith.constant 0 : i32
    %c0_i32_1 = arith.constant 0 : i32
    return %arg0, %c0_i32, %c0_i32_0 : i32, i32, i32
  }
  func.func @transform_2(%arg0: i32) -> (i32, i32) {
    %c0_i32 = arith.constant 0 : i32
    %c0_i32_0 = arith.constant 0 : i32
    %c0_i32_1 = arith.constant 0 : i32
    return %c0_i32, %c0_i32_0 : i32, i32
  }
  func.func @transform_3(%arg0: i32) -> (i32, i32) {
    %c0_i32 = arith.constant 0 : i32
    %c0_i32_0 = arith.constant 0 : i32
    %c0_i32_1 = arith.constant 0 : i32
    return %c0_i32, %c0_i32_0 : i32, i32
  }
  func.func @transform_4(%arg0: i32) -> (i32, i32, i32) {
    %c0_i32 = arith.constant 0 : i32
    %c0_i32_0 = arith.constant 0 : i32
    %c0_i32_1 = arith.constant 0 : i32
    %c0_i32_2 = arith.constant 0 : i32
    return %c0_i32, %c0_i32_0, %c0_i32_1 : i32, i32, i32
  }
  func.func @transform_5(%arg0: i32) -> (i32, i32, i32) {
    %c0_i32 = arith.constant 0 : i32
    %c0_i32_0 = arith.constant 0 : i32
    %c0_i32_1 = arith.constant 0 : i32
    %c0_i32_2 = arith.constant 0 : i32
    return %c0_i32, %c0_i32_0, %c0_i32_1 : i32, i32, i32
  }
  func.func @transform_6(%arg0: i32) -> (i32, i32, i32) {
    %c0_i32 = arith.constant 0 : i32
    %c0_i32_0 = arith.constant 0 : i32
    %c0_i32_1 = arith.constant 0 : i32
    %c0_i32_2 = arith.constant 0 : i32
    return %c0_i32, %c0_i32_0, %c0_i32_1 : i32, i32, i32
  }
  func.func @transform_7(%arg0: i32) -> (i32, i32, i32) {
    %c0_i32 = arith.constant 0 : i32
    %c0_i32_0 = arith.constant 0 : i32
    %c0_i32_1 = arith.constant 0 : i32
    %c0_i32_2 = arith.constant 0 : i32
    return %c0_i32, %c0_i32_0, %c0_i32_1 : i32, i32, i32
  }
  func.func @transform_8(%arg0: i32) -> (i32, i32, i32) {
    %c0_i32 = arith.constant 0 : i32
    %c0_i32_0 = arith.constant 0 : i32
    %c0_i32_1 = arith.constant 0 : i32
    %c0_i32_2 = arith.constant 0 : i32
    return %c0_i32, %c0_i32_0, %c0_i32_1 : i32, i32, i32
  }
  func.func @transform_9(%arg0: i32) -> (i32, i32, i32) {
    %c0_i32 = arith.constant 0 : i32
    %c0_i32_0 = arith.constant 0 : i32
    %c0_i32_1 = arith.constant 0 : i32
    %c0_i32_2 = arith.constant 0 : i32
    return %c0_i32, %c0_i32_0, %c0_i32_1 : i32, i32, i32
  }
  func.func @transform_10(%arg0: i32) -> (i32, i32, i32) {
    %c0_i32 = arith.constant 0 : i32
    %c0_i32_0 = arith.constant 0 : i32
    %c0_i32_1 = arith.constant 0 : i32
    %c0_i32_2 = arith.constant 0 : i32
    return %c0_i32, %c0_i32_0, %c0_i32_1 : i32, i32, i32
  }
  func.func @transform_11(%arg0: i32) -> (i32, i32, i32) {
    %c0_i32 = arith.constant 0 : i32
    %c0_i32_0 = arith.constant 0 : i32
    %c0_i32_1 = arith.constant 0 : i32
    %c0_i32_2 = arith.constant 0 : i32
    return %c0_i32, %c0_i32_0, %c0_i32_1 : i32, i32, i32
  }
  func.func @transform_12(%arg0: i32) -> (i32, i32, i32) {
    %c0_i32 = arith.constant 0 : i32
    %c0_i32_0 = arith.constant 0 : i32
    %c0_i32_1 = arith.constant 0 : i32
    %c0_i32_2 = arith.constant 0 : i32
    return %c0_i32, %c0_i32_0, %c0_i32_1 : i32, i32, i32
  }
  func.func @transform_13(%arg0: i32) -> (i32, i32, i32) {
    %c0_i32 = arith.constant 0 : i32
    %c0_i32_0 = arith.constant 0 : i32
    %c0_i32_1 = arith.constant 0 : i32
    %c0_i32_2 = arith.constant 0 : i32
    return %c0_i32, %c0_i32_0, %c0_i32_1 : i32, i32, i32
  }
  func.func @transform_14(%arg0: i32) -> (i32, i32, i32) {
    %c0_i32 = arith.constant 0 : i32
    %c0_i32_0 = arith.constant 0 : i32
    %c0_i32_1 = arith.constant 0 : i32
    %c0_i32_2 = arith.constant 0 : i32
    return %c0_i32, %c0_i32_0, %c0_i32_1 : i32, i32, i32
  }
  func.func @transform_15(%arg0: i32) -> (i32, i32, i32) {
    %c0_i32 = arith.constant 0 : i32
    %c0_i32_0 = arith.constant 0 : i32
    %c0_i32_1 = arith.constant 0 : i32
    %c0_i32_2 = arith.constant 0 : i32
    return %c0_i32, %c0_i32_0, %c0_i32_1 : i32, i32, i32
  }
  func.func @transform_16(%arg0: i32) -> (i32, i32) {
    %c0_i32 = arith.constant 0 : i32
    %c0_i32_0 = arith.constant 0 : i32
    %c0_i32_1 = arith.constant 0 : i32
    return %c0_i32, %c0_i32_0 : i32, i32
  }
  func.func @transform_17(%arg0: i32) -> (i32, i32) {
    %c0_i32 = arith.constant 0 : i32
    %c0_i32_0 = arith.constant 0 : i32
    %c0_i32_1 = arith.constant 0 : i32
    return %c0_i32, %c0_i32_0 : i32, i32
  }
  func.func @transform_18(%arg0: i32) -> (i32, i32) {
    %c0_i32 = arith.constant 0 : i32
    %c0_i32_0 = arith.constant 0 : i32
    %c0_i32_1 = arith.constant 0 : i32
    return %c0_i32, %c0_i32_0 : i32, i32
  }
  func.func @transform_19(%arg0: i32) -> (i32, i32) {
    %c0_i32 = arith.constant 0 : i32
    %c0_i32_0 = arith.constant 0 : i32
    %c0_i32_1 = arith.constant 0 : i32
    return %c0_i32, %c0_i32_0 : i32, i32
  }
  func.func @transform_20(%arg0: i32) -> (i32, i32, i32) {
    %c0_i32 = arith.constant 0 : i32
    %c0_i32_0 = arith.constant 0 : i32
    %c0_i32_1 = arith.constant 0 : i32
    return %arg0, %c0_i32, %c0_i32_0 : i32, i32, i32
  }
}

</mosaic_0001>

<bundles_post_ra>
// kernel: roberta_ppd_forward.1
= control target key start
LH: loop header
LB: loop body
LE: loop exit
PB: predicated region body
PF: predicated region fallthrough
CT: control target
= control target key end

     0   :  { %s5592_s0 = inlined_call_operand.vmem [shape: f32[2,8,128], index: 0, kind: input, shape index: {}]   ;;  %s5593_s1 = inlined_call_operand.vmem [shape: f32[2,1,8], index: 1, kind: input, shape index: {}]   ;;  %s5594_s2 = inlined_call_operand.vmem [shape: f32[1,128], index: 2, kind: input, shape index: {}]   ;;  %s5595_s3 = inlined_call_operand.vmem [shape: f32[1,128], index: 3, kind: input, shape index: {}]   ;;  %s5596_s4 = inlined_call_operand.hbm [shape: bf16[2,128,384], index: 4, kind: input, shape index: {}]   ;;  %s5597_s5 = inlined_call_operand.vmem [shape: f32[2,1,384], index: 5, kind: input, shape index: {}]   ;;  %s5598_s6 = inlined_call_operand.hbm [shape: bf16[2,128,128], index: 6, kind: input, shape index: {}]   ;;  %s5599_s7 = inlined_call_operand.vmem [shape: f32[2,1,128], index: 7, kind: input, shape index: {}]   ;;  %s5600_s8 = inlined_call_operand.vmem [shape: f32[2,1,128], index: 8, kind: input, shape index: {}]   ;;  %s5601_s9 = inlined_call_operand.vmem [shape: f32[2,1,128], index: 9, kind: input, shape index: {}]   ;;  %s5602_s10 = inlined_call_operand.vmem [shape: bf16[2,128,256], index: 10, kind: input, shape index: {}]   ;;  %s5603_s11 = inlined_call_operand.vmem [shape: f32[2,1,256], index: 11, kind: input, shape index: {}]   ;;  %s5604_s12 = inlined_call_operand.hbm [shape: bf16[2,256,128], index: 12, kind: input, shape index: {}]   ;;  %s5605_s13 = inlined_call_operand.vmem [shape: f32[2,1,128], index: 13, kind: input, shape index: {}]   ;;  %s5606_s14 = inlined_call_operand.vmem [shape: f32[2,1,128], index: 14, kind: input, shape index: {}]   ;;  %s5607_s15 = inlined_call_operand.vmem [shape: f32[2,1,128], index: 15, kind: input, shape index: {}]   ;;  %s5608_s16 = inlined_call_operand.vmem [shape: bf16[128,128], index: 16, kind: input, shape index: {}]   ;;  %s5609_s17 = inlined_call_operand.vmem [shape: f32[1,128], index: 17, kind: input, shape index: {}]   ;;  %s5610_s18 = inlined_call_operand.vmem [shape: f32[1,128], index: 18, kind: input, shape index: {}]   ;;  %s5611_s19 = inlined_call_operand.<no memory space> [shape: f32[1,1], index: 19, kind: input, shape index: {}]   ;;  %s5612_s20 = inlined_call_operand.vmem [shape: f32[2,1,128], index: 20, kind: output, shape index: {}]  }
   0x1   :  { %5614 = sst [smem:[#allocation11_spill]] %s5592_s0  ;;  %v25_v0 = vstv %s5611_s19 }
   0x2   :  { %5615 = sst [smem:[#allocation12_spill]] %s5593_s1  ;;  %26 = vst [vmem:[#allocation2] sm:$0x1] %v25_v0 }
   0x3   :  { %5616 = sst [smem:[#allocation13_spill]] %s5594_s2 }
   0x4   :  { %5617 = sst [smem:[#allocation14_spill]] %s5595_s3 }
   0x5   :  { %5618 = sst [smem:[#allocation15_spill]] %s5596_s4 }
   0x6   :  { %5619 = sst [smem:[#allocation16_spill]] %s5598_s6 }
   0x7   :  { %27 = vsyncpa [#allocation4], 0 }
   0x8   :  { %28 = vsyncpa [#allocation6], 0  ;;  %s4743_s23 = smov 0  }
   0x9 LB: > { %5620 = sst [smem:[#allocation10_spill]] %s4619_s23  ;;  %s4752_s3 = sadd.s32 4294967295, %s4619_s23   ;;  %s4619_s23 = sphi %s4743_s23, %s34_s23  }
   0xa   : > { %s5621_s6 = sld [smem:[#allocation16_spill]]  ;;  %p3661_p0 = scmp.ge.s32.totalorder %s4619_s23, 1 }
   0xb   : > { %p495_p1 = scmp.lt.s32.totalorder %s4619_s23, 3  ;;  %p4415_p2 = scmp.eq.s32.totalorder %s4752_s3, 0 }
   0xc   : > { %s4621_s26 = smov [#allocation5]   ;;  %s5623_s29 = sld [smem:[#allocation15_spill]] }
   0xd   : > { %p4757_p3 = pnand %p3661_p0, %p495_p1  ;;  %s531_s27 = sshll.u32 %s4621_s26, 4  ;;  %s532_s27 = int_to_ptr.vmem [resolvable:$true] %s531_s27 }
   0xe   : > { %s4622_s21 = smov [#allocation3]   ;;  %s4623_s22 = smov 64  }
   0xf   : > { %p4405_p4 = pneg %p4757_p3  ;;  %s514_s1 = sshll.u32 %s4622_s21, 4  ;;  %s515_s1 = int_to_ptr.vmem [resolvable:$true] %s514_s1 }
  0x10   : > { %s529_s25 = sshll.u32 %s5621_s6, 4  ;;  %s4624_s24 = smov 4   ;;  %s530_s25 = int_to_ptr.hbm [resolvable:$true] %s529_s25 }
  0x11   : > { %p4768_p5 = pnand %p4415_p2, %p4405_p4  ;;  %s558_s28 = sshll.u32 %s5604_s12, 4  ;;  %s559_s28 = int_to_ptr.hbm [resolvable:$true] %s558_s28 }
  0x12   : > { %s512_s30 = sshll.u32 %s5623_s29, 4  ;;  %s4625_s4 = smov 192   ;;  %s513_s30 = int_to_ptr.hbm [resolvable:$true] %s512_s30 }
  0x13   : > { %4411 = dma.hbm_to_vmem [thread:$0]  (!%p4768_p5), %s530_s25, 2048, %s532_s27, [#allocation6], %s4623_s22, %s4623_s22, %s4624_s24  }
  0x14   : > { %s4626_s29 = smov 12   ;;  %s4627_s6 = smov [#allocation7]  }
  0x15   : > { %4408 = dma.hbm_to_vmem [thread:$0]  (!%p4768_p5), %s513_s30, 6144, %s515_s1, [#allocation4], %s4625_s4, %s4625_s4, %s4626_s29  }
  0x16   : > { %s560_s23 = sshll.u32 %s4627_s6, 4  ;;  %610 = sbr.rel (%p4757_p3) target bundleno = 4523 (0x11ab), region = 100  ;;  %s561_s23 = int_to_ptr.vmem [resolvable:$true] %s560_s23 }
  0x17   : > { %4414 = dma.hbm_to_vmem [thread:$0]  (!%p4768_p5), %s559_s28, 4096, %s561_s23, [#allocation6], %s4623_s22, %s4623_s22, %s4624_s24  }
  0x1b   : > { %4610 = dma.done.wait (%p4415_p2), [#allocation4], 6144  }
  0x1c   : > { %4612 = vsyncadd (%p4415_p2), [#allocation4], 4294961152 }
  0x1d   : > { %4614 = dma.done.wait (%p4415_p2), [#allocation6], 6144  }
  0x1e   : > { %4616 = vsyncadd (%p4415_p2), [#allocation6], 4294961152  ;;  %p679_p6 = scmp.lt.s32.totalorder %s4752_s3, 1  ;;  %s5625_s19 = sld [smem:[#allocation11_spill]]  ;;  %v4628_v2 = vmov 128.0   ;;  %vm948_vm4 = vcmask 1047556  }
  0x1f   : > { %s5626_s21 = sld [smem:[#allocation12_spill]]  ;;  %4460 = vrcp.f32 %v4628_v2  ;;  %v3757_v3 = vld [vmem:[#allocation3 + $0xa8] sm:$0xf]  ;;  %v4279_v4 = vld [vmem:[#allocation3 + $0xb0] sm:$0xf0]  ;;  %s4629_s23 = smov 32  }
  0x20   : > { %s5631_s3 = smov (!%p679_p6, %s4752_s3), 1  ;;  %v4278_v5 = vld [vmem:[#allocation3 + $0xac] sm:$0xf]  ;;  %v3758_v6 = vor.u32 %v4279_v4, %v3757_v3  ;;  %v3759_v7 = vld [vmem:[#allocation3 + $0xb4] sm:$0xf0]  ;;  %s5627_s2 = sld [smem:[#allocation13_spill]] }
  0x21   : > { %s3670_s6 = sshll.u32 %s5631_s3, 3  ;;  %v3765_v8 = vld [vmem:[#allocation3 + $0xb0] sm:$0xf]  ;;  %v4280_v9 = vld [vmem:[#allocation3 + $0xb8] sm:$0xf0]  ;;  %v3762_v10 = vor.u32 %v4278_v5, %v3759_v7  ;;  %s5628_s4 = sld [smem:[#allocation14_spill]] }
  0x22   : > { %v3766_v11 = vor.u32 %v4280_v9, %v3765_v8  ;;  %898 = vmatpush.bf16.msra.mxu0 %v3758_v6  ;;  %v3745_v22 = vld [vmem:[#allocation3 + $0x90] sm:$0xf]  ;;  %v4276_v23 = vld [vmem:[#allocation3 + $0x98] sm:$0xf0]  ;;  %v4275_v24 = vld [vmem:[#allocation3 + $0x94] sm:$0xf]  ;;  %s688_s28 = scalar_lea.vmem %s5612_s20, %s5631_s3 }
  0x23   : > { %911 = vmatpush.bf16.msra.mxu1 %v3762_v10  ;;  %v3746_v25 = vor.u32 %v4276_v23, %v3745_v22  ;;  %v3747_v26 = vld [vmem:[#allocation3 + $0x9c] sm:$0xf0]  ;;  %v3753_v27 = vld [vmem:[#allocation3 + $0x98] sm:$0xf]  ;;  %v4277_v28 = vld [vmem:[#allocation3 + $0xa0] sm:$0xf0] }
  0x24   : > { %s682_s27 = scalar_lea.vmem %s5625_s19, %s3670_s6  ;;  %924 = vmatpush.bf16.msra.mxu2 %v3766_v11  ;;  %v3750_v29 = vor.u32 %v4275_v24, %v3747_v26  ;;  %v3754_v30 = vor.u32 %v4277_v28, %v3753_v27  ;;  %v3733_v31 = vld [vmem:[#allocation3 + $0x78] sm:$0xf]  ;;  %v4273_v32 = vld [vmem:[#allocation3 + $0x80] sm:$0xf0]  ;;  %v4272_v33 = vld [vmem:[#allocation3 + $0x7c] sm:$0xf] }
  0x25   : > { %s4803_s1 = scalar_lea.vmem %s5626_s21, %s5631_s3  ;;  %v690_v1 = vld [vmem:[%s682_s27] sm:$0xff]  ;;  %v4461_v12 = vpop.eup %4460  ;;  %v3734_v34 = vor.u32 %v4273_v32, %v3733_v31  ;;  %v3735_v35 = vld [vmem:[#allocation3 + $0x84] sm:$0xf0]  ;;  %v4274_v37 = vld [vmem:[#allocation3 + $0x88] sm:$0xf0]  ;;  %s4630_s25 = smov 96  }
  0x26   : > { %693 = vadd.xlane.f32.xlu0 %v690_v1  ;;  %v696_v13 = vmul.f32 128.0, %v4461_v12  ;;  %vm700_vm0 = vweird.f32 %v4461_v12  ;;  %899 = vmatpush.bf16.msra.mxu0 %v3746_v25  ;;  %v3741_v36 = vld [vmem:[#allocation3 + $0x80] sm:$0xf]  ;;  %v3738_v38 = vor.u32 %v4272_v33, %v3735_v35  ;;  %v4270_v41 = vld [vmem:[#allocation3 + $0x68] sm:$0xf0]  ;;  %s4631_s19 = smov 64  }
  0x27   : > { %912 = vmatpush.bf16.msra.mxu1 %v3750_v29  ;;  %v3742_v39 = vor.u32 %v4274_v37, %v3741_v36  ;;  %v3721_v40 = vld [vmem:[#allocation3 + $0x60] sm:$0xf]  ;;  %v4269_v42 = vld [vmem:[#allocation3 + $0x64] sm:$0xf]  ;;  %v3723_v44 = vld [vmem:[#allocation3 + $0x6c] sm:$0xf0] }
  0x28   : > { %v697_v14 = vsub.f32 1.0, %v696_v13  ;;  %925 = vmatpush.bf16.msra.mxu2 %v3754_v30  ;;  %v3722_v43 = vor.u32 %v4270_v41, %v3721_v40  ;;  %v3729_v45 = vld [vmem:[#allocation3 + $0x68] sm:$0xf]  ;;  %v4271_v46 = vld [vmem:[#allocation3 + $0x70] sm:$0xf0]  ;;  %v3726_v47 = vor.u32 %v4269_v42, %v3723_v44  ;;  %vm1306_vm5 = vcmask 261120  }
  0x29   : > { %v3730_v48 = vor.u32 %v4271_v46, %v3729_v45  ;;  %v3709_v49 = vld [vmem:[#allocation3 + $0x48] sm:$0xf]  ;;  %v4267_v50 = vld [vmem:[#allocation3 + $0x50] sm:$0xf0]  ;;  %v4266_v51 = vld [vmem:[#allocation3 + $0x4c] sm:$0xf] }
  0x2a   : > { %v698_v15 = vmul.f32 %v4461_v12, %v697_v14  ;;  %900 = vmatpush.bf16.msra.mxu0 %v3734_v34  ;;  %v3710_v52 = vor.u32 %v4267_v50, %v3709_v49  ;;  %v3711_v53 = vld [vmem:[#allocation3 + $0x54] sm:$0xf0]  ;;  %v3717_v54 = vld [vmem:[#allocation3 + $0x50] sm:$0xf]  ;;  %v4268_v55 = vld [vmem:[#allocation3 + $0x58] sm:$0xf0] }
  0x2b   : > { %913 = vmatpush.bf16.msra.mxu1 %v3738_v38  ;;  %v3714_v56 = vor.u32 %v4266_v51, %v3711_v53  ;;  %v3718_v57 = vor.u32 %v4268_v55, %v3717_v54  ;;  %v3697_v58 = vld [vmem:[#allocation3 + $0x30] sm:$0xf]  ;;  %v4264_v59 = vld [vmem:[#allocation3 + $0x38] sm:$0xf0]  ;;  %v4263_v60 = vld [vmem:[#allocation3 + $0x34] sm:$0xf] }
  0x2c   : > { %v699_v16 = vadd.f32 %v4461_v12, %v698_v15  ;;  %926 = vmatpush.bf16.msra.mxu2 %v3742_v39  ;;  %v3698_v61 = vor.u32 %v4264_v59, %v3697_v58  ;;  %v3699_v62 = vld [vmem:[#allocation3 + $0x3c] sm:$0xf0]  ;;  %v3705_v63 = vld [vmem:[#allocation3 + $0x38] sm:$0xf]  ;;  %v4265_v0 = vld [vmem:[#allocation3 + $0x40] sm:$0xf0] }
  0x2d   : > { %v3706_v2 = vor.u32 %v4265_v0, %v3705_v63  ;;  %v3685_v3 = vld [vmem:[#allocation3 + $0x18] sm:$0xf]  ;;  %v4261_v4 = vld [vmem:[#allocation3 + $0x20] sm:$0xf0]  ;;  %v4260_v5 = vld [vmem:[#allocation3 + $0x1c] sm:$0xf] }
  0x2e   : > { %v4805_v17 = vsel %vm700_vm0, %v4461_v12, %v699_v16  ;;  %901 = vmatpush.bf16.msra.mxu0 %v3722_v43  ;;  %v3686_v6 = vor.u32 %v4261_v4, %v3685_v3  ;;  %v3687_v7 = vld [vmem:[#allocation3 + $0x24] sm:$0xf0]  ;;  %v3693_v8 = vld [vmem:[#allocation3 + $0x20] sm:$0xf]  ;;  %v4262_v9 = vld [vmem:[#allocation3 + $0x28] sm:$0xf0] }
  0x2f   : > { %914 = vmatpush.bf16.msra.mxu1 %v3726_v47  ;;  %v3690_v10 = vor.u32 %v4260_v5, %v3687_v7  ;;  %v3694_v11 = vor.u32 %v4262_v9, %v3693_v8  ;;  %v3673_v12 = vld [vmem:[#allocation3] sm:$0xf]  ;;  %v4258_v13 = vld [vmem:[#allocation3 + $0x8] sm:$0xf0]  ;;  %v4257_v14 = vld [vmem:[#allocation3 + $0x4] sm:$0xf] }
  0x30   : > { %927 = vmatpush.bf16.msra.mxu2 %v3730_v48  ;;  %v3674_v15 = vor.u32 %v4258_v13, %v3673_v12  ;;  %v3675_v16 = vld [vmem:[#allocation3 + $0xc] sm:$0xf0]  ;;  %v4446_v32 = vld [vmem:[%s5627_s2] ss:$0 sm:$0xff]  ;;  %v4632_v50 = vmov 1983009808  }
  0x31   : > { %v4447_v35 = vld [vmem:[%s5628_s4] ss:$0 sm:$0xff]  ;;  %v953_v51 = vunpack.c.l.s4 %v4632_v50  ;;  %v4633_v59 = vmov 1934713408   ;;  %vm1394_vm6 = vcmask 64512   ;;  %vm1450_vm7 = vcmask 1043456  }
  0x32   : > { %902 = vmatpush.bf16.msra.mxu0 %v3710_v52  ;;  %v4827_v39 = vld [vmem:[%s5597_s5] sm:$0x7]  ;;  %vm1647_vm8 = vcmask 523264   ;;  %vm1649_vm9 = vcmask 785408  }
  0x33   : > { %915 = vmatpush.bf16.msra.mxu1 %v3714_v56  ;;  %v765_v40 = vperm.slane %v4827_v39, 1  ;;  %v4840_v56 = vunpack.c.0.s8 %v953_v51 }
  0x34   : > { %928 = vmatpush.bf16.msra.mxu2 %v3718_v57 }
  0x36   : > { %903 = vmatpush.bf16.msra.mxu0 %v3698_v61 }
  0x38   : > { %929 = vmatpush.bf16.msra.mxu2 %v3706_v2 }
  0x3a   : > { %904 = vmatpush.bf16.msra.mxu0 %v3686_v6 }
  0x3c   : > { %930 = vmatpush.bf16.msra.mxu2 %v3694_v11 }
  0x3e   : > { %905 = vmatpush.bf16.msra.mxu0 %v3674_v15 }
  0x99   : > { %v694_v18 = vpop.xlane.xlu0 %693 }
  0x9a   : > { %v702_v19 = vmul.f32 %v4805_v17, %v694_v18  ;;  %v3681_v18 = vld [vmem:[#allocation3 + $0x8] sm:$0xf] }
  0x9c   : > { %v4808_v20 = vsub.f32 %v690_v1, %v702_v19  ;;  %v3702_v1 = vor.u32 %v4263_v60, %v3699_v62  ;;  %v4259_v19 = vld [vmem:[#allocation3 + $0x10] sm:$0xf0]  ;;  %v977_v60 = vunpack.c.l.s4 %v4633_v59 }
  0x9d   : > { %v3682_v22 = vor.u32 %v4259_v19, %v3681_v18 }
  0x9e   : > { %v704_v21 = vmul.f32 %v4808_v20, %v4808_v20  ;;  %916 = vmatpush.bf16.msra.mxu1 %v3702_v1  ;;  %v4845_v3 = vunpack.c.0.s8 %v977_v60 }
  0x9f   : > { %931 = vmatpush.bf16.msra.mxu2 %v3682_v22 }
  0xa0   : > { %705 = vadd.xlane.f32.xlu0 %v704_v21  ;;  %v3678_v21 = vor.u32 %v4257_v14, %v3675_v16 }
  0xa2   : > { %917 = vmatpush.bf16.msra.mxu1 %v3690_v10 }
  0xa6   : > { %918 = vmatpush.bf16.msra.mxu1 %v3678_v21 }
 0x113   : > { %v706_v23 = vpop.xlane.xlu0 %705 }
 0x114   : > { %v707_v24 = vmul.f32 %v706_v23, %v4805_v17 }
 0x116   : > { %v708_v25 = vadd.f32 1e-05, %v707_v24 }
 0x118   : > { %4462 = vrsqrt.f32 %v708_v25  ;;  %vm715_vm2 = vweird.f32 %v708_v25 }
 0x11e   : > { %v4463_v26 = vpop.eup %4462 }
 0x11f   : > { %v710_v27 = vmul.f32 %v4463_v26, %v708_v25  ;;  %vm716_vm1 = vweird.f32 %v4463_v26 }
 0x120   : > { %vm717_vm3 = vmor %vm715_vm2, %vm716_vm1 }
 0x121   : > { %v711_v28 = vmul.f32 %v4463_v26, %v710_v27 }
 0x123   : > { %v712_v29 = vmul.f32 0.5, %v711_v28 }
 0x125   : > { %v713_v30 = vsub.f32 1.5, %v712_v29 }
 0x127   : > { %v714_v31 = vmul.f32 %v4463_v26, %v713_v30 }
 0x129   : > { %v718_v33 = vsel %vm717_vm3, %v4463_v26, %v714_v31 }
 0x12a   : > { %v719_v34 = vmul.f32 %v718_v33, %v4808_v20  ;;  %v764_v20 = vperm.slane %v4827_v39, 0 }
 0x12c   : > { %v723_v36 = vmul.f32 %v4446_v32, %v719_v34 }
 0x12e   : > { %v4820_v37 = vadd.f32 %v4447_v35, %v723_v36 }
 0x130   : > { %v729_v38 = vpack.c.bf16 %v4820_v37, %v4820_v37 }
 0x132   : > { %906 = vmatmul.bf16.vlgmr.msra.gmra.mxu0 %v729_v38  ;;  %919 = vmatmul.bf16.vlgmr.msra.gmra.mxu1 %v729_v38 }
 0x133   : > { %932 = vmatmul.bf16.vlgmr.msra.gmra.mxu2 %v729_v38 }
 0x1af   : > { %v907_v41 = vpop.f32.mrf.mxu0  ;;  %v920_v42 = vpop.f32.mrf.mxu1 }
 0x1b0   : > { %v908_v43 = vadd.f32 %v907_v41, %v764_v20  ;;  %v921_v44 = vadd.f32 %v920_v42, %v765_v40 }
 0x1b2   : > { %1011 = vrot.lane.b32.xlu2 %v921_v44, %s4629_s23  ;;  %1005 = vrot.lane.b32.xlu1 %v921_v44, %s4630_s25  ;;  %v1016_v63 = vrot.slane %v921_v44, 4  ;;  %v950_v1 = vrot.slane %v908_v43, 4 }
 0x1b3   : > { %941 = vrot.lane.b32.xlu0 %v908_v43, %s4631_s19 }
 0x1b6   : > { %v4834_v45 = vpop.f32.mrf.mxu2 }
 0x1b7   : > { %v909_v46 = vpop.f32.mrf.mxu0  ;;  %v922_v47 = vpop.f32.mrf.mxu1 }
 0x1ba   : > { %1008 = vrot.lane.b32.xlu1 %v921_v44, %s4631_s19  ;;  %938 = vrot.lane.b32.xlu2 %v908_v43, %s4630_s25 }
 0x1be   : > { %v935_v48 = vpop.f32.mrf.mxu2 }
 0x1c2   : > { %944 = vrot.lane.b32.xlu1 %v908_v43, %s4629_s23 }
 0x20c   : > { %v1012_v49 = vpop.permute.xlu2 %1011 }
 0x20d   : > { %v1026_v54 = vrot.slane %v1012_v49, 4 }
 0x214   : > { %v939_v15 = vpop.permute.xlu2 %938 }
 0x215   : > { %v962_v27 = vrot.slane %v939_v15, 4 }
 0x224   : > { %v1006_v52 = vpop.permute.xlu1 %1005 }
 0x225   : > { %v1028_v53 = vrot.slane %v1006_v52, 4  ;;  %v942_v57 = vpop.permute.xlu0 %941  ;;  %v1027_v58 = vsel %vm948_vm4, %v1026_v54, %v1006_v52 }
 0x226   : > { %v947_v62 = vrot.slane %v942_v57, 4  ;;  %v1033_v0 = vperm.slane %v1027_v58, %v4840_v56  ;;  %v951_v7 = vsel %vm948_vm4, %v942_v57, %v950_v1 }
 0x227   : > { %v1029_v55 = vsel %vm948_vm4, %v1012_v49, %v1028_v53  ;;  %v959_v16 = vperm.slane %v951_v7, %v4840_v56 }
 0x228   : > { %v1037_v61 = vperm.slane %v1029_v55, %v4840_v56  ;;  %v949_v9 = vsel %vm948_vm4, %v947_v62, %v908_v43  ;;  %v1038_v11 = vrot.slane %v1033_v0, 4 }
 0x229   : > { %v955_v19 = vperm.slane %v949_v9, %v4840_v56  ;;  %v986_v34 = vrot.slane %v959_v16, 4 }
 0x22a   : > { %v1050_v6 = vrot.slane %v1037_v61, 4 }
 0x22b   : > { %v974_v33 = vrot.slane %v955_v19, 4 }
 0x22c   : > { %v1009_v2 = vpop.permute.xlu1 %1008 }
 0x22d   : > { %v1014_v4 = vrot.slane %v1009_v2, 4  ;;  %v1017_v5 = vsel %vm948_vm4, %v1009_v2, %v1016_v63 }
 0x22e   : > { %v1025_v8 = vperm.slane %v1017_v5, %v4840_v56 }
 0x22f   : > { %v1015_v10 = vsel %vm948_vm4, %v1014_v4, %v921_v44 }
 0x230   : > { %v1021_v12 = vperm.slane %v1015_v10, %v4840_v56  ;;  %v1051_v13 = vsel %vm948_vm4, %v1050_v6, %v1025_v8  ;;  %v1052_v14 = vrot.slane %v1025_v8, 4 }
 0x231   : > { %v1057_v18 = vperm.slane %v1051_v13, %v4845_v3 }
 0x232   : > { %v1039_v21 = vsel %vm948_vm4, %v1038_v11, %v1021_v12  ;;  %v1040_v22 = vrot.slane %v1021_v12, 4  ;;  %v1053_v23 = vsel %vm948_vm4, %v1037_v61, %v1052_v14 }
 0x233   : > { %v1045_v24 = vperm.slane %v1039_v21, %v4845_v3  ;;  %v1061_v25 = vperm.slane %v1053_v23, %v4845_v3  ;;  %v1066_v26 = vrot.slane %v1057_v18, 4 }
 0x234   : > { %v1041_v28 = vsel %vm948_vm4, %v1033_v0, %v1040_v22  ;;  %v945_v29 = vpop.permute.xlu1 %944 }
 0x235   : > { %v1049_v30 = vperm.slane %v1041_v28, %v4845_v3  ;;  %v1062_v31 = vrot.slane %v1045_v24, 4  ;;  %v1068_v32 = vrot.slane %v1061_v25, 4  ;;  %v960_v35 = vrot.slane %v945_v29, 4 }
 0x236   : > { %v963_v36 = vsel %vm948_vm4, %v945_v29, %v962_v27  ;;  %v1067_v20 = vsel %vm948_vm4, 0.0, %v1066_v26 }
 0x237   : > { %v1064_v38 = vrot.slane %v1049_v30, 4  ;;  %v1069_v40 = vsel %vm948_vm4, 0.0, %v1068_v32  ;;  %v1201_v41 = vsel %vm948_vm4, %v1068_v32, %v1057_v18  ;;  %v1063_v42 = vsel %vm948_vm4, 0.0, %v1062_v31 }
 0x238   : > { %v1206_v43 = vrot.slane %v1069_v40, 4  ;;  %v961_v44 = vsel %vm948_vm4, %v960_v35, %v939_v15  ;;  %v971_v46 = vperm.slane %v963_v36, %v4840_v56  ;;  %v1205_v48 = vperm.slane %v1201_v41, %v4840_v56 }
 0x239   : > { %v1065_v47 = vsel %vm948_vm4, 0.0, %v1064_v38  ;;  %v967_v49 = vperm.slane %v961_v44, %v4840_v56  ;;  %v1190_v50 = vsel %vm948_vm4, %v1064_v38, %v1045_v24 }
 0x23a   : > { %v1195_v51 = vrot.slane %v1065_v47, 4  ;;  %v1207_v52 = vsel %vm948_vm4, %v1206_v43, %v1067_v20  ;;  %v984_v53 = vrot.slane %v971_v46, 4  ;;  %v987_v54 = vsel %vm948_vm4, %v971_v46, %v986_v34 }
 0x23b   : > { %v1211_v55 = vperm.slane %v1207_v52, %v4840_v56  ;;  %v972_v57 = vrot.slane %v967_v49, 4  ;;  %v975_v58 = vsel %vm948_vm4, %v967_v49, %v974_v33  ;;  %v995_v59 = vperm.slane %v987_v54, %v4845_v3 }
 0x23c   : > { %v983_v60 = vperm.slane %v975_v58, %v4845_v3  ;;  %v985_v61 = vsel %vm948_vm4, %v984_v53, %v959_v16  ;;  %v1194_v62 = vperm.slane %v1190_v50, %v4840_v56  ;;  %v1196_v63 = vsel %vm948_vm4, %v1195_v51, %v1063_v42 }
 0x23d   : > { %v973_v0 = vsel %vm948_vm4, %v972_v57, %v955_v19  ;;  %v991_v1 = vperm.slane %v985_v61, %v4845_v3  ;;  %v1002_v2 = vrot.slane %v995_v59, 4  ;;  %v1200_v4 = vperm.slane %v1196_v63, %v4840_v56 }
 0x23e   : > { %v979_v5 = vperm.slane %v973_v0, %v4845_v3  ;;  %v998_v6 = vrot.slane %v983_v60, 4  ;;  %v1214_v7 = vrot.slane %v1194_v62, 4  ;;  %v1224_v8 = vrot.slane %v1211_v55, 4 }
 0x23f   : > { %v1000_v9 = vrot.slane %v991_v1, 4  ;;  %v1003_v10 = vsel %vm948_vm4, 0.0, %v1002_v2  ;;  %v1147_v11 = vsel %vm948_vm4, %v1002_v2, %v991_v1  ;;  %v1212_v12 = vrot.slane %v1200_v4, 4 }
 0x240   : > { %v996_v13 = vrot.slane %v979_v5, 4  ;;  %v999_v14 = vsel %vm948_vm4, 0.0, %v998_v6  ;;  %v1151_v15 = vperm.slane %v1147_v11, %v4840_v56  ;;  %v1152_v16 = vrot.slane %v1003_v10, 4 }
 0x241   : > { %v1001_v18 = vsel %vm948_vm4, 0.0, %v1000_v9  ;;  %v1141_v19 = vrot.slane %v999_v14, 4  ;;  %v1213_v21 = vsel %vm948_vm4, %v1212_v12, %v1194_v62  ;;  %v1225_v22 = vsel %vm948_vm4, %v1224_v8, %v1205_v48 }
 0x242   : > { %v997_v23 = vsel %vm948_vm4, 0.0, %v996_v13  ;;  %v1153_v24 = vsel %vm948_vm4, %v1152_v16, %v1001_v18  ;;  %v1172_v25 = vrot.slane %v1151_v15, 4  ;;  %v1219_v26 = vperm.slane %v1213_v21, %v4845_v3  ;;  %v4445_v18 = vld [vmem:[%s4803_s1] ss:$0 sm:$0xff] }
 0x243   : > { %v1157_v27 = vperm.slane %v1153_v24, %v4840_v56  ;;  %v1231_v28 = vperm.slane %v1225_v22, %v4845_v3  ;;  %v1215_v29 = vsel %vm948_vm4, %v1200_v4, %v1214_v7  ;;  %v1226_v30 = vrot.slane %v1205_v48, 4 }
 0x244   : > { %v1223_v31 = vperm.slane %v1215_v29, %v4845_v3  ;;  %v1238_v32 = vrot.slane %v1219_v26, 4  ;;  %v1136_v33 = vsel %vm948_vm4, %v998_v6, %v979_v5  ;;  %v1142_v34 = vsel %vm948_vm4, %v1141_v19, %v997_v23 }
 0x245   : > { %v1236_v35 = vrot.slane %v1231_v28, 4  ;;  %v1227_v36 = vsel %vm948_vm4, %v1211_v55, %v1226_v30  ;;  %v1140_v38 = vperm.slane %v1136_v33, %v4840_v56  ;;  %v1146_v20 = vperm.slane %v1142_v34, %v4840_v56 }
 0x246   : > { %v1235_v40 = vperm.slane %v1227_v36, %v4845_v3  ;;  %v1242_v41 = vrot.slane %v1223_v31, 4  ;;  %v1239_v42 = vsel %vm948_vm4, %v1231_v28, %v1238_v32  ;;  %v1170_v43 = vrot.slane %v1157_v27, 4 }
 0x247   : > { %v1237_v44 = vsel %vm948_vm4, %v1236_v35, %v1219_v26  ;;  %v1303_v46 = vpack.c.bf16 %v1239_v42, %v1239_v42  ;;  %v1158_v47 = vrot.slane %v1146_v20, 4  ;;  %v1160_v48 = vrot.slane %v1140_v38, 4 }
 0x248   : > { %v1302_v49 = vpack.c.bf16 %v1237_v44, %v1237_v44  ;;  %v1240_v50 = vrot.slane %v1235_v40, 4  ;;  %v1243_v51 = vsel %vm948_vm4, %v1235_v40, %v1242_v41  ;;  %v1171_v52 = vsel %vm948_vm4, %v1170_v43, %v1151_v15 }
 0x249   : > { %v1305_v53 = vpack.c.bf16 %v1243_v51, %v1243_v51  ;;  %v1330_v54 = vsel %vm1306_vm5, %v1303_v46, 0  ;;  %v1159_v55 = vsel %vm948_vm4, %v1158_v47, %v1140_v38  ;;  %v1177_v57 = vperm.slane %v1171_v52, %v4845_v3 }
 0x24a   : > { %v1311_v58 = vsel %vm1306_vm5, %v1302_v49, 0  ;;  %v1165_v59 = vperm.slane %v1159_v55, %v4845_v3  ;;  %v1161_v60 = vsel %vm948_vm4, %v1146_v20, %v1160_v48  ;;  %v1173_v61 = vsel %vm948_vm4, %v1157_v27, %v1172_v25 }
 0x24b   : > { %1320 = vmatpush.bf16.xpose.msra.mxu3 %v1311_v58  ;;  %v1368_v62 = vsel %vm1306_vm5, %v1305_v53, 0  ;;  %v1182_v63 = vrot.slane %v1177_v57, 4  ;;  %v1169_v0 = vperm.slane %v1161_v60, %v4845_v3  ;;  %v1241_v1 = vsel %vm948_vm4, %v1240_v50, %v1223_v31 }
 0x24c   : > { %1377 = vmatpush.bf16.xpose.msrb.mxu0 %v1368_v62  ;;  %v1181_v4 = vperm.slane %v1173_v61, %v4845_v3  ;;  %v1304_v6 = vpack.c.bf16 %v1241_v1, %v1241_v1  ;;  %v1184_v11 = vrot.slane %v1165_v59, 4  ;;  %v766_v35 = vperm.slane %v4827_v39, 2 }
 0x24d   : > { %v1183_v2 = vsel %vm948_vm4, %v1182_v63, %v1165_v59  ;;  %v1188_v5 = vrot.slane %v1169_v0, 4 }
 0x24e   : > { %v1298_v8 = vpack.c.bf16 %v1183_v2, %v1183_v2  ;;  %v1349_v10 = vsel %vm1306_vm5, %v1304_v6, 0  ;;  %v1185_v12 = vsel %vm948_vm4, %v1177_v57, %v1184_v11  ;;  %v1186_v14 = vrot.slane %v1181_v4, 4 }
 0x24f   : > { %v1189_v7 = vsel %vm948_vm4, %v1181_v4, %v1188_v5  ;;  %v1299_v13 = vpack.c.bf16 %v1185_v12, %v1185_v12  ;;  %v934_v36 = vadd.f32 %v4834_v45, %v766_v35 }
 0x250   : > { %v1301_v9 = vpack.c.bf16 %v1189_v7, %v1189_v7  ;;  %v1187_v15 = vsel %vm948_vm4, %v1186_v14, %v1169_v0 }
 0x251   : > { %v1300_v16 = vpack.c.bf16 %v1187_v15, %v1187_v15  ;;  %v1082_v7 = vrot.slane %v934_v36, 4 }
 0x252   : > { %3767 = vmatmul.msk.bf16.vlgmr.msra.gmra.mxu3 %vm1306_vm5, %v1298_v8 }
 0x253   : > { %1339 = vmatpush.bf16.xpose.msrb.mxu3 %v1330_v54  ;;  %3770 = vmatmul.msk.bf16.vlgmr.msrb.gmra.mxu0 %vm1306_vm5, %v1301_v9 }
 0x25b   : > { %1358 = vmatpush.bf16.xpose.msra.mxu3 %v1349_v10 }
 0x262   : > { %3768 = vmatmul.msk.bf16.vlgmr.msrb.gmra.mxu3 %vm1306_vm5, %v1299_v13 }
 0x272   : > { %3769 = vmatmul.msk.bf16.vlgmr.msra.gmra.mxu3 %vm1306_vm5, %v1300_v16 }
 0x2d0   : > { %v1379_v19 = vpop.f32.mrf.mxu0 }
 0x2d1   : > { %v1386_v21 = vmul.f32 0.17677669, %v1379_v19 }
 0x2d3   : > { %v1393_v22 = vadd.f32 %v4445_v18, %v1386_v21 }
 0x2d5   : > { %v1404_v23 = vsel %vm1394_vm6, %v1393_v22, -inf  ;;  %v1322_v24 = vpop.f32.mrf.mxu3 }
 0x2d6   : > { %1405 = vmax.xlane.f32.xlu2 %v1404_v23  ;;  %v1383_v25 = vmul.f32 0.17677669, %v1322_v24 }
 0x2d8   : > { %v1381_v26 = vpop.f32.mrf.mxu0  ;;  %v1390_v27 = vadd.f32 %v4445_v18, %v1383_v25 }
 0x2da   : > { %v1395_v28 = vsel %vm1394_vm6, %v1390_v27, -inf }
 0x2dd   : > { %v1324_v29 = vpop.f32.mrf.mxu3 }
 0x2de   : > { %1396 = vmax.xlane.f32.xlu2 %v1395_v28 }
 0x2e5   : > { %v1341_v30 = vpop.f32.mrf.mxu3 }
 0x2e6   : > { %v1384_v31 = vmul.f32 0.17677669, %v1341_v30 }
 0x2e8   : > { %v1391_v32 = vadd.f32 %v4445_v18, %v1384_v31 }
 0x2ea   : > { %v1398_v33 = vsel %vm1394_vm6, %v1391_v32, -inf }
 0x2eb   : > { %1399 = vmax.xlane.f32.xlu0 %v1398_v33 }
 0x2ed   : > { %v1343_v34 = vpop.f32.mrf.mxu3 }
 0x2f5   : > { %v1360_v38 = vpop.f32.mrf.mxu3 }
 0x2f6   : > { %1071 = vrot.lane.b32.xlu2 %v934_v36, %s4630_s25  ;;  %v1385_v20 = vmul.f32 0.17677669, %v1360_v38 }
 0x2f8   : > { %v1392_v40 = vadd.f32 %v4445_v18, %v1385_v20 }
 0x2fa   : > { %v1401_v41 = vsel %vm1394_vm6, %v1392_v40, -inf }
 0x2fb   : > { %1402 = vmax.xlane.f32.xlu1 %v1401_v41 }
 0x2fd   : > { %v1362_v42 = vpop.f32.mrf.mxu3 }
 0x2ff   : > { %1077 = vrot.lane.b32.xlu0 %v934_v36, %s4629_s23 }
 0x314   : > { %1074 = vrot.lane.b32.xlu1 %v934_v36, %s4631_s19 }
 0x349   : > { %v1406_v43 = vpop.xlane.xlu2 %1405 }
 0x34a   : > { %v1410_v47 = vsub.f32 %v1393_v22, %v1406_v43 }
 0x34c   : > { %v1417_v45 = vmul.f32 1.442695, %v1410_v47 }
 0x351   : > { %v1397_v44 = vpop.xlane.xlu2 %1396 }
 0x352   : > { %v1407_v46 = vsub.f32 %v1390_v27, %v1397_v44 }
 0x354   : > { %v1411_v39 = vmul.f32 1.442695, %v1407_v46 }
 0x356   : > { %4464 = vpow2.f32 %v1411_v39 }
 0x357   : > { %4466 = vpow2.f32 %v1417_v45 }
 0x359   : > { %v1072_v63 = vpop.permute.xlu2 %1071 }
 0x35a   : > { %v1094_v1 = vrot.slane %v1072_v63, 4 }
 0x35c   : > { %v4941_v48 = vpop.eup %4464 }
 0x35d   : > { %v1419_v49 = vsel %vm1394_vm6, %v4941_v48, 0.0  ;;  %v4945_v53 = vpop.eup %4466 }
 0x35e   : > { %1420 = vadd.xlane.f32.xlu2 %v1419_v49  ;;  %v1400_v50 = vpop.xlane.xlu0 %1399  ;;  %v1428_v54 = vsel %vm1394_vm6, %v4945_v53, 0.0 }
 0x35f   : > { %v1408_v51 = vsub.f32 %v1391_v32, %v1400_v50 }
 0x361   : > { %v1413_v52 = vmul.f32 1.442695, %v1408_v51 }
 0x363   : > { %4468 = vpow2.f32 %v1413_v52 }
 0x366   : > { %1429 = vadd.xlane.f32.xlu2 %v1428_v54 }
 0x369   : > { %v4949_v55 = vpop.eup %4468 }
 0x36a   : > { %v1422_v57 = vsel %vm1394_vm6, %v4949_v55, 0.0 }
 0x36b   : > { %1423 = vadd.xlane.f32.xlu0 %v1422_v57 }
 0x36e   : > { %v1403_v58 = vpop.xlane.xlu1 %1402 }
 0x36f   : > { %v1409_v59 = vsub.f32 %v1392_v40, %v1403_v58 }
 0x371   : > { %v1415_v60 = vmul.f32 1.442695, %v1409_v59  ;;  %v1078_v0 = vpop.permute.xlu0 %1077 }
 0x372   : > { %v1092_v2 = vrot.slane %v1078_v0, 4  ;;  %v1095_v4 = vsel %vm948_vm4, %v1078_v0, %v1094_v1 }
 0x373   : > { %4470 = vpow2.f32 %v1415_v60  ;;  %v1103_v6 = vperm.slane %v1095_v4, %v4840_v56 }
 0x374   : > { %v1093_v5 = vsel %vm948_vm4, %v1092_v2, %v1072_v63 }
 0x375   : > { %v1099_v8 = vperm.slane %v1093_v5, %v4840_v56  ;;  %v1116_v12 = vrot.slane %v1103_v6, 4 }
 0x377   : > { %v1104_v15 = vrot.slane %v1099_v8, 4 }
 0x379   : > { %v4953_v61 = vpop.eup %4470 }
 0x37a   : > { %v1425_v62 = vsel %vm1394_vm6, %v4953_v61, 0.0 }
 0x37b   : > { %1426 = vadd.xlane.f32.xlu1 %v1425_v62 }
 0x386   : > { %v1075_v9 = vpop.permute.xlu1 %1074 }
 0x387   : > { %v1080_v10 = vrot.slane %v1075_v9, 4  ;;  %v1083_v11 = vsel %vm948_vm4, %v1075_v9, %v1082_v7 }
 0x388   : > { %v1091_v13 = vperm.slane %v1083_v11, %v4840_v56 }
 0x389   : > { %v1081_v14 = vsel %vm948_vm4, %v1080_v10, %v934_v36 }
 0x38a   : > { %v1087_v16 = vperm.slane %v1081_v14, %v4840_v56  ;;  %v1117_v18 = vsel %vm948_vm4, %v1116_v12, %v1091_v13  ;;  %v1118_v19 = vrot.slane %v1091_v13, 4 }
 0x38b   : > { %v1123_v21 = vperm.slane %v1117_v18, %v4845_v3 }
 0x38c   : > { %v1105_v22 = vsel %vm948_vm4, %v1104_v15, %v1087_v16  ;;  %v1106_v23 = vrot.slane %v1087_v16, 4  ;;  %v1119_v24 = vsel %vm948_vm4, %v1103_v6, %v1118_v19 }
 0x38d   : > { %v1111_v25 = vperm.slane %v1105_v22, %v4845_v3  ;;  %v1127_v26 = vperm.slane %v1119_v24, %v4845_v3  ;;  %v1132_v29 = vrot.slane %v1123_v21, 4 }
 0x38e   : > { %v1107_v27 = vsel %vm948_vm4, %v1099_v8, %v1106_v23 }
 0x38f   : > { %v1115_v28 = vperm.slane %v1107_v27, %v4845_v3  ;;  %v1134_v30 = vrot.slane %v1127_v26, 4  ;;  %v1128_v31 = vrot.slane %v1111_v25, 4  ;;  %v1133_v20 = vsel %vm948_vm4, 0.0, %v1132_v29 }
 0x391   : > { %v1130_v32 = vrot.slane %v1115_v28, 4  ;;  %v1135_v33 = vsel %vm948_vm4, 0.0, %v1134_v30  ;;  %v1255_v34 = vsel %vm948_vm4, %v1134_v30, %v1123_v21  ;;  %v1129_v46 = vsel %vm948_vm4, 0.0, %v1128_v31 }
 0x392   : > { %v1259_v35 = vperm.slane %v1255_v34, %v4840_v56  ;;  %v1260_v36 = vrot.slane %v1135_v33, 4 }
 0x393   : > { %v1131_v38 = vsel %vm948_vm4, 0.0, %v1130_v32  ;;  %v1244_v40 = vsel %vm948_vm4, %v1130_v32, %v1111_v25 }
 0x394   : > { %v1249_v41 = vrot.slane %v1131_v38, 4  ;;  %v1261_v42 = vsel %vm948_vm4, %v1260_v36, %v1133_v20  ;;  %v1248_v43 = vperm.slane %v1244_v40, %v4840_v56  ;;  %v1280_v44 = vrot.slane %v1259_v35, 4 }
 0x395   : > { %v1265_v47 = vperm.slane %v1261_v42, %v4840_v56 }
 0x396   : > { %v1250_v39 = vsel %vm948_vm4, %v1249_v41, %v1129_v46  ;;  %v1268_v45 = vrot.slane %v1248_v43, 4 }
 0x397   : > { %v1278_v49 = vrot.slane %v1265_v47, 4  ;;  %v1254_v50 = vperm.slane %v1250_v39, %v4840_v56  ;;  %v1281_v51 = vsel %vm948_vm4, %v1265_v47, %v1280_v44 }
 0x398   : > { %v1289_v52 = vperm.slane %v1281_v51, %v4845_v3 }
 0x399   : > { %v1266_v54 = vrot.slane %v1254_v50, 4  ;;  %v1279_v57 = vsel %vm948_vm4, %v1278_v49, %v1259_v35  ;;  %v1269_v58 = vsel %vm948_vm4, %v1254_v50, %v1268_v45 }
 0x39a   : > { %v1285_v59 = vperm.slane %v1279_v57, %v4845_v3  ;;  %v1277_v60 = vperm.slane %v1269_v58, %v4845_v3  ;;  %v1294_v62 = vrot.slane %v1289_v52, 4 }
 0x39b   : > { %v1267_v63 = vsel %vm948_vm4, %v1266_v54, %v1248_v43 }
 0x39c   : > { %v1273_v0 = vperm.slane %v1267_v63, %v4845_v3  ;;  %v1290_v1 = vrot.slane %v1285_v59, 4  ;;  %v1296_v2 = vrot.slane %v1277_v60, 4  ;;  %v1295_v4 = vsel %vm948_vm4, %v1294_v62, %v1277_v60 }
 0x39d   : > { %v1445_v7 = vpack.c.bf16 %v1295_v4, %v1295_v4 }
 0x39e   : > { %v1291_v5 = vsel %vm948_vm4, %v1290_v1, %v1273_v0  ;;  %v1297_v6 = vsel %vm948_vm4, %v1289_v52, %v1296_v2  ;;  %v1292_v8 = vrot.slane %v1273_v0, 4 }
 0x39f   : > { %v1443_v9 = vpack.c.bf16 %v1291_v5, %v1291_v5  ;;  %v1446_v10 = vpack.c.bf16 %v1297_v6, %v1297_v6  ;;  %v1490_v15 = vsel %vm1450_vm7, %v1445_v7, 0 }
 0x3a0   : > { %v1293_v11 = vsel %vm948_vm4, %v1285_v59, %v1292_v8 }
 0x3a1   : > { %v1452_v12 = vsel %vm1450_vm7, %v1443_v9, 0  ;;  %v1509_v13 = vsel %vm1450_vm7, %v1446_v10, 0  ;;  %v1444_v14 = vpack.c.bf16 %v1293_v11, %v1293_v11 }
 0x3a2   : > { %1461 = vmatpush.bf16.msrb.mxu3 %v1452_v12  ;;  %1518 = vmatpush.bf16.msra.mxu0 %v1509_v13 }
 0x3a3   : > { %v1471_v16 = vsel %vm1450_vm7, %v1444_v14, 0 }
 0x3a4   : > { %1480 = vmatpush.bf16.msrb.mxu2 %v1471_v16 }
 0x3a6   : > { %1499 = vmatpush.bf16.msra.mxu3 %v1490_v15 }
 0x3d1   : > { %v1421_v18 = vpop.xlane.xlu2 %1420 }
 0x3d2   : > { %4472 = vrcp.f32 %v1421_v18 }
 0x3d8   : > { %v4473_v19 = vpop.eup %4472 }
 0x3d9   : > { %v1435_v21 = vmul.f32 %v4473_v19, %v4941_v48  ;;  %v1430_v22 = vpop.xlane.xlu2 %1429 }
 0x3da   : > { %4474 = vrcp.f32 %v1430_v22 }
 0x3db   : > { %v1439_v23 = vpack.c.bf16 %v1435_v21, %v1435_v21 }
 0x3dd   : > { %3771 = vmatmul.msk.bf16.vlgmr.msrb.gmra.mxu3 %vm1394_vm6, %v1439_v23 }
 0x3de   : > { %v1424_v24 = vpop.xlane.xlu0 %1423 }
 0x3df   : > { %4476 = vrcp.f32 %v1424_v24 }
 0x3e0   : > { %v4475_v25 = vpop.eup %4474 }
 0x3e1   : > { %v1438_v26 = vmul.f32 %v4475_v25, %v4945_v53 }
 0x3e3   : > { %v1442_v27 = vpack.c.bf16 %v1438_v26, %v1438_v26 }
 0x3e5   : > { %v4477_v28 = vpop.eup %4476  ;;  %3774 = vmatmul.msk.bf16.vlgmr.msra.gmra.mxu0 %vm1394_vm6, %v1442_v27 }
 0x3e6   : > { %v1436_v29 = vmul.f32 %v4477_v28, %v4949_v55 }
 0x3e8   : > { %v1440_v30 = vpack.c.bf16 %v1436_v29, %v1436_v29 }
 0x3ea   : > { %3772 = vmatmul.msk.bf16.vlgmr.msrb.gmra.mxu2 %vm1394_vm6, %v1440_v30 }
 0x3ee   : > { %v1427_v48 = vpop.xlane.xlu1 %1426 }
 0x3ef   : > { %4478 = vrcp.f32 %v1427_v48 }
 0x3f5   : > { %v4479_v31 = vpop.eup %4478 }
 0x3f6   : > { %v1437_v32 = vmul.f32 %v4479_v31, %v4953_v61 }
 0x3f8   : > { %v1441_v33 = vpack.c.bf16 %v1437_v32, %v1437_v32 }
 0x3fa   : > { %3773 = vmatmul.msk.bf16.vlgmr.msra.gmra.mxu3 %vm1394_vm6, %v1441_v33 }
 0x460   : > { %v1463_v34 = vpop.f32.mrf.mxu3 }
 0x461   : > { %v1526_v44 = vrot.slane %v1463_v34, 4 }
 0x462   : > { %v1520_v35 = vpop.f32.mrf.mxu0 }
 0x463   : > { %v1536_v41 = vrot.slane %v1520_v35, 4 }
 0x468   : > { %v1465_v53 = vpop.f32.mrf.mxu3 }
 0x46a   : > { %v1522_v36 = vpop.f32.mrf.mxu0 }
 0x46d   : > { %v1482_v38 = vpop.f32.mrf.mxu2 }
 0x46e   : > { %v1538_v20 = vrot.slane %v1482_v38, 4  ;;  %v1537_v42 = vsel %vm948_vm4, %v1536_v41, %v1482_v38 }
 0x46f   : > { %v1543_v61 = vperm.slane %v1537_v42, %v4840_v56 }
 0x470   : > { %v1539_v55 = vsel %vm948_vm4, %v1520_v35, %v1538_v20 }
 0x471   : > { %v1547_v43 = vperm.slane %v1539_v55, %v4840_v56  ;;  %v1548_v51 = vrot.slane %v1543_v61, 4 }
 0x473   : > { %v1560_v45 = vrot.slane %v1547_v43, 4 }
 0x475   : > { %v1484_v40 = vpop.f32.mrf.mxu2 }
 0x47d   : > { %v1501_v46 = vpop.f32.mrf.mxu3 }
 0x47e   : > { %v1524_v47 = vrot.slane %v1501_v46, 4  ;;  %v1527_v39 = vsel %vm948_vm4, %v1501_v46, %v1526_v44  ;;  %v4287_v44 = vld [vmem:[#allocation5 + $0x30] sm:$0xff]  ;;  %v4285_v46 = vld [vmem:[#allocation5 + $0x20] sm:$0xff] }
 0x47f   : > { %v1535_v49 = vperm.slane %v1527_v39, %v4840_v56  ;;  %v4283_v39 = vld [vmem:[#allocation5 + $0x10] sm:$0xff] }
 0x480   : > { %v1525_v50 = vsel %vm948_vm4, %v1524_v47, %v1463_v34  ;;  %v4284_v47 = vld [vmem:[#allocation5 + $0x18] sm:$0xff] }
 0x481   : > { %v1531_v52 = vperm.slane %v1525_v50, %v4840_v56  ;;  %v1561_v54 = vsel %vm948_vm4, %v1560_v45, %v1535_v49  ;;  %v1562_v57 = vrot.slane %v1535_v49, 4  ;;  %v4282_v45 = vld [vmem:[#allocation5 + $0x8] sm:$0xff]  ;;  %v4281_v49 = vld [vmem:[#allocation5] sm:$0xff] }
 0x482   : > { %v1567_v58 = vperm.slane %v1561_v54, %v4845_v3 }
 0x483   : > { %v1549_v59 = vsel %vm948_vm4, %v1548_v51, %v1531_v52  ;;  %v1550_v60 = vrot.slane %v1531_v52, 4  ;;  %v1563_v62 = vsel %vm948_vm4, %v1547_v43, %v1562_v57  ;;  %v4288_v43 = vld [vmem:[#allocation5 + $0x38] sm:$0xff] }
 0x484   : > { %v1555_v63 = vperm.slane %v1549_v59, %v4845_v3  ;;  %v1571_v0 = vperm.slane %v1563_v62, %v4845_v3  ;;  %v1576_v5 = vrot.slane %v1567_v58, 4  ;;  %1720 = vmatpush.bf16.msrb.mxu1 %v4288_v43 }
 0x485   : > { %v1551_v1 = vsel %vm948_vm4, %v1543_v61, %v1550_v60  ;;  %v1503_v2 = vpop.f32.mrf.mxu3  ;;  %v4286_v61 = vld [vmem:[#allocation5 + $0x28] sm:$0xff]  ;;  %v4448_v60 = vld [vmem:[%s5599_s7] ss:$0 sm:$0xff] }
 0x486   : > { %v1559_v4 = vperm.slane %v1551_v1, %v4845_v3  ;;  %v1578_v6 = vrot.slane %v1571_v0, 4  ;;  %v1572_v7 = vrot.slane %v1555_v63, 4  ;;  %v1577_v14 = vsel %vm948_vm4, 0.0, %v1576_v5  ;;  %v3865_v2 = vld [vmem:[%s5602_s10 + $0x70] sm:$0xf] }
 0x487   : > { %v4303_v5 = vld [vmem:[%s5602_s10 + $0x74] sm:$0xf] }
 0x488   : > { %v1574_v8 = vrot.slane %v1559_v4, 4  ;;  %v1579_v9 = vsel %vm948_vm4, 0.0, %v1578_v6  ;;  %v1591_v10 = vsel %vm948_vm4, %v1578_v6, %v1567_v58  ;;  %v1573_v22 = vsel %vm948_vm4, 0.0, %v1572_v7  ;;  %1721 = vmatpush.bf16.msrb.mxu1 %v4287_v44  ;;  %v4304_v4 = vld [vmem:[%s5602_s10 + $0x74] sm:$0xf0] }
 0x489   : > { %v1595_v11 = vperm.slane %v1591_v10, %v4840_v56  ;;  %v1596_v12 = vrot.slane %v1579_v9, 4  ;;  %v3866_v6 = vor.u32 %v4304_v4, %v3865_v2  ;;  %v3867_v7 = vld [vmem:[%s5602_s10 + $0x78] sm:$0xf0]  ;;  %v4291_v44 = vld [vmem:[%s5602_s10 + $0x14] sm:$0xf] }
 0x48a   : > { %v1575_v13 = vsel %vm948_vm4, 0.0, %v1574_v8  ;;  %v1580_v15 = vsel %vm948_vm4, %v1574_v8, %v1555_v63 }
 0x48b   : > { %v1597_v16 = vsel %vm948_vm4, %v1596_v12, %v1577_v14  ;;  %v1584_v18 = vperm.slane %v1580_v15, %v4840_v56  ;;  %v1585_v19 = vrot.slane %v1575_v13, 4  ;;  %v1616_v21 = vrot.slane %v1595_v11, 4  ;;  %1867 = vmatpush.bf16.msra.mxu2 %v3866_v6  ;;  %v3857_v12 = vld [vmem:[%s5602_s10 + $0x60] sm:$0xf]  ;;  %v4302_v13 = vld [vmem:[%s5602_s10 + $0x64] sm:$0xf0] }
 0x48c   : > { %v1601_v23 = vperm.slane %v1597_v16, %v4840_v56  ;;  %1722 = vmatpush.bf16.msrb.mxu1 %v4286_v61  ;;  %v4301_v14 = vld [vmem:[%s5602_s10 + $0x64] sm:$0xf]  ;;  %v3858_v15 = vor.u32 %v4302_v13, %v3857_v12  ;;  %v3859_v16 = vld [vmem:[%s5602_s10 + $0x68] sm:$0xf0]  ;;  %v3819_v61 = vld [vmem:[%s5602_s10 + $0x18] sm:$0xf0] }
 0x48d   : > { %v1586_v24 = vsel %vm948_vm4, %v1585_v19, %v1573_v22  ;;  %v1604_v25 = vrot.slane %v1584_v18, 4  ;;  %v3849_v19 = vld [vmem:[%s5602_s10 + $0x50] sm:$0xf]  ;;  %v4299_v22 = vld [vmem:[%s5602_s10 + $0x54] sm:$0xf] }
 0x48e   : > { %v1590_v26 = vperm.slane %v1586_v24, %v4840_v56  ;;  %v1617_v27 = vsel %vm948_vm4, %v1601_v23, %v1616_v21  ;;  %v1614_v28 = vrot.slane %v1601_v23, 4  ;;  %v4300_v21 = vld [vmem:[%s5602_s10 + $0x54] sm:$0xf0]  ;;  %v3851_v24 = vld [vmem:[%s5602_s10 + $0x58] sm:$0xf0] }
 0x48f   : > { %v1625_v29 = vperm.slane %v1617_v27, %v4845_v3  ;;  %1868 = vmatpush.bf16.msra.mxu2 %v3858_v15  ;;  %v3850_v23 = vor.u32 %v4300_v21, %v3849_v19  ;;  %v4298_v27 = vld [vmem:[%s5602_s10 + $0x44] sm:$0xf0]  ;;  %v4316_v19 = vld [vmem:[#allocation7 + $0x58] sm:$0xff]  ;;  %v4307_v21 = vld [vmem:[#allocation7 + $0x10] sm:$0xff] }
 0x490   : > { %v1605_v30 = vsel %vm948_vm4, %v1590_v26, %v1604_v25  ;;  %v1602_v48 = vrot.slane %v1590_v26, 4  ;;  %v1615_v31 = vsel %vm948_vm4, %v1614_v28, %v1595_v11  ;;  %1723 = vmatpush.bf16.msrb.mxu1 %v4285_v46  ;;  %v3854_v25 = vor.u32 %v4299_v22, %v3851_v24  ;;  %v3841_v26 = vld [vmem:[%s5602_s10 + $0x40] sm:$0xf]  ;;  %v4297_v28 = vld [vmem:[%s5602_s10 + $0x44] sm:$0xf]  ;;  %v4318_v15 = vld [vmem:[#allocation7 + $0x68] sm:$0xff] }
 0x491   : > { %v1613_v32 = vperm.slane %v1605_v30, %v4845_v3  ;;  %v1630_v33 = vrot.slane %v1625_v29, 4  ;;  %v1621_v34 = vperm.slane %v1615_v31, %v4845_v3  ;;  %v3843_v30 = vld [vmem:[%s5602_s10 + $0x48] sm:$0xf0]  ;;  %v3833_v31 = vld [vmem:[%s5602_s10 + $0x30] sm:$0xf] }
 0x492   : > { %v1603_v35 = vsel %vm948_vm4, %v1602_v48, %v1584_v18  ;;  %v3862_v18 = vor.u32 %v4301_v14, %v3859_v16  ;;  %v3846_v48 = vor.u32 %v4297_v28, %v3843_v30  ;;  %v4310_v14 = vld [vmem:[#allocation7 + $0x28] sm:$0xff]  ;;  %v4309_v16 = vld [vmem:[#allocation7 + $0x20] sm:$0xff]  ;;  %v4315_v22 = vld [vmem:[#allocation7 + $0x50] sm:$0xff] }
 0x493   : > { %v1631_v53 = vsel %vm948_vm4, %v1630_v33, %v1613_v32  ;;  %v1632_v36 = vrot.slane %v1613_v32, 4  ;;  %v1609_v38 = vperm.slane %v1603_v35, %v4845_v3  ;;  %v1626_v20 = vrot.slane %v1621_v34, 4  ;;  %1869 = vmatpush.bf16.msra.mxu2 %v3850_v23  ;;  %v4296_v32 = vld [vmem:[%s5602_s10 + $0x34] sm:$0xf0]  ;;  %v4295_v33 = vld [vmem:[%s5602_s10 + $0x34] sm:$0xf] }
 0x494   : > { %1639 = vrot.lane.b32.xlu2 %v1631_v53, %s4631_s19  ;;  %1724 = vmatpush.bf16.msrb.mxu1 %v4284_v47  ;;  %v3835_v35 = vld [vmem:[%s5602_s10 + $0x38] sm:$0xf0]  ;;  %v3822_v47 = vor.u32 %v4291_v44, %v3819_v61  ;;  %v4306_v23 = vld [vmem:[#allocation7 + $0x8] sm:$0xff] }
 0x495   : > { %v1633_v40 = vsel %vm948_vm4, %v1625_v29, %v1632_v36  ;;  %v1628_v41 = vrot.slane %v1609_v38, 4  ;;  %v1627_v55 = vsel %vm948_vm4, %v1626_v20, %v1609_v38  ;;  %v3842_v29 = vor.u32 %v4298_v27, %v3841_v26  ;;  %v3825_v36 = vld [vmem:[%s5602_s10 + $0x20] sm:$0xf]  ;;  %v4294_v38 = vld [vmem:[%s5602_s10 + $0x24] sm:$0xf0] }
 0x496   : > { %1643 = vrot.lane.b32.xlu0 %v1633_v40, %s4630_s25  ;;  %v3838_v53 = vor.u32 %v4295_v33, %v3835_v35  ;;  %v4293_v20 = vld [vmem:[%s5602_s10 + $0x24] sm:$0xf]  ;;  %v3826_v40 = vor.u32 %v4294_v38, %v3825_v36  ;;  %v4314_v24 = vld [vmem:[#allocation7 + $0x48] sm:$0xff]  ;;  %v1781_v27 = vld [vmem:[%s5603_s11] sm:$0x3] }
 0x497   : > { %v1629_v42 = vsel %vm948_vm4, %v1621_v34, %v1628_v41  ;;  %1870 = vmatpush.bf16.msra.mxu2 %v3842_v29  ;;  %v3834_v34 = vor.u32 %v4296_v32, %v3833_v31  ;;  %v3827_v41 = vld [vmem:[%s5602_s10 + $0x28] sm:$0xf0]  ;;  %v4313_v26 = vld [vmem:[#allocation7 + $0x40] sm:$0xff]  ;;  %v1783_v28 = vperm.slane %v1781_v27, 0  ;;  %v1784_v29 = vperm.slane %v1781_v27, 1 }
 0x498   : > { %1635 = vrot.lane.b32.xlu1 %v1629_v42, %s4629_s23  ;;  %1725 = vmatpush.bf16.msrb.mxu1 %v4283_v39  ;;  %v4292_v42 = vld [vmem:[%s5602_s10 + $0x14] sm:$0xf0]  ;;  %v3830_v43 = vor.u32 %v4293_v20, %v3827_v41  ;;  %v3809_v39 = vld [vmem:[%s5602_s10] sm:$0xf] }
 0x499   : > { %v4336_v27 = vld [vmem:[#allocation3 + $0x13c] sm:$0xf] }
 0x49b   : > { %1871 = vmatpush.bf16.msra.mxu2 %v3834_v34 }
 0x49c   : > { %1726 = vmatpush.bf16.msrb.mxu1 %v4282_v45  ;;  %v4290_v45 = vld [vmem:[%s5602_s10 + $0x4] sm:$0xf0] }
 0x49f   : > { %1872 = vmatpush.bf16.msra.mxu2 %v3826_v40 }
 0x4a0   : > { %1727 = vmatpush.bf16.msrb.mxu1 %v4281_v49  ;;  %v4289_v49 = vld [vmem:[%s5602_s10 + $0x4] sm:$0xf] }
 0x4ee   : > { %v1640_v51 = vpop.permute.xlu2 %1639 }
 0x508   : > { %v1644_v54 = vpop.permute.xlu0 %1643 }
 0x50a   : > { %v1636_v50 = vpop.permute.xlu1 %1635 }
 0x50b   : > { %v1646_v52 = vsel %vm1306_vm5, %v1627_v55, %v1636_v50  ;;  %v3817_v55 = vld [vmem:[%s5602_s10 + $0x10] sm:$0xf]  ;;  %v3811_v50 = vld [vmem:[%s5602_s10 + $0x8] sm:$0xf0] }
 0x50c   : > { %v1648_v57 = vsel %vm1647_vm8, %v1646_v52, %v1640_v51  ;;  %v3818_v46 = vor.u32 %v4292_v42, %v3817_v55  ;;  %v3810_v51 = vor.u32 %v4290_v45, %v3809_v39  ;;  %v4312_v52 = vld [vmem:[#allocation7 + $0x38] sm:$0xff] }
 0x50d   : > { %v1650_v58 = vsel %vm1649_vm9, %v1648_v57, %v1644_v54  ;;  %v4320_v54 = vld [vmem:[#allocation7 + $0x78] sm:$0xff]  ;;  %2045 = vmatpush.bf16.msrb.mxu0 %v4312_v52 }
 0x50e   : > { %v1651_v59 = vpack.c.bf16 %v1650_v58, %v1650_v58  ;;  %1873 = vmatpush.bf16.msra.mxu2 %v3818_v46  ;;  %v3814_v58 = vor.u32 %v4289_v49, %v3811_v50  ;;  %2058 = vmatpush.bf16.msra.mxu1 %v4320_v54  ;;  %v4451_v54 = vld [vmem:[%s5605_s13] ss:$0 sm:$0xff] }
 0x510   : > { %1728 = vmatmul.bf16.vlgmr.msrb.gmra.mxu1 %v1651_v59 }
 0x512   : > { %1874 = vmatpush.bf16.msra.mxu2 %v3810_v51 }
 0x58d   : > { %v1729_v62 = vpop.f32.mrf.mxu1 }
 0x58e   : > { %v1730_v63 = vadd.f32 %v4448_v60, %v1729_v62  ;;  %v4311_v60 = vld [vmem:[#allocation7 + $0x30] sm:$0xff] }
 0x58f   : > { %v4319_v62 = vld [vmem:[#allocation7 + $0x70] sm:$0xff]  ;;  %2046 = vmatpush.bf16.msrb.mxu0 %v4311_v60 }
 0x590   : > { %v1733_v0 = vadd.f32 %v1730_v63, %v4820_v37  ;;  %v3870_v37 = vor.u32 %v4303_v5, %v3867_v7  ;;  %2059 = vmatpush.bf16.msra.mxu1 %v4319_v62  ;;  %v4449_v7 = vld [vmem:[%s5600_s8] ss:$0 sm:$0xff] }
 0x592   : > { %1736 = vadd.xlane.f32.xlu1 %v1733_v0  ;;  %1880 = vmatpush.bf16.msrb.mxu3 %v3870_v37 }
 0x593   : > { %2047 = vmatpush.bf16.msrb.mxu0 %v4310_v14 }
 0x594   : > { %2060 = vmatpush.bf16.msra.mxu1 %v4318_v15  ;;  %v4010_v15 = vld [vmem:[#allocation3 + $0x150] sm:$0xf] }
 0x595   : > { %v1731_v1 = vpop.f32.mrf.mxu1 }
 0x596   : > { %1881 = vmatpush.bf16.msrb.mxu3 %v3862_v18  ;;  %v4317_v18 = vld [vmem:[#allocation7 + $0x60] sm:$0xff] }
 0x597   : > { %2048 = vmatpush.bf16.msrb.mxu0 %v4309_v16  ;;  %v4340_v16 = vld [vmem:[#allocation3 + $0x158] sm:$0xf0] }
 0x598   : > { %2061 = vmatpush.bf16.msra.mxu1 %v4317_v18  ;;  %v4339_v18 = vld [vmem:[#allocation3 + $0x154] sm:$0xf] }
 0x59a   : > { %1882 = vmatpush.bf16.msrb.mxu3 %v3854_v25  ;;  %v4305_v25 = vld [vmem:[#allocation7] sm:$0xff] }
 0x59c   : > { %2062 = vmatpush.bf16.msra.mxu1 %v4316_v19  ;;  %v4012_v19 = vld [vmem:[#allocation3 + $0x15c] sm:$0xf0] }
 0x59e   : > { %1883 = vmatpush.bf16.msrb.mxu3 %v3846_v48 }
 0x5a0   : > { %2063 = vmatpush.bf16.msra.mxu1 %v4315_v22  ;;  %v4341_v22 = vld [vmem:[#allocation3 + $0x160] sm:$0xf0] }
 0x5a2   : > { %1884 = vmatpush.bf16.msrb.mxu3 %v3838_v53 }
 0x5a4   : > { %2064 = vmatpush.bf16.msra.mxu1 %v4314_v24 }
 0x5a6   : > { %1885 = vmatpush.bf16.msrb.mxu3 %v3830_v43 }
 0x5a8   : > { %2065 = vmatpush.bf16.msra.mxu1 %v4313_v26  ;;  %v4337_v26 = vld [vmem:[#allocation3 + $0x140] sm:$0xf0] }
 0x5aa   : > { %1886 = vmatpush.bf16.msrb.mxu3 %v3822_v47 }
 0x5ae   : > { %1887 = vmatpush.bf16.msrb.mxu3 %v3814_v58 }
 0x605   : > { %v1737_v8 = vpop.xlane.xlu1 %1736 }
 0x606   : > { %v1738_v9 = vmul.f32 %v1737_v8, %v4805_v17 }
 0x608   : > { %v5072_v10 = vsub.f32 %v1733_v0, %v1738_v9  ;;  %v4450_v9 = vld [vmem:[%s5601_s9] ss:$0 sm:$0xff] }
 0x60a   : > { %v1740_v11 = vmul.f32 %v5072_v10, %v5072_v10 }
 0x60c   : > { %1741 = vadd.xlane.f32.xlu0 %v1740_v11 }
 0x67f   : > { %v1742_v57 = vpop.xlane.xlu0 %1741 }
 0x680   : > { %v1743_v59 = vmul.f32 %v1742_v57, %v4805_v17 }
 0x682   : > { %v1744_v63 = vadd.f32 1e-05, %v1743_v59 }
 0x684   : > { %4480 = vrsqrt.f32 %v1744_v63  ;;  %vm1751_vm11 = vweird.f32 %v1744_v63 }
 0x68a   : > { %v4481_v0 = vpop.eup %4480 }
 0x68b   : > { %v1746_v1 = vmul.f32 %v4481_v0, %v1744_v63  ;;  %vm1752_vm10 = vweird.f32 %v4481_v0 }
 0x68c   : > { %vm1753_vm12 = vmor %vm1751_vm11, %vm1752_vm10 }
 0x68d   : > { %v1747_v2 = vmul.f32 %v4481_v0, %v1746_v1  ;;  %v4022_v1 = vld [vmem:[#allocation3 + $0x168] sm:$0xf] }
 0x68f   : > { %v1748_v4 = vmul.f32 0.5, %v1747_v2  ;;  %v4343_v2 = vld [vmem:[#allocation3 + $0x170] sm:$0xf0] }
 0x691   : > { %v1749_v5 = vsub.f32 1.5, %v1748_v4  ;;  %v4342_v4 = vld [vmem:[#allocation3 + $0x16c] sm:$0xf] }
 0x693   : > { %v1750_v6 = vmul.f32 %v4481_v0, %v1749_v5  ;;  %v4023_v5 = vor.u32 %v4343_v2, %v4022_v1  ;;  %v3952_v1 = vld [vmem:[#allocation3 + $0xe4] sm:$0xf0]  ;;  %v3958_v2 = vld [vmem:[#allocation3 + $0xe0] sm:$0xf] }
 0x695   : > { %v1754_v37 = vsel %vm1753_vm12, %v4481_v0, %v1750_v6  ;;  %v4024_v6 = vld [vmem:[#allocation3 + $0x174] sm:$0xf0]  ;;  %2273 = vmatpush.bf16.msrb.mxu2 %v4023_v5 }
 0x696   : > { %v1755_v8 = vmul.f32 %v1754_v37, %v5072_v10  ;;  %v4308_v10 = vld [vmem:[#allocation7 + $0x18] sm:$0xff] }
 0x697   : > { %2049 = vmatpush.bf16.msrb.mxu0 %v4308_v10  ;;  %v4344_v37 = vld [vmem:[#allocation3 + $0x178] sm:$0xf0]  ;;  %v4011_v10 = vor.u32 %v4340_v16, %v4010_v15 }
 0x698   : > { %v1759_v11 = vmul.f32 %v4449_v7, %v1755_v8  ;;  %v4030_v7 = vld [vmem:[#allocation3 + $0x170] sm:$0xf]  ;;  %v4027_v8 = vor.u32 %v4342_v4, %v4024_v6  ;;  %v4326_v4 = vld [vmem:[#allocation3 + $0xe8] sm:$0xf0] }
 0x699   : > { %2274 = vmatpush.bf16.msrb.mxu2 %v4011_v10 }
 0x69a   : > { %v5168_v12 = vadd.f32 %v4450_v9, %v1759_v11  ;;  %v4031_v9 = vor.u32 %v4344_v37, %v4030_v7  ;;  %2286 = vmatpush.bf16.msra.mxu3 %v4027_v8  ;;  %v3959_v7 = vor.u32 %v4326_v4, %v3958_v2  ;;  %v3938_v37 = vld [vmem:[#allocation3 + $0xc0] sm:$0xf]  ;;  %v4322_v8 = vld [vmem:[#allocation3 + $0xc8] sm:$0xf0] }
 0x69b   : > { %2050 = vmatpush.bf16.msrb.mxu0 %v4307_v21  ;;  %v4018_v21 = vld [vmem:[#allocation3 + $0x158] sm:$0xf]  ;;  %v3939_v15 = vor.u32 %v4322_v8, %v3938_v37 }
 0x69c   : > { %v1764_v13 = vpack.c.bf16 %v5168_v12, %v5168_v12  ;;  %v4019_v24 = vor.u32 %v4341_v22, %v4018_v21 }
 0x69e   : > { %1875 = vmatmul.bf16.vlgmr.msra.gmra.mxu2 %v1764_v13  ;;  %1888 = vmatmul.bf16.vlgmr.msrb.gmra.mxu3 %v1764_v13 }
 0x69f   : > { %2051 = vmatpush.bf16.msrb.mxu0 %v4306_v23  ;;  %v4015_v23 = vor.u32 %v4339_v18, %v4012_v19 }
 0x6a1   : > { %2287 = vmatpush.bf16.msra.mxu3 %v4015_v23 }
 0x6a3   : > { %2052 = vmatpush.bf16.msrb.mxu0 %v4305_v25  ;;  %v3998_v25 = vld [vmem:[#allocation3 + $0x138] sm:$0xf] }
 0x6a7   : > { %2299 = vmatpush.bf16.msra.mxu0 %v4031_v9  ;;  %v4321_v9 = vld [vmem:[#allocation3 + $0xc4] sm:$0xf] }
 0x6ab   : > { %2300 = vmatpush.bf16.msra.mxu0 %v4019_v24 }
 0x721   : > { %v1876_v30 = vpop.f32.mrf.mxu2  ;;  %v1889_v48 = vpop.f32.mrf.mxu3 }
 0x722   : > { %v1877_v31 = vadd.f32 %v1876_v30, %v1783_v28  ;;  %v1890_v32 = vadd.f32 %v1889_v48, %v1784_v29  ;;  %v3999_v28 = vor.u32 %v4337_v26, %v3998_v25  ;;  %v4000_v29 = vld [vmem:[#allocation3 + $0x144] sm:$0xf0]  ;;  %v4006_v30 = vld [vmem:[#allocation3 + $0x140] sm:$0xf]  ;;  %v4338_v48 = vld [vmem:[#allocation3 + $0x148] sm:$0xf0] }
 0x724   : > { %v1895_v33 = vmul.f32 0.044715, %v1877_v31  ;;  %v1896_v34 = vmul.f32 0.044715, %v1890_v32  ;;  %v1893_v46 = vmul.f32 0.5, %v1877_v31  ;;  %v1894_v39 = vmul.f32 0.5, %v1890_v32  ;;  %2275 = vmatpush.bf16.msrb.mxu2 %v3999_v28 }
 0x725   : > { %v4452_v28 = vld [vmem:[%s5606_s14] ss:$0 sm:$0xff] }
 0x726   : > { %v1897_v35 = vmul.f32 %v1895_v33, %v1877_v31  ;;  %v1898_v53 = vmul.f32 %v1896_v34, %v1890_v32  ;;  %v3986_v33 = vld [vmem:[#allocation3 + $0x120] sm:$0xf]  ;;  %v4334_v34 = vld [vmem:[#allocation3 + $0x128] sm:$0xf0] }
 0x728   : > { %v1899_v36 = vmul.f32 %v1897_v35, %v1877_v31  ;;  %v1900_v38 = vmul.f32 %v1898_v53, %v1890_v32  ;;  %v4333_v35 = vld [vmem:[#allocation3 + $0x124] sm:$0xf]  ;;  %v3987_v53 = vor.u32 %v4334_v34, %v3986_v33 }
 0x729   : > { %v1878_v20 = vpop.f32.mrf.mxu2  ;;  %v1891_v40 = vpop.f32.mrf.mxu3 }
 0x72a   : > { %v1901_v41 = vadd.f32 %v1899_v36, %v1877_v31  ;;  %v1902_v55 = vadd.f32 %v1900_v38, %v1890_v32  ;;  %v4003_v31 = vor.u32 %v4336_v27, %v4000_v29  ;;  %v4007_v32 = vor.u32 %v4338_v48, %v4006_v30  ;;  %v3988_v36 = vld [vmem:[#allocation3 + $0x12c] sm:$0xf0]  ;;  %v3994_v38 = vld [vmem:[#allocation3 + $0x128] sm:$0xf]  ;;  %v4335_v20 = vld [vmem:[#allocation3 + $0x130] sm:$0xf0]  ;;  %2276 = vmatpush.bf16.msrb.mxu2 %v3987_v53 }
 0x72b   : > { %v3991_v40 = vor.u32 %v4333_v35, %v3988_v36  ;;  %v4453_v48 = vld [vmem:[%s5607_s15] ss:$0 sm:$0xff]  ;;  %v5201_v35 = vld [vmem:[%s5597_s5 + $0x3] sm:$0x7] }
 0x72c   : > { %v1903_v42 = vmul.f32 0.7978846, %v1901_v41  ;;  %v1904_v43 = vmul.f32 0.7978846, %v1902_v55  ;;  %2288 = vmatpush.bf16.msra.mxu3 %v4003_v31  ;;  %2301 = vmatpush.bf16.msra.mxu0 %v4007_v32  ;;  %v3995_v41 = vor.u32 %v4335_v20, %v3994_v38  ;;  %v3974_v55 = vld [vmem:[#allocation3 + $0x108] sm:$0xf] }
 0x72e   : > { %4482 = vtanh.f32 %v1903_v42  ;;  %v4331_v42 = vld [vmem:[#allocation3 + $0x110] sm:$0xf0] }
 0x72f   : > { %4484 = vtanh.f32 %v1904_v43  ;;  %v4330_v43 = vld [vmem:[#allocation3 + $0x10c] sm:$0xf] }
 0x730   : > { %2289 = vmatpush.bf16.msra.mxu3 %v3991_v40  ;;  %2302 = vmatpush.bf16.msra.mxu0 %v3995_v41  ;;  %v2139_v40 = vperm.slane %v5201_v35, 0 }
 0x734   : > { %v4483_v44 = vpop.eup %4482 }
 0x735   : > { %v4485_v61 = vpop.eup %4484  ;;  %v1907_v47 = vadd.f32 1.0, %v4483_v44  ;;  %v3975_v44 = vor.u32 %v4331_v42, %v3974_v55 }
 0x736   : > { %v1908_v45 = vadd.f32 1.0, %v4485_v61  ;;  %v3976_v61 = vld [vmem:[#allocation3 + $0x114] sm:$0xf0] }
 0x737   : > { %v1909_v49 = vmul.f32 %v1907_v47, %v1893_v46  ;;  %v3982_v46 = vld [vmem:[#allocation3 + $0x110] sm:$0xf]  ;;  %v4332_v47 = vld [vmem:[#allocation3 + $0x118] sm:$0xf0]  ;;  %2277 = vmatpush.bf16.msrb.mxu2 %v3975_v44 }
 0x738   : > { %v1910_v50 = vmul.f32 %v1908_v45, %v1894_v39  ;;  %v3979_v39 = vor.u32 %v4330_v43, %v3976_v61  ;;  %v3983_v45 = vor.u32 %v4332_v47, %v3982_v46 }
 0x739   : > { %v1911_v51 = vpack.c.bf16 %v1909_v49, %v1909_v49  ;;  %v3962_v49 = vld [vmem:[#allocation3 + $0xf0] sm:$0xf] }
 0x73a   : > { %v1912_v52 = vpack.c.bf16 %v1910_v50, %v1910_v50  ;;  %v4328_v50 = vld [vmem:[#allocation3 + $0xf8] sm:$0xf0]  ;;  %2290 = vmatpush.bf16.msra.mxu3 %v3979_v39  ;;  %2303 = vmatpush.bf16.msra.mxu0 %v3983_v45 }
 0x73b   : > { %2053 = vmatmul.bf16.vlgmr.msrb.gmra.mxu0 %v1911_v51  ;;  %v4327_v51 = vld [vmem:[#allocation3 + $0xf4] sm:$0xf] }
 0x73c   : > { %2066 = vmatmul.bf16.vlgmr.msra.gmra.mxu1 %v1912_v52  ;;  %v3963_v52 = vor.u32 %v4328_v50, %v3962_v49 }
 0x73e   : > { %2278 = vmatpush.bf16.msrb.mxu2 %v3963_v52 }
 0x7b8   : > { %v2054_v57 = vpop.f32.mrf.mxu0 }
 0x7b9   : > { %v2055_v58 = vadd.f32 %v4451_v54, %v2054_v57  ;;  %v2067_v59 = vpop.f32.mrf.mxu1  ;;  %v3964_v54 = vld [vmem:[#allocation3 + $0xfc] sm:$0xf0]  ;;  %v3970_v57 = vld [vmem:[#allocation3 + $0xf8] sm:$0xf] }
 0x7bb   : > { %v2068_v60 = vadd.f32 %v2067_v59, %v2055_v58  ;;  %v4329_v58 = vld [vmem:[#allocation3 + $0x100] sm:$0xf0]  ;;  %v3967_v59 = vor.u32 %v4327_v51, %v3964_v54 }
 0x7bd   : > { %v2071_v62 = vadd.f32 %v2068_v60, %v5168_v12  ;;  %v3971_v60 = vor.u32 %v4329_v58, %v3970_v57  ;;  %2291 = vmatpush.bf16.msra.mxu3 %v3967_v59 }
 0x7bf   : > { %2074 = vadd.xlane.f32.xlu2 %v2071_v62  ;;  %2304 = vmatpush.bf16.msra.mxu0 %v3971_v60 }
 0x7c0   : > { %v2056_v63 = vpop.f32.mrf.mxu0 }
 0x7c1   : > { %v2069_v0 = vpop.f32.mrf.mxu1  ;;  %v4325_v63 = vld [vmem:[#allocation3 + $0xe0] sm:$0xf0] }
 0x7c2   : > { %v4324_v0 = vld [vmem:[#allocation3 + $0xdc] sm:$0xf] }
 0x7c3   : > { %v3955_v6 = vor.u32 %v4324_v0, %v3952_v1  ;;  %2305 = vmatpush.bf16.msra.mxu0 %v3959_v7 }
 0x7c5   : > { %2292 = vmatpush.bf16.msra.mxu3 %v3955_v6 }
 0x832   : > { %v2075_v11 = vpop.xlane.xlu2 %2074 }
 0x833   : > { %v2076_v13 = vmul.f32 %v2075_v11, %v4805_v17  ;;  %v3940_v11 = vld [vmem:[#allocation3 + $0xcc] sm:$0xf0] }
 0x834   : > { %v3943_v18 = vor.u32 %v4321_v9, %v3940_v11 }
 0x835   : > { %v5180_v14 = vsub.f32 %v2071_v62, %v2076_v13  ;;  %v3950_v62 = vld [vmem:[#allocation3 + $0xd8] sm:$0xf]  ;;  %v3946_v13 = vld [vmem:[#allocation3 + $0xc8] sm:$0xf] }
 0x836   : > { %v3951_v5 = vor.u32 %v4325_v63, %v3950_v62  ;;  %2293 = vmatpush.bf16.msra.mxu3 %v3943_v18 }
 0x837   : > { %v2078_v12 = vmul.f32 %v5180_v14, %v5180_v14 }
 0x838   : > { %2279 = vmatpush.bf16.msrb.mxu2 %v3951_v5 }
 0x839   : > { %2079 = vadd.xlane.f32.xlu1 %v2078_v12  ;;  %v4323_v12 = vld [vmem:[#allocation3 + $0xd0] sm:$0xf0] }
 0x83a   : > { %v3947_v10 = vor.u32 %v4323_v12, %v3946_v13 }
 0x83c   : > { %2280 = vmatpush.bf16.msrb.mxu2 %v3939_v15  ;;  %2306 = vmatpush.bf16.msra.mxu0 %v3947_v10 }
 0x8ac   : > { %v2080_v16 = vpop.xlane.xlu1 %2079 }
 0x8ad   : > { %v2081_v19 = vmul.f32 %v2080_v16, %v4805_v17 }
 0x8af   : > { %v2082_v21 = vadd.f32 1e-05, %v2081_v19 }
 0x8b1   : > { %4486 = vrsqrt.f32 %v2082_v21  ;;  %vm2089_vm14 = vweird.f32 %v2082_v21 }
 0x8b7   : > { %v4487_v22 = vpop.eup %4486 }
 0x8b8   : > { %v2084_v23 = vmul.f32 %v4487_v22, %v2082_v21  ;;  %vm2090_vm13 = vweird.f32 %v4487_v22 }
 0x8b9   : > { %vm2091_vm15 = vmor %vm2089_vm14, %vm2090_vm13 }
 0x8ba   : > { %v2085_v24 = vmul.f32 %v4487_v22, %v2084_v23 }
 0x8bc   : > { %v2086_v25 = vmul.f32 0.5, %v2085_v24 }
 0x8be   : > { %v2087_v26 = vsub.f32 1.5, %v2086_v25 }
 0x8c0   : > { %v2088_v27 = vmul.f32 %v4487_v22, %v2087_v26 }
 0x8c2   : > { %v2092_v29 = vsel %vm2091_vm15, %v4487_v22, %v2088_v27 }
 0x8c3   : > { %v2093_v30 = vmul.f32 %v2092_v29, %v5180_v14  ;;  %v2140_v14 = vperm.slane %v5201_v35, 1 }
 0x8c5   : > { %v2097_v31 = vmul.f32 %v4452_v28, %v2093_v30 }
 0x8c7   : > { %v5192_v32 = vadd.f32 %v4453_v48, %v2097_v31 }
 0x8c9   : > { %v2102_v33 = vpack.c.bf16 %v5192_v32, %v5192_v32 }
 0x8cb   : > { %2281 = vmatmul.bf16.vlgmr.msrb.gmra.mxu2 %v2102_v33  ;;  %2294 = vmatmul.bf16.vlgmr.msra.gmra.mxu3 %v2102_v33 }
 0x8cc   : > { %2307 = vmatmul.bf16.vlgmr.msra.gmra.mxu0 %v2102_v33 }
 0x949   : > { %v5196_v34 = vpop.f32.mrf.mxu0 }
 0x94e   : > { %v2282_v53 = vpop.f32.mrf.mxu2  ;;  %v2295_v36 = vpop.f32.mrf.mxu3 }
 0x94f   : > { %v2296_v38 = vadd.f32 %v2295_v36, %v2140_v14  ;;  %v2283_v42 = vadd.f32 %v2282_v53, %v2139_v40 }
 0x951   : > { %v2310_v20 = vpop.f32.mrf.mxu0  ;;  %2385 = vrot.lane.b32.xlu1 %v2296_v38, %s4629_s23  ;;  %2382 = vrot.lane.b32.xlu2 %v2296_v38, %s4631_s19  ;;  %v2390_v61 = vrot.slane %v2296_v38, 4  ;;  %v2324_v0 = vrot.slane %v2283_v42, 4 }
 0x952   : > { %2379 = vrot.lane.b32.xlu0 %v2296_v38, %s4630_s25 }
 0x956   : > { %v2284_v41 = vpop.f32.mrf.mxu2  ;;  %v2297_v55 = vpop.f32.mrf.mxu3 }
 0x959   : > { %2316 = vrot.lane.b32.xlu2 %v2283_v42, %s4631_s19 }
 0x95a   : > { %2313 = vrot.lane.b32.xlu0 %v2283_v42, %s4630_s25 }
 0x962   : > { %2319 = vrot.lane.b32.xlu0 %v2283_v42, %s4629_s23 }
 0x9ab   : > { %v2383_v43 = vpop.permute.xlu2 %2382 }
 0x9ac   : > { %v2388_v44 = vrot.slane %v2383_v43, 4  ;;  %v2391_v47 = vsel %vm948_vm4, %v2383_v43, %v2390_v61 }
 0x9ad   : > { %v2399_v49 = vperm.slane %v2391_v47, %v4840_v56 }
 0x9ae   : > { %v2389_v46 = vsel %vm948_vm4, %v2388_v44, %v2296_v38 }
 0x9af   : > { %v2395_v39 = vperm.slane %v2389_v46, %v4840_v56  ;;  %v2426_v60 = vrot.slane %v2399_v49, 4 }
 0x9b1   : > { %v2414_v57 = vrot.slane %v2395_v39, 4 }
 0x9b3   : > { %v2317_v62 = vpop.permute.xlu2 %2316 }
 0x9b4   : > { %v2325_v7 = vsel %vm948_vm4, %v2317_v62, %v2324_v0  ;;  %v2322_v9 = vrot.slane %v2317_v62, 4 }
 0x9b5   : > { %v2333_v10 = vperm.slane %v2325_v7, %v4840_v56 }
 0x9b6   : > { %v2323_v27 = vsel %vm948_vm4, %v2322_v9, %v2283_v42 }
 0x9b7   : > { %v2329_v38 = vperm.slane %v2323_v27, %v4840_v56  ;;  %v2360_v55 = vrot.slane %v2333_v10, 4 }
 0x9c3   : > { %v2386_v45 = vpop.permute.xlu1 %2385 }
 0x9c4   : > { %v2400_v50 = vrot.slane %v2386_v45, 4  ;;  %v2380_v51 = vpop.permute.xlu0 %2379 }
 0x9c5   : > { %v2402_v52 = vrot.slane %v2380_v51, 4 }
 0x9c6   : > { %v2401_v54 = vsel %vm948_vm4, %v2400_v50, %v2380_v51 }
 0x9c7   : > { %v2403_v58 = vsel %vm948_vm4, %v2386_v45, %v2402_v52  ;;  %v2407_v59 = vperm.slane %v2401_v54, %v4840_v56  ;;  %v2348_v52 = vrot.slane %v2329_v38, 4 }
 0x9c8   : > { %v2411_v63 = vperm.slane %v2403_v58, %v4840_v56 }
 0x9c9   : > { %v2412_v1 = vrot.slane %v2407_v59, 4  ;;  %v2415_v2 = vsel %vm948_vm4, %v2407_v59, %v2414_v57 }
 0x9ca   : > { %v2423_v4 = vperm.slane %v2415_v2, %v4845_v3  ;;  %v2424_v5 = vrot.slane %v2411_v63, 4  ;;  %v2427_v6 = vsel %vm948_vm4, %v2411_v63, %v2426_v60 }
 0x9cb   : > { %v2413_v37 = vsel %vm948_vm4, %v2412_v1, %v2395_v39  ;;  %v2435_v8 = vperm.slane %v2427_v6, %v4845_v3 }
 0x9cc   : > { %v2419_v11 = vperm.slane %v2413_v37, %v4845_v3  ;;  %v2425_v13 = vsel %vm948_vm4, %v2424_v5, %v2399_v49  ;;  %v2438_v12 = vrot.slane %v2423_v4, 4  ;;  %v2314_v15 = vpop.permute.xlu0 %2313 }
 0x9cd   : > { %v2431_v16 = vperm.slane %v2425_v13, %v4845_v3  ;;  %v2442_v18 = vrot.slane %v2435_v8, 4  ;;  %v2336_v20 = vrot.slane %v2314_v15, 4 }
 0x9ce   : > { %v2436_v19 = vrot.slane %v2419_v11, 4  ;;  %v2439_v21 = vsel %vm948_vm4, 0.0, %v2438_v12  ;;  %v2564_v22 = vsel %vm948_vm4, %v2438_v12, %v2419_v11 }
 0x9cf   : > { %v2440_v23 = vrot.slane %v2431_v16, 4  ;;  %v2443_v24 = vsel %vm948_vm4, 0.0, %v2442_v18  ;;  %v2568_v25 = vperm.slane %v2564_v22, %v4840_v56  ;;  %v2569_v26 = vrot.slane %v2439_v21, 4 }
 0x9d0   : > { %v2437_v28 = vsel %vm948_vm4, 0.0, %v2436_v19  ;;  %v2575_v29 = vsel %vm948_vm4, %v2442_v18, %v2431_v16  ;;  %v2580_v30 = vrot.slane %v2443_v24, 4 }
 0x9d1   : > { %v2441_v48 = vsel %vm948_vm4, 0.0, %v2440_v23  ;;  %v2570_v31 = vsel %vm948_vm4, %v2569_v26, %v2437_v28  ;;  %v2579_v33 = vperm.slane %v2575_v29, %v4840_v56  ;;  %v2588_v14 = vrot.slane %v2568_v25, 4 }
 0x9d2   : > { %v2574_v53 = vperm.slane %v2570_v31, %v4840_v56  ;;  %v2581_v36 = vsel %vm948_vm4, %v2580_v30, %v2441_v48 }
 0x9d3   : > { %v2585_v40 = vperm.slane %v2581_v36, %v4840_v56  ;;  %v2600_v41 = vrot.slane %v2579_v33, 4 }
 0x9d4   : > { %v2320_v42 = vpop.permute.xlu0 %2319  ;;  %v2589_v43 = vsel %vm948_vm4, %v2574_v53, %v2588_v14  ;;  %v2586_v44 = vrot.slane %v2574_v53, 4 }
 0x9d5   : > { %v2334_v61 = vrot.slane %v2320_v42, 4  ;;  %v2337_v46 = vsel %vm948_vm4, %v2320_v42, %v2336_v20  ;;  %v2597_v47 = vperm.slane %v2589_v43, %v4845_v3  ;;  %v2601_v39 = vsel %vm948_vm4, %v2585_v40, %v2600_v41 }
 0x9d6   : > { %v2345_v45 = vperm.slane %v2337_v46, %v4840_v56  ;;  %v2609_v49 = vperm.slane %v2601_v39, %v4845_v3  ;;  %v2587_v50 = vsel %vm948_vm4, %v2586_v44, %v2568_v25  ;;  %v2598_v51 = vrot.slane %v2585_v40, 4 }
 0x9d7   : > { %v2335_v54 = vsel %vm948_vm4, %v2334_v61, %v2314_v15  ;;  %v2616_v57 = vrot.slane %v2597_v47, 4  ;;  %v2593_v58 = vperm.slane %v2587_v50, %v4845_v3 }
 0x9d8   : > { %v2341_v59 = vperm.slane %v2335_v54, %v4840_v56  ;;  %v2358_v60 = vrot.slane %v2345_v45, 4  ;;  %v2361_v62 = vsel %vm948_vm4, %v2345_v45, %v2360_v55  ;;  %v2614_v63 = vrot.slane %v2609_v49, 4 }
 0x9d9   : > { %v2369_v0 = vperm.slane %v2361_v62, %v4845_v3  ;;  %v2617_v1 = vsel %vm948_vm4, %v2609_v49, %v2616_v57  ;;  %v2599_v2 = vsel %vm948_vm4, %v2598_v51, %v2579_v33  ;;  %v2612_v16 = vrot.slane %v2593_v58, 4 }
 0x9da   : > { %v2346_v4 = vrot.slane %v2341_v59, 4  ;;  %v2349_v5 = vsel %vm948_vm4, %v2341_v59, %v2348_v52  ;;  %v2359_v6 = vsel %vm948_vm4, %v2358_v60, %v2333_v10  ;;  %v2615_v7 = vsel %vm948_vm4, %v2614_v63, %v2597_v47 }
 0x9db   : > { %v2357_v37 = vperm.slane %v2349_v5, %v4845_v3  ;;  %v2365_v8 = vperm.slane %v2359_v6, %v4845_v3  ;;  %v2376_v9 = vrot.slane %v2369_v0, 4  ;;  %v2678_v11 = vpack.c.bf16 %v2615_v7, %v2615_v7 }
 0x9dc   : > { %v2347_v13 = vsel %vm948_vm4, %v2346_v4, %v2329_v38  ;;  %v2679_v12 = vpack.c.bf16 %v2617_v1, %v2617_v1  ;;  %v2605_v15 = vperm.slane %v2599_v2, %v4845_v3 }
 0x9dd   : > { %v2353_v18 = vperm.slane %v2347_v13, %v4845_v3  ;;  %v2372_v19 = vrot.slane %v2357_v37, 4  ;;  %v2374_v21 = vrot.slane %v2365_v8, 4  ;;  %v2377_v10 = vsel %vm948_vm4, 0.0, %v2376_v9 }
 0x9de   : > { %v2521_v22 = vsel %vm948_vm4, %v2376_v9, %v2365_v8  ;;  %v2526_v23 = vrot.slane %v2377_v10, 4  ;;  %v2722_v24 = vsel %vm1306_vm5, %v2678_v11, 0  ;;  %v2741_v25 = vsel %vm1306_vm5, %v2679_v12, 0  ;;  %v4514_v12 = vld [vmem:[%s4803_s1] ss:$0 sm:$0xff] }
 0x9df   : > { %v2370_v26 = vrot.slane %v2353_v18, 4  ;;  %v2373_v27 = vsel %vm948_vm4, 0.0, %v2372_v19  ;;  %v2375_v28 = vsel %vm948_vm4, 0.0, %v2374_v21  ;;  %v2510_v29 = vsel %vm948_vm4, %v2372_v19, %v2353_v18  ;;  %2731 = vmatpush.bf16.xpose.msrb.mxu3 %v2722_v24  ;;  %2750 = vmatpush.bf16.xpose.msrb.mxu0 %v2741_v25 }
 0x9e0   : > { %v2514_v30 = vperm.slane %v2510_v29, %v4840_v56  ;;  %v2515_v48 = vrot.slane %v2373_v27, 4  ;;  %v2525_v31 = vperm.slane %v2521_v22, %v4840_v56  ;;  %v2527_v33 = vsel %vm948_vm4, %v2526_v23, %v2375_v28 }
 0x9e1   : > { %v2371_v14 = vsel %vm948_vm4, 0.0, %v2370_v26  ;;  %v2531_v53 = vperm.slane %v2527_v33, %v4840_v56  ;;  %v2610_v36 = vrot.slane %v2605_v15, 4  ;;  %v2613_v38 = vsel %vm948_vm4, %v2605_v15, %v2612_v16 }
 0x9e2   : > { %v2516_v20 = vsel %vm948_vm4, %v2515_v48, %v2371_v14  ;;  %v2534_v40 = vrot.slane %v2514_v30, 4  ;;  %v2546_v41 = vrot.slane %v2525_v31, 4  ;;  %v2677_v55 = vpack.c.bf16 %v2613_v38, %v2613_v38 }
 0x9e3   : > { %v2520_v42 = vperm.slane %v2516_v20, %v4840_v56  ;;  %v2544_v43 = vrot.slane %v2531_v53, 4  ;;  %v2611_v44 = vsel %vm948_vm4, %v2610_v36, %v2593_v58 }
 0x9e4   : > { %v2676_v61 = vpack.c.bf16 %v2611_v44, %v2611_v44  ;;  %v2703_v46 = vsel %vm1306_vm5, %v2677_v55, 0  ;;  %v2547_v47 = vsel %vm948_vm4, %v2531_v53, %v2546_v41 }
 0x9e5   : > { %v2545_v39 = vsel %vm948_vm4, %v2544_v43, %v2525_v31  ;;  %2712 = vmatpush.bf16.xpose.msra.mxu2 %v2703_v46  ;;  %v2535_v45 = vsel %vm948_vm4, %v2520_v42, %v2534_v40  ;;  %v2555_v49 = vperm.slane %v2547_v47, %v4845_v3  ;;  %v2532_v50 = vrot.slane %v2520_v42, 4 }
 0x9e6   : > { %v2684_v51 = vsel %vm1306_vm5, %v2676_v61, 0  ;;  %v2543_v52 = vperm.slane %v2535_v45, %v4845_v3  ;;  %v2551_v54 = vperm.slane %v2545_v39, %v4845_v3  ;;  %v2141_v31 = vperm.slane %v5201_v35, 2 }
 0x9e7   : > { %2693 = vmatpush.bf16.xpose.msrb.mxu1 %v2684_v51  ;;  %v2560_v57 = vrot.slane %v2555_v49, 4  ;;  %v2533_v58 = vsel %vm948_vm4, %v2532_v50, %v2514_v30 }
 0x9e8   : > { %v2539_v59 = vperm.slane %v2533_v58, %v4845_v3  ;;  %v2556_v60 = vrot.slane %v2551_v54, 4  ;;  %v2562_v62 = vrot.slane %v2543_v52, 4  ;;  %v2309_v33 = vadd.f32 %v5196_v34, %v2141_v31 }
 0x9e9   : > { %v2561_v63 = vsel %vm948_vm4, %v2560_v57, %v2543_v52 }
 0x9ea   : > { %v2674_v0 = vpack.c.bf16 %v2561_v63, %v2561_v63  ;;  %v2557_v1 = vsel %vm948_vm4, %v2556_v60, %v2539_v59  ;;  %v2563_v2 = vsel %vm948_vm4, %v2555_v49, %v2562_v62  ;;  %v2558_v4 = vrot.slane %v2539_v59, 4 }
 0x9eb   : > { %v2672_v5 = vpack.c.bf16 %v2557_v1, %v2557_v1  ;;  %v2675_v6 = vpack.c.bf16 %v2563_v2, %v2563_v2  ;;  %v2456_v50 = vrot.slane %v2309_v33, 4 }
 0x9ec   : > { %4034 = vmatmul.msk.bf16.vlgmr.msrb.gmra.mxu3 %vm1306_vm5, %v2674_v0  ;;  %v2559_v7 = vsel %vm948_vm4, %v2551_v54, %v2558_v4 }
 0x9ed   : > { %4035 = vmatmul.msk.bf16.vlgmr.msrb.gmra.mxu0 %vm1306_vm5, %v2675_v6  ;;  %v2673_v37 = vpack.c.bf16 %v2559_v7, %v2559_v7 }
 0x9ee   : > { %4032 = vmatmul.msk.bf16.vlgmr.msrb.gmra.mxu1 %vm1306_vm5, %v2672_v5 }
 0x9ef   : > { %4033 = vmatmul.msk.bf16.vlgmr.msra.gmra.mxu2 %vm1306_vm5, %v2673_v37 }
 0xa6a   : > { %v2752_v8 = vpop.f32.mrf.mxu0 }
 0xa6b   : > { %v2695_v9 = vpop.f32.mrf.mxu1  ;;  %v2759_v11 = vmul.f32 0.17677669, %v2752_v8 }
 0xa6c   : > { %v2756_v13 = vmul.f32 0.17677669, %v2695_v9 }
 0xa6d   : > { %v2763_v15 = vadd.f32 %v4514_v12, %v2759_v11 }
 0xa6e   : > { %v2760_v16 = vadd.f32 %v4514_v12, %v2756_v13 }
 0xa6f   : > { %v2733_v18 = vpop.f32.mrf.mxu3  ;;  %v2773_v19 = vsel %vm1394_vm6, %v2763_v15, -inf }
 0xa70   : > { %v2758_v21 = vmul.f32 0.17677669, %v2733_v18  ;;  %2774 = vmax.xlane.f32.xlu1 %v2773_v19  ;;  %v2764_v10 = vsel %vm1394_vm6, %v2760_v16, -inf }
 0xa71   : > { %2765 = vmax.xlane.f32.xlu0 %v2764_v10 }
 0xa72   : > { %v2714_v22 = vpop.f32.mrf.mxu2  ;;  %v2754_v23 = vpop.f32.mrf.mxu0  ;;  %v2762_v26 = vadd.f32 %v4514_v12, %v2758_v21 }
 0xa73   : > { %v2697_v24 = vpop.f32.mrf.mxu1  ;;  %v2757_v25 = vmul.f32 0.17677669, %v2714_v22 }
 0xa74   : > { %v2770_v29 = vsel %vm1394_vm6, %v2762_v26, -inf }
 0xa75   : > { %v2761_v27 = vadd.f32 %v4514_v12, %v2757_v25 }
 0xa77   : > { %v2735_v28 = vpop.f32.mrf.mxu3  ;;  %v2767_v30 = vsel %vm1394_vm6, %v2761_v27, -inf }
 0xa78   : > { %2771 = vmax.xlane.f32.xlu1 %v2770_v29  ;;  %2768 = vmax.xlane.f32.xlu2 %v2767_v30 }
 0xa7a   : > { %v2716_v48 = vpop.f32.mrf.mxu2 }
 0xa85   : > { %2448 = vrot.lane.b32.xlu0 %v2309_v33, %s4631_s19 }
 0xa90   : > { %2445 = vrot.lane.b32.xlu2 %v2309_v33, %s4630_s25 }
 0xa91   : > { %2451 = vrot.lane.b32.xlu1 %v2309_v33, %s4629_s23 }
 0xae3   : > { %v2775_v14 = vpop.xlane.xlu1 %2774 }
 0xae4   : > { %v2766_v53 = vpop.xlane.xlu0 %2765  ;;  %v2779_v34 = vsub.f32 %v2763_v15, %v2775_v14 }
 0xae5   : > { %v2776_v36 = vsub.f32 %v2760_v16, %v2766_v53 }
 0xae6   : > { %v2786_v61 = vmul.f32 1.442695, %v2779_v34 }
 0xae7   : > { %v2780_v38 = vmul.f32 1.442695, %v2776_v36 }
 0xae9   : > { %4488 = vpow2.f32 %v2780_v38 }
 0xaeb   : > { %v2772_v20 = vpop.xlane.xlu1 %2771  ;;  %v2769_v40 = vpop.xlane.xlu2 %2768 }
 0xaec   : > { %v2778_v41 = vsub.f32 %v2762_v26, %v2772_v20  ;;  %v2777_v55 = vsub.f32 %v2761_v27, %v2769_v40 }
 0xaee   : > { %v2784_v42 = vmul.f32 1.442695, %v2778_v41  ;;  %v2782_v43 = vmul.f32 1.442695, %v2777_v55 }
 0xaef   : > { %v5309_v35 = vpop.eup %4488 }
 0xaf0   : > { %4490 = vpow2.f32 %v2784_v42  ;;  %v2788_v44 = vsel %vm1394_vm6, %v5309_v35, 0.0 }
 0xaf1   : > { %4492 = vpow2.f32 %v2782_v43  ;;  %2789 = vadd.xlane.f32.xlu1 %v2788_v44 }
 0xaf2   : > { %4494 = vpow2.f32 %v2786_v61 }
 0xaf3   : > { %v2446_v57 = vpop.permute.xlu2 %2445 }
 0xaf4   : > { %v2468_v62 = vrot.slane %v2446_v57, 4 }
 0xaf6   : > { %v5313_v46 = vpop.eup %4490 }
 0xaf7   : > { %v5315_v47 = vpop.eup %4492  ;;  %v2794_v39 = vsel %vm1394_vm6, %v5313_v46, 0.0  ;;  %v2449_v49 = vpop.permute.xlu0 %2448 }
 0xaf8   : > { %v2791_v45 = vsel %vm1394_vm6, %v5315_v47, 0.0  ;;  %2795 = vadd.xlane.f32.xlu0 %v2794_v39  ;;  %v2454_v51 = vrot.slane %v2449_v49, 4  ;;  %v5321_v52 = vpop.eup %4494  ;;  %v2457_v54 = vsel %vm948_vm4, %v2449_v49, %v2456_v50 }
 0xaf9   : > { %2792 = vadd.xlane.f32.xlu2 %v2791_v45  ;;  %v2797_v59 = vsel %vm1394_vm6, %v5321_v52, 0.0  ;;  %v2465_v60 = vperm.slane %v2457_v54, %v4840_v56 }
 0xafa   : > { %v2455_v58 = vsel %vm948_vm4, %v2454_v51, %v2309_v33 }
 0xafb   : > { %v2461_v63 = vperm.slane %v2455_v58, %v4840_v56  ;;  %v2492_v4 = vrot.slane %v2465_v60, 4 }
 0xafd   : > { %v2480_v7 = vrot.slane %v2461_v63, 4 }
 0xb01   : > { %2798 = vadd.xlane.f32.xlu2 %v2797_v59 }
 0xb03   : > { %v2452_v0 = vpop.permute.xlu1 %2451 }
 0xb04   : > { %v2466_v1 = vrot.slane %v2452_v0, 4  ;;  %v2469_v2 = vsel %vm948_vm4, %v2452_v0, %v2468_v62 }
 0xb05   : > { %v2477_v5 = vperm.slane %v2469_v2, %v4840_v56 }
 0xb06   : > { %v2467_v6 = vsel %vm948_vm4, %v2466_v1, %v2446_v57 }
 0xb07   : > { %v2473_v37 = vperm.slane %v2467_v6, %v4840_v56  ;;  %v2490_v8 = vrot.slane %v2477_v5, 4  ;;  %v2493_v9 = vsel %vm948_vm4, %v2477_v5, %v2492_v4 }
 0xb08   : > { %v2501_v11 = vperm.slane %v2493_v9, %v4845_v3 }
 0xb09   : > { %v2478_v13 = vrot.slane %v2473_v37, 4  ;;  %v2481_v12 = vsel %vm948_vm4, %v2473_v37, %v2480_v7  ;;  %v2491_v15 = vsel %vm948_vm4, %v2490_v8, %v2465_v60 }
 0xb0a   : > { %v2489_v16 = vperm.slane %v2481_v12, %v4845_v3  ;;  %v2497_v18 = vperm.slane %v2491_v15, %v4845_v3  ;;  %v2508_v19 = vrot.slane %v2501_v11, 4 }
 0xb0b   : > { %v2479_v21 = vsel %vm948_vm4, %v2478_v13, %v2461_v63 }
 0xb0c   : > { %v2485_v10 = vperm.slane %v2479_v21, %v4845_v3  ;;  %v2504_v22 = vrot.slane %v2489_v16, 4  ;;  %v2506_v23 = vrot.slane %v2497_v18, 4  ;;  %v2509_v24 = vsel %vm948_vm4, 0.0, %v2508_v19 }
 0xb0d   : > { %v2629_v25 = vsel %vm948_vm4, %v2508_v19, %v2497_v18  ;;  %v2634_v26 = vrot.slane %v2509_v24, 4 }
 0xb0e   : > { %v2502_v27 = vrot.slane %v2485_v10, 4  ;;  %v2505_v28 = vsel %vm948_vm4, 0.0, %v2504_v22  ;;  %v2507_v29 = vsel %vm948_vm4, 0.0, %v2506_v23  ;;  %v2618_v30 = vsel %vm948_vm4, %v2504_v22, %v2485_v10 }
 0xb0f   : > { %v2623_v48 = vrot.slane %v2505_v28, 4  ;;  %v2633_v31 = vperm.slane %v2629_v25, %v4840_v56  ;;  %v2635_v33 = vsel %vm948_vm4, %v2634_v26, %v2507_v29  ;;  %v2622_v14 = vperm.slane %v2618_v30, %v4840_v56 }
 0xb10   : > { %v2503_v53 = vsel %vm948_vm4, 0.0, %v2502_v27  ;;  %v2639_v36 = vperm.slane %v2635_v33, %v4840_v56 }
 0xb11   : > { %v2654_v38 = vrot.slane %v2633_v31, 4  ;;  %v2624_v20 = vsel %vm948_vm4, %v2623_v48, %v2503_v53  ;;  %v2642_v40 = vrot.slane %v2622_v14, 4 }
 0xb12   : > { %v2628_v41 = vperm.slane %v2624_v20, %v4840_v56  ;;  %v2652_v55 = vrot.slane %v2639_v36, 4 }
 0xb13   : > { %v2655_v42 = vsel %vm948_vm4, %v2639_v36, %v2654_v38 }
 0xb14   : > { %v2643_v43 = vsel %vm948_vm4, %v2628_v41, %v2642_v40  ;;  %v2663_v34 = vperm.slane %v2655_v42, %v4845_v3  ;;  %v2640_v44 = vrot.slane %v2628_v41, 4  ;;  %v2653_v61 = vsel %vm948_vm4, %v2652_v55, %v2633_v31 }
 0xb15   : > { %v2651_v39 = vperm.slane %v2643_v43, %v4845_v3  ;;  %v2659_v45 = vperm.slane %v2653_v61, %v4845_v3 }
 0xb16   : > { %v2668_v49 = vrot.slane %v2663_v34, 4  ;;  %v2641_v50 = vsel %vm948_vm4, %v2640_v44, %v2622_v14 }
 0xb17   : > { %v2647_v51 = vperm.slane %v2641_v50, %v4845_v3  ;;  %v2664_v54 = vrot.slane %v2659_v45, 4  ;;  %v2670_v57 = vrot.slane %v2651_v39, 4 }
 0xb18   : > { %v2669_v58 = vsel %vm948_vm4, %v2668_v49, %v2651_v39 }
 0xb19   : > { %v2814_v59 = vpack.c.bf16 %v2669_v58, %v2669_v58  ;;  %v2665_v60 = vsel %vm948_vm4, %v2664_v54, %v2647_v51  ;;  %v2671_v62 = vsel %vm948_vm4, %v2663_v34, %v2670_v57  ;;  %v2666_v63 = vrot.slane %v2647_v51, 4 }
 0xb1a   : > { %v2812_v0 = vpack.c.bf16 %v2665_v60, %v2665_v60  ;;  %v2815_v1 = vpack.c.bf16 %v2671_v62, %v2671_v62 }
 0xb1b   : > { %v2858_v2 = vsel %vm1450_vm7, %v2814_v59, 0  ;;  %v2667_v4 = vsel %vm948_vm4, %v2659_v45, %v2666_v63 }
 0xb1c   : > { %2867 = vmatpush.bf16.msra.mxu3 %v2858_v2  ;;  %v2820_v5 = vsel %vm1450_vm7, %v2812_v0, 0  ;;  %v2877_v6 = vsel %vm1450_vm7, %v2815_v1, 0  ;;  %v2813_v7 = vpack.c.bf16 %v2667_v4, %v2667_v4 }
 0xb1d   : > { %2829 = vmatpush.bf16.msra.mxu1 %v2820_v5  ;;  %2886 = vmatpush.bf16.msra.mxu0 %v2877_v6 }
 0xb1e   : > { %v2839_v37 = vsel %vm1450_vm7, %v2813_v7, 0 }
 0xb1f   : > { %2848 = vmatpush.bf16.msrb.mxu2 %v2839_v37 }
 0xb64   : > { %v2790_v8 = vpop.xlane.xlu1 %2789 }
 0xb65   : > { %4496 = vrcp.f32 %v2790_v8 }
 0xb6b   : > { %v4497_v9 = vpop.eup %4496  ;;  %v2796_v11 = vpop.xlane.xlu0 %2795 }
 0xb6c   : > { %v2804_v13 = vmul.f32 %v4497_v9, %v5309_v35  ;;  %v2793_v12 = vpop.xlane.xlu2 %2792  ;;  %4498 = vrcp.f32 %v2796_v11 }
 0xb6d   : > { %4500 = vrcp.f32 %v2793_v12 }
 0xb6e   : > { %v2808_v15 = vpack.c.bf16 %v2804_v13, %v2804_v13 }
 0xb70   : > { %4036 = vmatmul.msk.bf16.vlgmr.msra.gmra.mxu1 %vm1394_vm6, %v2808_v15 }
 0xb72   : > { %v4499_v16 = vpop.eup %4498 }
 0xb73   : > { %v4501_v18 = vpop.eup %4500  ;;  %v2806_v19 = vmul.f32 %v4499_v16, %v5313_v46 }
 0xb74   : > { %v2805_v21 = vmul.f32 %v4501_v18, %v5315_v47  ;;  %v2799_v10 = vpop.xlane.xlu2 %2798 }
 0xb75   : > { %v2810_v22 = vpack.c.bf16 %v2806_v19, %v2806_v19  ;;  %4502 = vrcp.f32 %v2799_v10 }
 0xb76   : > { %v2809_v23 = vpack.c.bf16 %v2805_v21, %v2805_v21 }
 0xb77   : > { %4038 = vmatmul.msk.bf16.vlgmr.msra.gmra.mxu3 %vm1394_vm6, %v2810_v22 }
 0xb78   : > { %4037 = vmatmul.msk.bf16.vlgmr.msrb.gmra.mxu2 %vm1394_vm6, %v2809_v23 }
 0xb7b   : > { %v4503_v35 = vpop.eup %4502 }
 0xb7c   : > { %v2807_v24 = vmul.f32 %v4503_v35, %v5321_v52 }
 0xb7e   : > { %v2811_v25 = vpack.c.bf16 %v2807_v24, %v2807_v24 }
 0xb80   : > { %4039 = vmatmul.msk.bf16.vlgmr.msra.gmra.mxu0 %vm1394_vm6, %v2811_v25  ;;  %vm3560_vm6 = vcmask 1040384  }
 0xbed   : > { %v2831_v26 = vpop.f32.mrf.mxu1 }
 0xbee   : > { %v2894_v28 = vrot.slane %v2831_v26, 4 }
 0xbf5   : > { %v2833_v27 = vpop.f32.mrf.mxu1 }
 0xbfa   : > { %v2869_v46 = vpop.f32.mrf.mxu3 }
 0xbfb   : > { %v2850_v29 = vpop.f32.mrf.mxu2  ;;  %v2892_v47 = vrot.slane %v2869_v46, 4  ;;  %v2895_v30 = vsel %vm948_vm4, %v2869_v46, %v2894_v28 }
 0xbfc   : > { %v2906_v48 = vrot.slane %v2850_v29, 4  ;;  %v2903_v31 = vperm.slane %v2895_v30, %v4840_v56 }
 0xbfd   : > { %v2893_v33 = vsel %vm948_vm4, %v2892_v47, %v2831_v26  ;;  %v2888_v14 = vpop.f32.mrf.mxu0 }
 0xbfe   : > { %v2899_v53 = vperm.slane %v2893_v33, %v4840_v56  ;;  %v2930_v52 = vrot.slane %v2903_v31, 4  ;;  %v2904_v36 = vrot.slane %v2888_v14, 4  ;;  %v2907_v38 = vsel %vm948_vm4, %v2888_v14, %v2906_v48  ;;  %v4352_v33 = vld [vmem:[#allocation5 + $0x78] sm:$0xff]  ;;  %v4351_v14 = vld [vmem:[#allocation5 + $0x70] sm:$0xff] }
 0xbff   : > { %v2915_v20 = vperm.slane %v2907_v38, %v4840_v56  ;;  %3088 = vmatpush.bf16.msrb.mxu1 %v4352_v33  ;;  %v4346_v38 = vld [vmem:[#allocation5 + $0x48] sm:$0xff]  ;;  %v4104_v33 = vld [vmem:[%s5602_s10 + $0x98] sm:$0xf0] }
 0xc00   : > { %v2918_v40 = vrot.slane %v2899_v53, 4  ;;  %v2905_v41 = vsel %vm948_vm4, %v2904_v36, %v2850_v29  ;;  %v4347_v36 = vld [vmem:[#allocation5 + $0x50] sm:$0xff] }
 0xc01   : > { %v2911_v55 = vperm.slane %v2905_v41, %v4840_v56  ;;  %v2928_v42 = vrot.slane %v2915_v20, 4  ;;  %v2931_v43 = vsel %vm948_vm4, %v2915_v20, %v2930_v52  ;;  %v4348_v52 = vld [vmem:[#allocation5 + $0x58] sm:$0xff]  ;;  %v4345_v20 = vld [vmem:[#allocation5 + $0x40] sm:$0xff] }
 0xc02   : > { %v2939_v34 = vperm.slane %v2931_v43, %v4845_v3  ;;  %v2871_v44 = vpop.f32.mrf.mxu3 }
 0xc03   : > { %v2916_v61 = vrot.slane %v2911_v55, 4  ;;  %v2919_v39 = vsel %vm948_vm4, %v2911_v55, %v2918_v40  ;;  %v2929_v45 = vsel %vm948_vm4, %v2928_v42, %v2903_v31  ;;  %v2852_v49 = vpop.f32.mrf.mxu2  ;;  %3089 = vmatpush.bf16.msrb.mxu1 %v4351_v14 }
 0xc04   : > { %v2927_v50 = vperm.slane %v2919_v39, %v4845_v3  ;;  %v2935_v51 = vperm.slane %v2929_v45, %v4845_v3  ;;  %v2946_v54 = vrot.slane %v2939_v34, 4 }
 0xc05   : > { %v2917_v57 = vsel %vm948_vm4, %v2916_v61, %v2899_v53  ;;  %v2890_v58 = vpop.f32.mrf.mxu0  ;;  %v4350_v53 = vld [vmem:[#allocation5 + $0x68] sm:$0xff]  ;;  %v4454_v61 = vld [vmem:[%s5599_s7 + $0x1] ss:$0 sm:$0xff] }
 0xc06   : > { %v2923_v59 = vperm.slane %v2917_v57, %v4845_v3  ;;  %v2942_v60 = vrot.slane %v2927_v50, 4  ;;  %v2944_v62 = vrot.slane %v2935_v51, 4  ;;  %v2947_v63 = vsel %vm948_vm4, 0.0, %v2946_v54  ;;  %v4367_v57 = vld [vmem:[%s5602_s10 + $0xf4] sm:$0xf] }
 0xc07   : > { %v2959_v0 = vsel %vm948_vm4, %v2946_v54, %v2935_v51  ;;  %v2964_v1 = vrot.slane %v2947_v63, 4  ;;  %3090 = vmatpush.bf16.msrb.mxu1 %v4350_v53  ;;  %v4150_v51 = vld [vmem:[%s5602_s10 + $0xf0] sm:$0xf]  ;;  %v4368_v54 = vld [vmem:[%s5602_s10 + $0xf4] sm:$0xf0] }
 0xc08   : > { %v2940_v2 = vrot.slane %v2923_v59, 4  ;;  %v2943_v4 = vsel %vm948_vm4, 0.0, %v2942_v60  ;;  %v2945_v5 = vsel %vm948_vm4, 0.0, %v2944_v62  ;;  %v2963_v6 = vperm.slane %v2959_v0, %v4840_v56 }
 0xc09   : > { %v2953_v7 = vrot.slane %v2943_v4, 4  ;;  %v2948_v37 = vsel %vm948_vm4, %v2942_v60, %v2923_v59  ;;  %v2965_v8 = vsel %vm948_vm4, %v2964_v1, %v2945_v5  ;;  %v4151_v58 = vor.u32 %v4368_v54, %v4150_v51  ;;  %v4152_v59 = vld [vmem:[%s5602_s10 + $0xf8] sm:$0xf0]  ;;  %v4142_v1 = vld [vmem:[%s5602_s10 + $0xe0] sm:$0xf] }
 0xc0a   : > { %v2941_v9 = vsel %vm948_vm4, 0.0, %v2940_v2  ;;  %v2952_v11 = vperm.slane %v2948_v37, %v4840_v56  ;;  %v2969_v13 = vperm.slane %v2965_v8, %v4840_v56  ;;  %v2984_v12 = vrot.slane %v2963_v6, 4  ;;  %v4366_v2 = vld [vmem:[%s5602_s10 + $0xe4] sm:$0xf0]  ;;  %v4365_v4 = vld [vmem:[%s5602_s10 + $0xe4] sm:$0xf] }
 0xc0b   : > { %v2954_v15 = vsel %vm948_vm4, %v2953_v7, %v2941_v9  ;;  %3239 = vmatpush.bf16.msra.mxu2 %v4151_v58  ;;  %v4143_v5 = vor.u32 %v4366_v2, %v4142_v1  ;;  %v4134_v37 = vld [vmem:[%s5602_s10 + $0xd0] sm:$0xf]  ;;  %v4364_v8 = vld [vmem:[%s5602_s10 + $0xd4] sm:$0xf0]  ;;  %v4363_v9 = vld [vmem:[%s5602_s10 + $0xd4] sm:$0xf] }
 0xc0c   : > { %v2958_v16 = vperm.slane %v2954_v15, %v4840_v56  ;;  %v2972_v18 = vrot.slane %v2952_v11, 4  ;;  %v2985_v19 = vsel %vm948_vm4, %v2969_v13, %v2984_v12  ;;  %v2982_v21 = vrot.slane %v2969_v13, 4  ;;  %v4136_v13 = vld [vmem:[%s5602_s10 + $0xd8] sm:$0xf0]  ;;  %v4126_v15 = vld [vmem:[%s5602_s10 + $0xc0] sm:$0xf] }
 0xc0d   : > { %v2993_v10 = vperm.slane %v2985_v19, %v4845_v3  ;;  %v4139_v12 = vor.u32 %v4363_v9, %v4136_v13  ;;  %v4374_v1 = vld [vmem:[#allocation7 + $0xa8] sm:$0xff]  ;;  %v4377_v13 = vld [vmem:[#allocation7 + $0xc0] sm:$0xff] }
 0xc0e   : > { %v2973_v22 = vsel %vm948_vm4, %v2958_v16, %v2972_v18  ;;  %v2970_v23 = vrot.slane %v2958_v16, 4  ;;  %v2983_v35 = vsel %vm948_vm4, %v2982_v21, %v2963_v6  ;;  %v4144_v6 = vld [vmem:[%s5602_s10 + $0xe8] sm:$0xf0]  ;;  %v4362_v16 = vld [vmem:[%s5602_s10 + $0xc4] sm:$0xf0] }
 0xc0f   : > { %v2981_v24 = vperm.slane %v2973_v22, %v4845_v3  ;;  %v2998_v25 = vrot.slane %v2993_v10, 4  ;;  %v2989_v26 = vperm.slane %v2983_v35, %v4845_v3  ;;  %v4147_v7 = vor.u32 %v4365_v4, %v4144_v6  ;;  %3240 = vmatpush.bf16.msra.mxu2 %v4143_v5  ;;  %v4361_v18 = vld [vmem:[%s5602_s10 + $0xc4] sm:$0xf]  ;;  %v4128_v21 = vld [vmem:[%s5602_s10 + $0xc8] sm:$0xf0]  ;;  %v4380_v6 = vld [vmem:[#allocation7 + $0xd8] sm:$0xff] }
 0xc10   : > { %v2971_v27 = vsel %vm948_vm4, %v2970_v23, %v2952_v11  ;;  %v4135_v11 = vor.u32 %v4364_v8, %v4134_v37  ;;  %v4127_v19 = vor.u32 %v4362_v16, %v4126_v15  ;;  %v4118_v22 = vld [vmem:[%s5602_s10 + $0xb0] sm:$0xf]  ;;  %v4360_v23 = vld [vmem:[%s5602_s10 + $0xb4] sm:$0xf0]  ;;  %v4359_v35 = vld [vmem:[%s5602_s10 + $0xb4] sm:$0xf] }
 0xc11   : > { %v2999_v56 = vsel %vm948_vm4, %v2998_v25, %v2981_v24  ;;  %v3000_v28 = vrot.slane %v2981_v24, 4  ;;  %v2977_v46 = vperm.slane %v2971_v27, %v4845_v3  ;;  %v2994_v29 = vrot.slane %v2989_v26, 4  ;;  %v4349_v3 = vld [vmem:[#allocation5 + $0x60] sm:$0xff]  ;;  %v4120_v25 = vld [vmem:[%s5602_s10 + $0xb8] sm:$0xf0]  ;;  %v4382_v2 = vld [vmem:[#allocation7 + $0xe8] sm:$0xff] }
 0xc12   : > { %3007 = vrot.lane.b32.xlu2 %v2999_v56, %s4631_s19  ;;  %3091 = vmatpush.bf16.msrb.mxu1 %v4349_v3  ;;  %v4119_v24 = vor.u32 %v4360_v23, %v4118_v22  ;;  %v4110_v27 = vld [vmem:[%s5602_s10 + $0xa0] sm:$0xf]  ;;  %v4358_v56 = vld [vmem:[%s5602_s10 + $0xa4] sm:$0xf0]  ;;  %v4379_v37 = vld [vmem:[#allocation7 + $0xd0] sm:$0xff] }
 0xc13   : > { %v3001_v47 = vsel %vm948_vm4, %v2993_v10, %v3000_v28  ;;  %v2996_v30 = vrot.slane %v2977_v46, 4  ;;  %v2995_v48 = vsel %vm948_vm4, %v2994_v29, %v2977_v46  ;;  %3241 = vmatpush.bf16.msra.mxu2 %v4135_v11  ;;  %v4131_v10 = vor.u32 %v4361_v18, %v4128_v21  ;;  %v4357_v28 = vld [vmem:[%s5602_s10 + $0xa4] sm:$0xf]  ;;  %v4112_v29 = vld [vmem:[%s5602_s10 + $0xa8] sm:$0xf0] }
 0xc14   : > { %3011 = vrot.lane.b32.xlu1 %v3001_v47, %s4630_s25  ;;  %v4111_v46 = vor.u32 %v4358_v56, %v4110_v27  ;;  %v4102_v47 = vld [vmem:[%s5602_s10 + $0x90] sm:$0xf]  ;;  %v4094_v3 = vld [vmem:[%s5602_s10 + $0x80] sm:$0xf] }
 0xc15   : > { %v2997_v31 = vsel %vm948_vm4, %v2989_v26, %v2996_v30  ;;  %v4123_v26 = vor.u32 %v4359_v35, %v4120_v25  ;;  %v4356_v30 = vld [vmem:[%s5602_s10 + $0x94] sm:$0xf0]  ;;  %v4373_v4 = vld [vmem:[#allocation7 + $0xa0] sm:$0xff]  ;;  %v4370_v8 = vld [vmem:[#allocation7 + $0x88] sm:$0xff] }
 0xc16   : > { %3003 = vrot.lane.b32.xlu0 %v2997_v31, %s4629_s23  ;;  %3092 = vmatpush.bf16.msrb.mxu1 %v4348_v52  ;;  %v4355_v31 = vld [vmem:[%s5602_s10 + $0x94] sm:$0xf]  ;;  %v4103_v14 = vor.u32 %v4356_v30, %v4102_v47  ;;  %v4354_v52 = vld [vmem:[%s5602_s10 + $0x84] sm:$0xf0] }
 0xc17   : > { %3242 = vmatpush.bf16.msra.mxu2 %v4127_v19  ;;  %v4107_v53 = vor.u32 %v4355_v31, %v4104_v33  ;;  %v4381_v5 = vld [vmem:[#allocation7 + $0xe0] sm:$0xff]  ;;  %v4378_v9 = vld [vmem:[#allocation7 + $0xc8] sm:$0xff] }
 0xc18   : > { %v4369_v11 = vld [vmem:[#allocation7 + $0x80] sm:$0xff] }
 0xc1a   : > { %3093 = vmatpush.bf16.msrb.mxu1 %v4347_v36  ;;  %v4353_v36 = vld [vmem:[%s5602_s10 + $0x84] sm:$0xf] }
 0xc1b   : > { %3243 = vmatpush.bf16.msra.mxu2 %v4119_v24 }
 0xc1e   : > { %3094 = vmatpush.bf16.msrb.mxu1 %v4346_v38  ;;  %v4096_v38 = vld [vmem:[%s5602_s10 + $0x88] sm:$0xf0] }
 0xc1f   : > { %3244 = vmatpush.bf16.msra.mxu2 %v4111_v46 }
 0xc22   : > { %3095 = vmatpush.bf16.msrb.mxu1 %v4345_v20  ;;  %v4095_v20 = vor.u32 %v4354_v52, %v4094_v3 }
 0xc23   : > { %3245 = vmatpush.bf16.msra.mxu2 %v4103_v14 }
 0xc27   : > { %3246 = vmatpush.bf16.msra.mxu2 %v4095_v20  ;;  %v4457_v20 = vld [vmem:[%s5605_s13 + $0x1] ss:$0 sm:$0xff] }
 0xc6c   : > { %v3008_v41 = vpop.permute.xlu2 %3007 }
 0xc86   : > { %v3012_v42 = vpop.permute.xlu1 %3011 }
 0xc88   : > { %v3004_v40 = vpop.permute.xlu0 %3003 }
 0xc89   : > { %v3014_v55 = vsel %vm1306_vm5, %v2995_v48, %v3004_v40  ;;  %v4115_v48 = vor.u32 %v4357_v28, %v4112_v29  ;;  %v4099_v40 = vor.u32 %v4353_v36, %v4096_v38 }
 0xc8a   : > { %v3015_v43 = vsel %vm1647_vm8, %v3014_v55, %v3008_v41  ;;  %v4376_v41 = vld [vmem:[#allocation7 + $0xb8] sm:$0xff] }
 0xc8b   : > { %v3016_v34 = vsel %vm1649_vm9, %v3015_v43, %v3012_v42  ;;  %v4384_v55 = vld [vmem:[#allocation7 + $0xf8] sm:$0xff]  ;;  %3419 = vmatpush.bf16.msrb.mxu0 %v4376_v41 }
 0xc8c   : > { %v3017_v44 = vpack.c.bf16 %v3016_v34, %v3016_v34  ;;  %3432 = vmatpush.bf16.msra.mxu1 %v4384_v55  ;;  %v4375_v34 = vld [vmem:[#allocation7 + $0xb0] sm:$0xff] }
 0xc8e   : > { %3096 = vmatmul.bf16.vlgmr.msrb.gmra.mxu1 %v3017_v44  ;;  %v4383_v44 = vld [vmem:[#allocation7 + $0xf0] sm:$0xff] }
 0xc8f   : > { %3420 = vmatpush.bf16.msrb.mxu0 %v4375_v34 }
 0xc90   : > { %3433 = vmatpush.bf16.msra.mxu1 %v4383_v44 }
 0xc93   : > { %3421 = vmatpush.bf16.msrb.mxu0 %v4374_v1 }
 0xc94   : > { %3434 = vmatpush.bf16.msra.mxu1 %v4382_v2 }
 0xc97   : > { %3422 = vmatpush.bf16.msrb.mxu0 %v4373_v4 }
 0xc98   : > { %3435 = vmatpush.bf16.msra.mxu1 %v4381_v5 }
 0xc9c   : > { %3436 = vmatpush.bf16.msra.mxu1 %v4380_v6 }
 0xca0   : > { %3437 = vmatpush.bf16.msra.mxu1 %v4379_v37  ;;  %v4458_v37 = vld [vmem:[%s5606_s14 + $0x1] ss:$0 sm:$0xff] }
 0xca4   : > { %3438 = vmatpush.bf16.msra.mxu1 %v4378_v9 }
 0xca8   : > { %3439 = vmatpush.bf16.msra.mxu1 %v4377_v13 }
 0xd0b   : > { %v3097_v39 = vpop.f32.mrf.mxu1 }
 0xd0c   : > { %v3098_v45 = vadd.f32 %v4454_v61, %v3097_v39 }
 0xd0e   : > { %v3101_v49 = vadd.f32 %v3098_v45, %v5192_v32  ;;  %v4155_v32 = vor.u32 %v4367_v57, %v4152_v59  ;;  %v4455_v57 = vld [vmem:[%s5600_s8 + $0x1] ss:$0 sm:$0xff] }
 0xd10   : > { %3106 = vadd.xlane.f32.xlu0 %v3101_v49  ;;  %3252 = vmatpush.bf16.msrb.mxu3 %v4155_v32  ;;  %v4456_v32 = vld [vmem:[%s5601_s9 + $0x1] ss:$0 sm:$0xff] }
 0xd13   : > { %v3099_v50 = vpop.f32.mrf.mxu1 }
 0xd14   : > { %3253 = vmatpush.bf16.msrb.mxu3 %v4147_v7  ;;  %v4371_v7 = vld [vmem:[#allocation7 + $0x90] sm:$0xff] }
 0xd18   : > { %3254 = vmatpush.bf16.msrb.mxu3 %v4139_v12  ;;  %v4091_v12 = vld [vmem:[%s5603_s11 + $0x2] sm:$0x3] }
 0xd19   : > { %v3155_v15 = vperm.slane %v4091_v12, 0  ;;  %v3156_v16 = vperm.slane %v4091_v12, 1 }
 0xd1c   : > { %3255 = vmatpush.bf16.msrb.mxu3 %v4131_v10 }
 0xd20   : > { %3256 = vmatpush.bf16.msrb.mxu3 %v4123_v26 }
 0xd24   : > { %3257 = vmatpush.bf16.msrb.mxu3 %v4115_v48 }
 0xd28   : > { %3258 = vmatpush.bf16.msrb.mxu3 %v4107_v53 }
 0xd2c   : > { %3259 = vmatpush.bf16.msrb.mxu3 %v4099_v40 }
 0xd83   : > { %v3107_v60 = vpop.xlane.xlu0 %3106 }
 0xd84   : > { %v3108_v62 = vmul.f32 %v3107_v60, %v4805_v17 }
 0xd86   : > { %v5440_v63 = vsub.f32 %v3101_v49, %v3108_v62 }
 0xd88   : > { %v3110_v0 = vmul.f32 %v5440_v63, %v5440_v63 }
 0xd8a   : > { %3111 = vadd.xlane.f32.xlu2 %v3110_v0 }
 0xdfd   : > { %v3112_v42 = vpop.xlane.xlu2 %3111 }
 0xdfe   : > { %v3113_v43 = vmul.f32 %v3112_v42, %v4805_v17 }
 0xe00   : > { %v3114_v61 = vadd.f32 1e-05, %v3113_v43 }
 0xe02   : > { %4504 = vrsqrt.f32 %v3114_v61  ;;  %vm3121_vm1 = vweird.f32 %v3114_v61 }
 0xe08   : > { %v4505_v39 = vpop.eup %4504 }
 0xe09   : > { %v3116_v45 = vmul.f32 %v4505_v39, %v3114_v61  ;;  %vm3122_vm0 = vweird.f32 %v4505_v39  ;;  %v4392_v61 = vld [vmem:[%s5608_s16 + $0x38] sm:$0xff] }
 0xe0a   : > { %vm3123_vm2 = vmor %vm3121_vm1, %vm3122_vm0  ;;  %3544 = vmatpush.bf16.msrb.mxu2 %v4392_v61 }
 0xe0b   : > { %v3117_v49 = vmul.f32 %v4505_v39, %v3116_v45 }
 0xe0d   : > { %v3118_v50 = vmul.f32 0.5, %v3117_v49 }
 0xe0f   : > { %v3119_v51 = vsub.f32 1.5, %v3118_v50 }
 0xe11   : > { %v3120_v54 = vmul.f32 %v4505_v39, %v3119_v51  ;;  %v4391_v51 = vld [vmem:[%s5608_s16 + $0x30] sm:$0xff] }
 0xe12   : > { %3545 = vmatpush.bf16.msrb.mxu2 %v4391_v51 }
 0xe13   : > { %v3124_v58 = vsel %vm3123_vm2, %v4505_v39, %v3120_v54  ;;  %v4390_v54 = vld [vmem:[%s5608_s16 + $0x28] sm:$0xff] }
 0xe14   : > { %v3125_v59 = vmul.f32 %v3124_v58, %v5440_v63  ;;  %v4372_v63 = vld [vmem:[#allocation7 + $0x98] sm:$0xff] }
 0xe15   : > { %3423 = vmatpush.bf16.msrb.mxu0 %v4372_v63  ;;  %v4388_v58 = vld [vmem:[%s5608_s16 + $0x18] sm:$0xff] }
 0xe16   : > { %v3129_v60 = vmul.f32 %v4455_v57, %v3125_v59  ;;  %3546 = vmatpush.bf16.msrb.mxu2 %v4390_v54  ;;  %v4389_v57 = vld [vmem:[%s5608_s16 + $0x20] sm:$0xff]  ;;  %v4387_v59 = vld [vmem:[%s5608_s16 + $0x10] sm:$0xff] }
 0xe18   : > { %v5536_v62 = vadd.f32 %v4456_v32, %v3129_v60  ;;  %v4386_v32 = vld [vmem:[%s5608_s16 + $0x8] sm:$0xff]  ;;  %v4385_v60 = vld [vmem:[%s5608_s16] sm:$0xff] }
 0xe19   : > { %3424 = vmatpush.bf16.msrb.mxu0 %v4371_v7 }
 0xe1a   : > { %v3134_v0 = vpack.c.bf16 %v5536_v62, %v5536_v62  ;;  %3547 = vmatpush.bf16.msrb.mxu2 %v4389_v57 }
 0xe1c   : > { %3247 = vmatmul.bf16.vlgmr.msra.gmra.mxu2 %v3134_v0  ;;  %3260 = vmatmul.bf16.vlgmr.msrb.gmra.mxu3 %v3134_v0 }
 0xe1d   : > { %3425 = vmatpush.bf16.msrb.mxu0 %v4370_v8 }
 0xe1e   : > { %3548 = vmatpush.bf16.msrb.mxu2 %v4388_v58 }
 0xe21   : > { %3426 = vmatpush.bf16.msrb.mxu0 %v4369_v11 }
 0xe22   : > { %3549 = vmatpush.bf16.msrb.mxu2 %v4387_v59 }
 0xe26   : > { %3550 = vmatpush.bf16.msrb.mxu2 %v4386_v32 }
 0xe2a   : > { %3551 = vmatpush.bf16.msrb.mxu2 %v4385_v60 }
 0xe9f   : > { %v3248_v18 = vpop.f32.mrf.mxu2  ;;  %v3261_v19 = vpop.f32.mrf.mxu3 }
 0xea0   : > { %v3249_v21 = vadd.f32 %v3248_v18, %v3155_v15  ;;  %v3262_v10 = vadd.f32 %v3261_v19, %v3156_v16  ;;  %v3495_v15 = vld [vmem:[%s5609_s17] sm:$0x1] }
 0xea1   : > { %v3558_v19 = vld [vmem:[%s5610_s18] sm:$0x1] }
 0xea2   : > { %v3267_v22 = vmul.f32 0.044715, %v3249_v21  ;;  %v3268_v23 = vmul.f32 0.044715, %v3262_v10  ;;  %v3265_v31 = vmul.f32 0.5, %v3249_v21  ;;  %v3266_v14 = vmul.f32 0.5, %v3262_v10 }
 0xea4   : > { %v3269_v35 = vmul.f32 %v3267_v22, %v3249_v21  ;;  %v3270_v24 = vmul.f32 %v3268_v23, %v3262_v10 }
 0xea6   : > { %v3271_v25 = vmul.f32 %v3269_v35, %v3249_v21  ;;  %v3272_v26 = vmul.f32 %v3270_v24, %v3262_v10  ;;  %v4634_v35 = vmov 0   ;;  %v3564_v24 = vld [vmem:[#allocation2] sm:$0x1] }
 0xea7   : > { %v3250_v27 = vpop.f32.mrf.mxu2  ;;  %v3263_v56 = vpop.f32.mrf.mxu3  ;;  %4443 = vset.pattern.permute.xlu2 %v4634_v35  ;;  %4444 = vset.pattern.permute.xlu0 %v4634_v35 }
 0xea8   : > { %v3273_v28 = vadd.f32 %v3271_v25, %v3249_v21  ;;  %v3274_v46 = vadd.f32 %v3272_v26, %v3262_v10 }
 0xeaa   : > { %v3275_v29 = vmul.f32 0.7978846, %v3273_v28  ;;  %v3276_v47 = vmul.f32 0.7978846, %v3274_v46 }
 0xeac   : > { %4506 = vtanh.f32 %v3275_v29 }
 0xead   : > { %4508 = vtanh.f32 %v3276_v47 }
 0xeb2   : > { %v4507_v30 = vpop.eup %4506 }
 0xeb3   : > { %v4509_v48 = vpop.eup %4508  ;;  %v3279_v33 = vadd.f32 1.0, %v4507_v30 }
 0xeb4   : > { %v3280_v53 = vadd.f32 1.0, %v4509_v48 }
 0xeb5   : > { %v3281_v3 = vmul.f32 %v3279_v33, %v3265_v31 }
 0xeb6   : > { %v3282_v52 = vmul.f32 %v3280_v53, %v3266_v14 }
 0xeb7   : > { %v3283_v36 = vpack.c.bf16 %v3281_v3, %v3281_v3 }
 0xeb8   : > { %v3284_v38 = vpack.c.bf16 %v3282_v52, %v3282_v52 }
 0xeb9   : > { %3427 = vmatmul.bf16.vlgmr.msrb.gmra.mxu0 %v3283_v36 }
 0xeba   : > { %3440 = vmatmul.bf16.vlgmr.msra.gmra.mxu1 %v3284_v38 }
 0xf36   : > { %v3428_v40 = vpop.f32.mrf.mxu0 }
 0xf37   : > { %v3429_v41 = vadd.f32 %v4457_v20, %v3428_v40  ;;  %v3441_v55 = vpop.f32.mrf.mxu1 }
 0xf39   : > { %v3442_v42 = vadd.f32 %v3441_v55, %v3429_v41 }
 0xf3b   : > { %v3445_v43 = vadd.f32 %v3442_v42, %v5536_v62 }
 0xf3d   : > { %3450 = vadd.xlane.f32.xlu1 %v3445_v43 }
 0xf3e   : > { %v3430_v34 = vpop.f32.mrf.mxu0 }
 0xf3f   : > { %v3443_v44 = vpop.f32.mrf.mxu1 }
 0xfb0   : > { %v3451_v39 = vpop.xlane.xlu1 %3450 }
 0xfb1   : > { %v3452_v45 = vmul.f32 %v3451_v39, %v4805_v17 }
 0xfb3   : > { %v3453_v49 = vsub.f32 %v3445_v43, %v3452_v45 }
 0xfb5   : > { %v3454_v50 = vmul.f32 %v3453_v49, %v3453_v49 }
 0xfb7   : > { %3455 = vadd.xlane.f32.xlu0 %v3454_v50 }
0x102a   : > { %v3456_v62 = vpop.xlane.xlu0 %3455 }
0x102b   : > { %v3457_v0 = vmul.f32 %v3456_v62, %v4805_v17  ;;  %v4459_v17 = vld [vmem:[%s5607_s15 + $0x1] ss:$0 sm:$0xff] }
0x102d   : > { %v3458_v1 = vadd.f32 1e-05, %v3457_v0 }
0x102f   : > { %4510 = vrsqrt.f32 %v3458_v1  ;;  %vm3465_vm4 = vweird.f32 %v3458_v1 }
0x1035   : > { %v4511_v2 = vpop.eup %4510 }
0x1036   : > { %v3460_v4 = vmul.f32 %v4511_v2, %v3458_v1  ;;  %vm3466_vm3 = vweird.f32 %v4511_v2 }
0x1037   : > { %vm3467_vm5 = vmor %vm3465_vm4, %vm3466_vm3 }
0x1038   : > { %v3461_v5 = vmul.f32 %v4511_v2, %v3460_v4 }
0x103a   : > { %v3462_v63 = vmul.f32 0.5, %v3461_v5 }
0x103c   : > { %v3463_v6 = vsub.f32 1.5, %v3462_v63 }
0x103e   : > { %v3464_v7 = vmul.f32 %v4511_v2, %v3463_v6 }
0x1040   : > { %v3468_v8 = vsel %vm3467_vm5, %v4511_v2, %v3464_v7 }
0x1041   : > { %v3469_v9 = vmul.f32 %v3468_v8, %v3453_v49 }
0x1043   : > { %v3473_v11 = vmul.f32 %v4458_v37, %v3469_v9 }
0x1045   : > { %v3477_v13 = vadd.f32 %v4459_v17, %v3473_v11 }
0x1047   : > { %v3478_v12 = vpack.c.bf16 %v3477_v13, %v3477_v13 }
0x1049   : > { %3552 = vmatmul.bf16.vlgmr.msrb.gmra.mxu2 %v3478_v12 }
0x10cc   : > { %v3553_v16 = vpop.f32.mrf.mxu2 }
0x10cd   : > { %v3554_v18 = vadd.f32 %v3553_v16, %v3495_v15 }
0x10cf   : > { %4512 = vtanh.f32 %v3554_v18 }
0x10d4   : > { %v3555_v21 = vpop.f32.mrf.mxu2 }
0x10d5   : > { %v4513_v10 = vpop.eup %4512 }
0x10d6   : > { %v3559_v22 = vmul.f32 %v4513_v10, %v3558_v19 }
0x10d8   : > { %v3561_v23 = vsel %vm3560_vm6, %v3559_v22, 0.0 }
0x10d9   : > { %3562 = vadd.xlane.f32.xlu0 %v3561_v23 }
0x114c   : > { %v3563_v25 = vpop.xlane.xlu0 %3562 }
0x114d   : > { %v3565_v26 = vadd.f32 %v3564_v24, %v3563_v25 }
0x114f   : > { %3568 = vperm.xlu2 %4443, %v3565_v26  }
0x11a9   : > { %v3569_v27 = vpop.permute.xlu2 %3568 }
0x11aa   : > { %3571 = vst [vmem:[%s688_s28] sm:$0x1] %v3569_v27 }
0x11ab PF: > { %s5629_s4 = sld [smem:[#allocation10_spill]] }
0x11b1   : > { %s34_s23 = sadd.s32 1, %s5629_s4  }
0x11b2   : > { %p31_p7 = scmp.ge.s32.totalorder %s34_s23, 4  }
0x11b4   :  { %33 = sbr.rel (!%p31_p7) target bundleno = 9 (0x9), region = 158 }
0x11b9   :  { %3589 = vsyncpa [#allocation4], 1 }
0x11ba   :  { %3591 = vsyncpa [#allocation4 + $0x1], 1 }
0x11bb   :  { %3592 = vsyncpa [#allocation6], 1 }

</bundles_post_ra>
